<compile_context>
chip_gen: v7x
topology: tpu7x:2x2x1
jax: 0.10.0
libtpu: 0.0.40
codegen_flags: <defaults>
</compile_context>

<pallas_src>
import functools
import math

import numpy as np
import jax
import jax.numpy as jnp
from jax import lax
from jax.experimental import pallas as pl
from jax.experimental.pallas import tpu as pltpu


# -----------------------------------------------------------------------------
# Kernel
# -----------------------------------------------------------------------------
def _layer_norm(x, gamma, beta, eps=1e-5):
    mu = jnp.mean(x, axis=-1, keepdims=True)
    var = jnp.mean((x - mu) ** 2, axis=-1, keepdims=True)
    return (x - mu) * lax.rsqrt(var + eps) * gamma + beta


def encoder_layer_kernel(xq_ref, xkv_ref, mask_ref,
                         wq_ref, bq_ref, wk_ref, bk_ref, wv_ref, bv_ref,
                         wo_ref, bo_ref, g1_ref, bn1_ref,
                         w1_ref, bf1_ref, w2_ref, bf2_ref,
                         g2_ref, bn2_ref,
                         out_ref, *, num_heads, k_dim, v_dim):
    del v_dim  # implied by weight shapes
    f32 = jnp.float32
    bf16 = jnp.bfloat16

    xq = xq_ref[0]                      # (TQ, D) f32 -- query rows of this grid step
    xkv = xkv_ref[0]                    # (S,  D) f32 -- full sequence (keys / values)
    m = mask_ref[0]                     # (1,  S) f32

    xq_b = xq.astype(bf16)
    xkv_b = xkv.astype(bf16)

    # Loop-invariant additive mask (hoisted out of the head loop).
    # mask == 0  ->  add -1e9 to the logit (equivalent to masked_fill for softmax).
    mask_add = jnp.where(m == 0.0, -1e9, 0.0).astype(f32)          # (1, S)

    inv_sqrt_dk = 1.0 / math.sqrt(k_dim)

    attn = None
    for h in range(num_heads):          # static unroll; no lane slicing, no concat
        # Per-head projections straight from per-head weight slabs (bf16 MXU, f32 acc).
        q_h = jnp.dot(xq_b, wq_ref[h], preferred_element_type=f32) + bq_ref[h]    # (TQ, dk)
        k_h = jnp.dot(xkv_b, wk_ref[h], preferred_element_type=f32) + bk_ref[h]   # (S,  dk)
        v_h = jnp.dot(xkv_b, wv_ref[h], preferred_element_type=f32) + bv_ref[h]   # (S,  dv)

        # Q @ K^T with the transpose folded into the contraction (no XLU transpose).
        s = lax.dot_general(q_h.astype(bf16), k_h.astype(bf16),
                            (((1,), (1,)), ((), ())),
                            preferred_element_type=f32)                            # (TQ, S)
        s = s * inv_sqrt_dk + mask_add

        # Softmax in f32; divide via the EUP approximate reciprocal.
        s = s - jnp.max(s, axis=-1, keepdims=True)
        p = jnp.exp(s)
        p = p * pl.reciprocal(jnp.sum(p, axis=-1, keepdims=True), approx=True)

        ctx = jnp.dot(p.astype(bf16), v_h.astype(bf16),
                      preferred_element_type=f32)                                  # (TQ, dv)
        # Per-head slice of the output projection -> accumulate; replaces concat + fc.
        contrib = jnp.dot(ctx.astype(bf16), wo_ref[h],
                          preferred_element_type=f32)                              # (TQ, D)
        attn = contrib if attn is None else attn + contrib

    attn = attn + bo_ref[...]

    # residual + first LayerNorm (dropout = identity at inference); f32 math.
    h1 = _layer_norm(xq + attn, g1_ref[...], bn1_ref[...])

    # position-wise feed-forward (bf16 matmuls, f32 accumulation / elementwise).
    ff = jnp.dot(h1.astype(bf16), w1_ref[...], preferred_element_type=f32) + bf1_ref[...]
    ff = jnp.maximum(ff, 0.0)
    ff = jnp.dot(ff.astype(bf16), w2_ref[...], preferred_element_type=f32) + bf2_ref[...]

    # residual + second LayerNorm.
    out_ref[0] = _layer_norm(h1 + ff, g2_ref[...], bn2_ref[...])


# -----------------------------------------------------------------------------
# Wrapper (pallas_call plumbing)
# -----------------------------------------------------------------------------
def encoder_layer(src, src_mask, params, *, num_heads, k_dim, v_dim, block_q=128):
    B, S, D = src.shape
    H, dk, dv = num_heads, k_dim, v_dim
    F = params["w1"].shape[1]
    # nn.LayerNorm(intermediate_dim) is applied to a model_dim-sized tensor.
    assert F == D, "second LayerNorm requires intermediate_dim == model_dim"
    TQ = min(block_q, S)
    assert S % TQ == 0 and TQ % 8 == 0, "query tile must divide S and be sublane-aligned"

    bf16 = jnp.bfloat16
    # Head split done once in plain JAX (free): per-head weight slabs so the kernel
    # never slices lanes or concatenates heads.  Matmul weights pre-cast to bf16
    # (native MXU dtype; halves weight DMA + VMEM); biases / LN params stay f32.
    wq = params["wq"].reshape(D, H, dk).transpose(1, 0, 2).astype(bf16)   # (H, D, dk)
    wk = params["wk"].reshape(D, H, dk).transpose(1, 0, 2).astype(bf16)   # (H, D, dk)
    wv = params["wv"].reshape(D, H, dv).transpose(1, 0, 2).astype(bf16)   # (H, D, dv)
    wo = params["wo"].reshape(H, dv, D).astype(bf16)                      # (H, dv, D)
    bq = params["bq"].reshape(H, 1, dk)
    bk = params["bk"].reshape(H, 1, dk)
    bv = params["bv"].reshape(H, 1, dv)
    w1 = params["w1"].astype(bf16)
    w2 = params["w2"].astype(bf16)

    weights = [wq, bq, wk, bk, wv, bv, wo, params["bo"],
               params["g1"], params["bn1"], w1, params["bf1"],
               w2, params["bf2"], params["g2"], params["bn2"]]
    # Grid-invariant weight blocks: index never changes -> no re-DMA across steps.
    w_specs = [pl.BlockSpec(w.shape, lambda b, qi, n=w.ndim: (0,) * n) for w in weights]

    kern = functools.partial(encoder_layer_kernel,
                             num_heads=H, k_dim=dk, v_dim=dv)
    return pl.pallas_call(
        kern,
        out_shape=jax.ShapeDtypeStruct((B, S, D), jnp.float32),
        grid=(B, S // TQ),
        in_specs=[pl.BlockSpec((1, TQ, D), lambda b, qi: (b, qi, 0)),   # query rows
                  pl.BlockSpec((1, S, D), lambda b, qi: (b, 0, 0)),     # full seq (K/V)
                  pl.BlockSpec((1, 1, S), lambda b, qi: (b, 0, 0))] + w_specs,
        out_specs=pl.BlockSpec((1, TQ, D), lambda b, qi: (b, qi, 0)),
        compiler_params=pltpu.CompilerParams(
            dimension_semantics=("parallel", "parallel")),
    )(src, src, src_mask, *weights)


# -----------------------------------------------------------------------------
# Deterministic parameter init (PyTorch nn.Linear-style uniform)
# -----------------------------------------------------------------------------
def init_layer_params(key, D, F, H, dk, dv):
    ks = jax.random.split(key, 6)

    def lin(k, fan_in, fan_out):
        kw, kb = jax.random.split(k)
        lim = 1.0 / math.sqrt(fan_in)
        w = jax.random.uniform(kw, (fan_in, fan_out), jnp.float32, -lim, lim)
        b = jax.random.uniform(kb, (1, fan_out), jnp.float32, -lim, lim)
        return w, b

    wq, bq = lin(ks[0], D, H * dk)
    wk, bk = lin(ks[1], D, H * dk)
    wv, bv = lin(ks[2], D, H * dv)
    wo, bo = lin(ks[3], H * dv, D)
    w1, bf1 = lin(ks[4], D, F)
    w2, bf2 = lin(ks[5], F, D)
    return dict(wq=wq, bq=bq, wk=wk, bk=bk, wv=wv, bv=bv, wo=wo, bo=bo,
                g1=jnp.ones((1, D), jnp.float32), bn1=jnp.zeros((1, D), jnp.float32),
                w1=w1, bf1=bf1, w2=w2, bf2=bf2,
                g2=jnp.ones((1, F), jnp.float32), bn2=jnp.zeros((1, F), jnp.float32))


# -----------------------------------------------------------------------------
# Pure-JAX f32 reference (matches the PyTorch forward)
# -----------------------------------------------------------------------------
def reference_encoder_layer(src, src_mask, p, *, num_heads, k_dim, v_dim):
    B, S, _ = src.shape

    def ln(t, g, b):
        mu = t.mean(-1, keepdims=True)
        var = ((t - mu) ** 2).mean(-1, keepdims=True)
        return (t - mu) / jnp.sqrt(var + 1e-5) * g + b

    q = src @ p["wq"] + p["bq"]
    k = src @ p["wk"] + p["bk"]
    v = src @ p["wv"] + p["bv"]
    qh = q.reshape(B, S, num_heads, k_dim).transpose(0, 2, 1, 3)
    kh = k.reshape(B, S, num_heads, k_dim).transpose(0, 2, 1, 3)
    vh = v.reshape(B, S, num_heads, v_dim).transpose(0, 2, 1, 3)
    scores = jnp.einsum("bhqd,bhkd->bhqk", qh, kh) / math.sqrt(k_dim)
    scores = jnp.where(src_mask[:, None, :, :] == 0.0, -1e9, scores)
    attn = jax.nn.softmax(scores, axis=-1)
    o = jnp.einsum("bhqk,bhkd->bhqd", attn, vh)
    o = o.transpose(0, 2, 1, 3).reshape(B, S, num_heads * v_dim) @ p["wo"] + p["bo"]
    x = ln(src + o, p["g1"], p["bn1"])
    ff = jnp.maximum(x @ p["w1"] + p["bf1"], 0.0) @ p["w2"] + p["bf2"]
    return ln(x + ff, p["g2"], p["bn2"])


# -----------------------------------------------------------------------------
if __name__ == "__main__":
    # Small, lane-aligned shapes: model_dim = 128 keeps every activation/store
    # lane-dense; S = 128 with 64-row query tiles exercises the (batch, q-tile) grid.
    B, S = 2, 128
    D = 128        # model_dim
    F = 128        # intermediate_dim (must equal model_dim for the 2nd LayerNorm)
    H, dk, dv = 4, 32, 32

    key = jax.random.PRNGKey(0)
    k_src, k_par = jax.random.split(key)

    src = jax.random.normal(k_src, (B, S, D), jnp.float32)
    # mask the last 32 key positions of batch element 1
    src_mask = jnp.ones((B, 1, S), jnp.float32).at[1, 0, 96:].set(0.0)
    params = init_layer_params(k_par, D, F, H, dk, dv)

    out = encoder_layer(src, src_mask, params,
                        num_heads=H, k_dim=dk, v_dim=dv, block_q=64)
    out = jax.block_until_ready(out)

    with jax.default_matmul_precision("float32"):
        ref = reference_encoder_layer(src, src_mask, params,
                                      num_heads=H, k_dim=dk, v_dim=dv)

    # bf16 matmuls (f32 accumulation) vs a full-f32 reference: ~1e-2 level agreement.
    np.testing.assert_allclose(np.asarray(out), np.asarray(ref), rtol=2e-2, atol=2e-2)

    print("KERNEL_OK")
</pallas_src>

<mosaic_0001>
module attributes {stable_mosaic.version = 11 : i64} {
  func.func @encoder_layer_kernel(%arg0: i32, %arg1: i32, %arg2: memref<1x64x128xf32, #tpu.memory_space<vmem>>, %arg3: memref<1x128x128xf32, #tpu.memory_space<vmem>>, %arg4: memref<1x1x128xf32, #tpu.memory_space<vmem>>, %arg5: memref<4x128x32xbf16, #tpu.memory_space<vmem>>, %arg6: memref<4x1x32xf32, #tpu.memory_space<vmem>>, %arg7: memref<4x128x32xbf16, #tpu.memory_space<vmem>>, %arg8: memref<4x1x32xf32, #tpu.memory_space<vmem>>, %arg9: memref<4x128x32xbf16, #tpu.memory_space<vmem>>, %arg10: memref<4x1x32xf32, #tpu.memory_space<vmem>>, %arg11: memref<4x32x128xbf16, #tpu.memory_space<vmem>>, %arg12: memref<1x128xf32, #tpu.memory_space<vmem>>, %arg13: memref<1x128xf32, #tpu.memory_space<vmem>>, %arg14: memref<1x128xf32, #tpu.memory_space<vmem>>, %arg15: memref<128x128xbf16, #tpu.memory_space<vmem>>, %arg16: memref<1x128xf32, #tpu.memory_space<vmem>>, %arg17: memref<128x128xbf16, #tpu.memory_space<vmem>>, %arg18: memref<1x128xf32, #tpu.memory_space<vmem>>, %arg19: memref<1x128xf32, #tpu.memory_space<vmem>>, %arg20: memref<1x128xf32, #tpu.memory_space<vmem>>, %arg21: memref<1x64x128xf32, #tpu.memory_space<vmem>>) attributes {dimension_semantics = [#tpu.dimension_semantics<parallel>, #tpu.dimension_semantics<parallel>], iteration_bounds = array<i64: 2, 2>, scalar_prefetch = 0 : i64, scratch_operands = 0 : i64, tpu.core_type = #tpu.core_type<tc>, window_params = [{transform_indices = @transform_0, window_bounds = array<i64: 1, 64, 128>}, {transform_indices = @transform_1, window_bounds = array<i64: 1, 128, 128>}, {transform_indices = @transform_2, window_bounds = array<i64: 1, 1, 128>}, {pipeline_mode = #tpu.pipeline_mode<synchronous>, transform_indices = @transform_3, window_bounds = array<i64: 4, 128, 32>}, {pipeline_mode = #tpu.pipeline_mode<synchronous>, transform_indices = @transform_4, window_bounds = array<i64: 4, 1, 32>}, {pipeline_mode = #tpu.pipeline_mode<synchronous>, transform_indices = @transform_5, window_bounds = array<i64: 4, 128, 32>}, {pipeline_mode = #tpu.pipeline_mode<synchronous>, transform_indices = @transform_6, window_bounds = array<i64: 4, 1, 32>}, {pipeline_mode = #tpu.pipeline_mode<synchronous>, transform_indices = @transform_7, window_bounds = array<i64: 4, 128, 32>}, {pipeline_mode = #tpu.pipeline_mode<synchronous>, transform_indices = @transform_8, window_bounds = array<i64: 4, 1, 32>}, {pipeline_mode = #tpu.pipeline_mode<synchronous>, transform_indices = @transform_9, window_bounds = array<i64: 4, 32, 128>}, {pipeline_mode = #tpu.pipeline_mode<synchronous>, transform_indices = @transform_10, window_bounds = array<i64: 1, 128>}, {pipeline_mode = #tpu.pipeline_mode<synchronous>, transform_indices = @transform_11, window_bounds = array<i64: 1, 128>}, {pipeline_mode = #tpu.pipeline_mode<synchronous>, transform_indices = @transform_12, window_bounds = array<i64: 1, 128>}, {pipeline_mode = #tpu.pipeline_mode<synchronous>, transform_indices = @transform_13, window_bounds = array<i64: 128, 128>}, {pipeline_mode = #tpu.pipeline_mode<synchronous>, transform_indices = @transform_14, window_bounds = array<i64: 1, 128>}, {pipeline_mode = #tpu.pipeline_mode<synchronous>, transform_indices = @transform_15, window_bounds = array<i64: 128, 128>}, {pipeline_mode = #tpu.pipeline_mode<synchronous>, transform_indices = @transform_16, window_bounds = array<i64: 1, 128>}, {pipeline_mode = #tpu.pipeline_mode<synchronous>, transform_indices = @transform_17, window_bounds = array<i64: 1, 128>}, {pipeline_mode = #tpu.pipeline_mode<synchronous>, transform_indices = @transform_18, window_bounds = array<i64: 1, 128>}, {transform_indices = @transform_19, window_bounds = array<i64: 1, 64, 128>}]} {
    %c0 = arith.constant 0 : index
    %c0_0 = arith.constant 0 : index
    %c0_1 = arith.constant 0 : index
    %0 = vector.load %arg2[%c0, %c0_0, %c0_1] : memref<1x64x128xf32, #tpu.memory_space<vmem>>, vector<1x64x128xf32>
    %1 = vector.shape_cast %0 : vector<1x64x128xf32> to vector<64x128xf32>
    %c0_2 = arith.constant 0 : index
    %c0_3 = arith.constant 0 : index
    %c0_4 = arith.constant 0 : index
    %2 = vector.load %arg3[%c0_2, %c0_3, %c0_4] : memref<1x128x128xf32, #tpu.memory_space<vmem>>, vector<1x128x128xf32>
    %3 = vector.shape_cast %2 : vector<1x128x128xf32> to vector<128x128xf32>
    %c0_5 = arith.constant 0 : index
    %c0_6 = arith.constant 0 : index
    %c0_7 = arith.constant 0 : index
    %4 = vector.load %arg4[%c0_5, %c0_6, %c0_7] : memref<1x1x128xf32, #tpu.memory_space<vmem>>, vector<1x1x128xf32>
    %5 = vector.shape_cast %4 : vector<1x1x128xf32> to vector<1x128xf32>
    %6 = arith.truncf %1 : vector<64x128xf32> to vector<64x128xbf16>
    %7 = arith.truncf %3 : vector<128x128xf32> to vector<128x128xbf16>
    %cst = arith.constant 0.000000e+00 : f32
    %8 = vector.broadcast %cst : f32 to vector<1x128xf32>
    %9 = arith.cmpf oeq, %5, %8 : vector<1x128xf32>
    %cst_8 = arith.constant -1.000000e+09 : f32
    %cst_9 = arith.constant 0.000000e+00 : f32
    %10 = vector.broadcast %cst_8 : f32 to vector<1x128xf32>
    %11 = vector.broadcast %cst_9 : f32 to vector<1x128xf32>
    %12 = arith.select %9, %10, %11 : vector<1x128xi1>, vector<1x128xf32>
    %c0_10 = arith.constant 0 : index
    %c0_11 = arith.constant 0 : index
    %c0_12 = arith.constant 0 : index
    %13 = vector.load %arg5[%c0_10, %c0_11, %c0_12] : memref<4x128x32xbf16, #tpu.memory_space<vmem>>, vector<1x128x32xbf16>
    %14 = vector.shape_cast %13 : vector<1x128x32xbf16> to vector<128x32xbf16>
    %cst_13 = arith.constant dense<0.000000e+00> : vector<64x32xf32>
    %15 = tpu.matmul %6, %14, %cst_13 {dimension_numbers = #tpu.dot_dimension_numbers<[1], [0], [0], [1], [0, 0, 1, 1], [], []>} : vector<64x128xbf16>, vector<128x32xbf16>, vector<64x32xf32> -> vector<64x32xf32>
    %c0_14 = arith.constant 0 : index
    %c0_15 = arith.constant 0 : index
    %c0_16 = arith.constant 0 : index
    %16 = vector.load %arg6[%c0_14, %c0_15, %c0_16] : memref<4x1x32xf32, #tpu.memory_space<vmem>>, vector<1x1x32xf32>
    %17 = vector.shape_cast %16 : vector<1x1x32xf32> to vector<1x32xf32>
    %18 = vector.broadcast %17 : vector<1x32xf32> to vector<64x32xf32>
    %19 = arith.addf %15, %18 : vector<64x32xf32>
    %c0_17 = arith.constant 0 : index
    %c0_18 = arith.constant 0 : index
    %c0_19 = arith.constant 0 : index
    %20 = vector.load %arg7[%c0_17, %c0_18, %c0_19] : memref<4x128x32xbf16, #tpu.memory_space<vmem>>, vector<1x128x32xbf16>
    %21 = vector.shape_cast %20 : vector<1x128x32xbf16> to vector<128x32xbf16>
    %cst_20 = arith.constant dense<0.000000e+00> : vector<128x32xf32>
    %22 = tpu.matmul %7, %21, %cst_20 {dimension_numbers = #tpu.dot_dimension_numbers<[1], [0], [0], [1], [0, 0, 1, 1], [], []>} : vector<128x128xbf16>, vector<128x32xbf16>, vector<128x32xf32> -> vector<128x32xf32>
    %c0_21 = arith.constant 0 : index
    %c0_22 = arith.constant 0 : index
    %c0_23 = arith.constant 0 : index
    %23 = vector.load %arg8[%c0_21, %c0_22, %c0_23] : memref<4x1x32xf32, #tpu.memory_space<vmem>>, vector<1x1x32xf32>
    %24 = vector.shape_cast %23 : vector<1x1x32xf32> to vector<1x32xf32>
    %25 = vector.broadcast %24 : vector<1x32xf32> to vector<128x32xf32>
    %26 = arith.addf %22, %25 : vector<128x32xf32>
    %c0_24 = arith.constant 0 : index
    %c0_25 = arith.constant 0 : index
    %c0_26 = arith.constant 0 : index
    %27 = vector.load %arg9[%c0_24, %c0_25, %c0_26] : memref<4x128x32xbf16, #tpu.memory_space<vmem>>, vector<1x128x32xbf16>
    %28 = vector.shape_cast %27 : vector<1x128x32xbf16> to vector<128x32xbf16>
    %cst_27 = arith.constant dense<0.000000e+00> : vector<128x32xf32>
    %29 = tpu.matmul %7, %28, %cst_27 {dimension_numbers = #tpu.dot_dimension_numbers<[1], [0], [0], [1], [0, 0, 1, 1], [], []>} : vector<128x128xbf16>, vector<128x32xbf16>, vector<128x32xf32> -> vector<128x32xf32>
    %c0_28 = arith.constant 0 : index
    %c0_29 = arith.constant 0 : index
    %c0_30 = arith.constant 0 : index
    %30 = vector.load %arg10[%c0_28, %c0_29, %c0_30] : memref<4x1x32xf32, #tpu.memory_space<vmem>>, vector<1x1x32xf32>
    %31 = vector.shape_cast %30 : vector<1x1x32xf32> to vector<1x32xf32>
    %32 = vector.broadcast %31 : vector<1x32xf32> to vector<128x32xf32>
    %33 = arith.addf %29, %32 : vector<128x32xf32>
    %34 = arith.truncf %19 : vector<64x32xf32> to vector<64x32xbf16>
    %35 = arith.truncf %26 : vector<128x32xf32> to vector<128x32xbf16>
    %cst_31 = arith.constant dense<0.000000e+00> : vector<64x128xf32>
    %36 = tpu.matmul %34, %35, %cst_31 {dimension_numbers = #tpu.dot_dimension_numbers<[1], [1], [0], [0], [0, 0, 1, 0], [], []>} : vector<64x32xbf16>, vector<128x32xbf16>, vector<64x128xf32> -> vector<64x128xf32>
    %cst_32 = arith.constant 0.176776692 : f32
    %37 = vector.broadcast %cst_32 : f32 to vector<64x128xf32>
    %38 = arith.mulf %36, %37 : vector<64x128xf32>
    %39 = vector.broadcast %12 : vector<1x128xf32> to vector<64x128xf32>
    %40 = arith.addf %38, %39 : vector<64x128xf32>
    %cst_33 = arith.constant dense<0xFF800000> : vector<64xf32>
    %41 = vector.multi_reduction <maximumf>, %40, %cst_33 [1] : vector<64x128xf32> to vector<64xf32>
    %42 = vector.shape_cast %41 : vector<64xf32> to vector<64x1xf32>
    %43 = vector.broadcast %42 : vector<64x1xf32> to vector<64x128xf32>
    %44 = arith.subf %40, %43 : vector<64x128xf32>
    %45 = math.exp %44 : vector<64x128xf32>
    %cst_34 = arith.constant dense<0.000000e+00> : vector<64xf32>
    %46 = vector.multi_reduction <add>, %45, %cst_34 [1] : vector<64x128xf32> to vector<64xf32>
    %47 = vector.shape_cast %46 : vector<64xf32> to vector<64x1xf32>
    %48 = tpu.reciprocal %47 {approx = true} : vector<64x1xf32> -> vector<64x1xf32>
    %49 = vector.broadcast %48 : vector<64x1xf32> to vector<64x128xf32>
    %50 = arith.mulf %45, %49 : vector<64x128xf32>
    %51 = arith.truncf %50 : vector<64x128xf32> to vector<64x128xbf16>
    %52 = arith.truncf %33 : vector<128x32xf32> to vector<128x32xbf16>
    %cst_35 = arith.constant dense<0.000000e+00> : vector<64x32xf32>
    %53 = tpu.matmul %51, %52, %cst_35 {dimension_numbers = #tpu.dot_dimension_numbers<[1], [0], [0], [1], [0, 0, 1, 1], [], []>} : vector<64x128xbf16>, vector<128x32xbf16>, vector<64x32xf32> -> vector<64x32xf32>
    %54 = arith.truncf %53 : vector<64x32xf32> to vector<64x32xbf16>
    %c0_36 = arith.constant 0 : index
    %c0_37 = arith.constant 0 : index
    %c0_38 = arith.constant 0 : index
    %55 = vector.load %arg11[%c0_36, %c0_37, %c0_38] : memref<4x32x128xbf16, #tpu.memory_space<vmem>>, vector<1x32x128xbf16>
    %56 = vector.shape_cast %55 : vector<1x32x128xbf16> to vector<32x128xbf16>
    %cst_39 = arith.constant dense<0.000000e+00> : vector<64x128xf32>
    %57 = tpu.matmul %54, %56, %cst_39 {dimension_numbers = #tpu.dot_dimension_numbers<[1], [0], [0], [1], [0, 0, 1, 1], [], []>} : vector<64x32xbf16>, vector<32x128xbf16>, vector<64x128xf32> -> vector<64x128xf32>
    %c1 = arith.constant 1 : index
    %c0_40 = arith.constant 0 : index
    %c0_41 = arith.constant 0 : index
    %58 = vector.load %arg5[%c1, %c0_40, %c0_41] : memref<4x128x32xbf16, #tpu.memory_space<vmem>>, vector<1x128x32xbf16>
    %59 = vector.shape_cast %58 : vector<1x128x32xbf16> to vector<128x32xbf16>
    %cst_42 = arith.constant dense<0.000000e+00> : vector<64x32xf32>
    %60 = tpu.matmul %6, %59, %cst_42 {dimension_numbers = #tpu.dot_dimension_numbers<[1], [0], [0], [1], [0, 0, 1, 1], [], []>} : vector<64x128xbf16>, vector<128x32xbf16>, vector<64x32xf32> -> vector<64x32xf32>
    %c1_43 = arith.constant 1 : index
    %c0_44 = arith.constant 0 : index
    %c0_45 = arith.constant 0 : index
    %61 = vector.load %arg6[%c1_43, %c0_44, %c0_45] : memref<4x1x32xf32, #tpu.memory_space<vmem>>, vector<1x1x32xf32>
    %62 = vector.shape_cast %61 : vector<1x1x32xf32> to vector<1x32xf32>
    %63 = vector.broadcast %62 : vector<1x32xf32> to vector<64x32xf32>
    %64 = arith.addf %60, %63 : vector<64x32xf32>
    %c1_46 = arith.constant 1 : index
    %c0_47 = arith.constant 0 : index
    %c0_48 = arith.constant 0 : index
    %65 = vector.load %arg7[%c1_46, %c0_47, %c0_48] : memref<4x128x32xbf16, #tpu.memory_space<vmem>>, vector<1x128x32xbf16>
    %66 = vector.shape_cast %65 : vector<1x128x32xbf16> to vector<128x32xbf16>
    %cst_49 = arith.constant dense<0.000000e+00> : vector<128x32xf32>
    %67 = tpu.matmul %7, %66, %cst_49 {dimension_numbers = #tpu.dot_dimension_numbers<[1], [0], [0], [1], [0, 0, 1, 1], [], []>} : vector<128x128xbf16>, vector<128x32xbf16>, vector<128x32xf32> -> vector<128x32xf32>
    %c1_50 = arith.constant 1 : index
    %c0_51 = arith.constant 0 : index
    %c0_52 = arith.constant 0 : index
    %68 = vector.load %arg8[%c1_50, %c0_51, %c0_52] : memref<4x1x32xf32, #tpu.memory_space<vmem>>, vector<1x1x32xf32>
    %69 = vector.shape_cast %68 : vector<1x1x32xf32> to vector<1x32xf32>
    %70 = vector.broadcast %69 : vector<1x32xf32> to vector<128x32xf32>
    %71 = arith.addf %67, %70 : vector<128x32xf32>
    %c1_53 = arith.constant 1 : index
    %c0_54 = arith.constant 0 : index
    %c0_55 = arith.constant 0 : index
    %72 = vector.load %arg9[%c1_53, %c0_54, %c0_55] : memref<4x128x32xbf16, #tpu.memory_space<vmem>>, vector<1x128x32xbf16>
    %73 = vector.shape_cast %72 : vector<1x128x32xbf16> to vector<128x32xbf16>
    %cst_56 = arith.constant dense<0.000000e+00> : vector<128x32xf32>
    %74 = tpu.matmul %7, %73, %cst_56 {dimension_numbers = #tpu.dot_dimension_numbers<[1], [0], [0], [1], [0, 0, 1, 1], [], []>} : vector<128x128xbf16>, vector<128x32xbf16>, vector<128x32xf32> -> vector<128x32xf32>
    %c1_57 = arith.constant 1 : index
    %c0_58 = arith.constant 0 : index
    %c0_59 = arith.constant 0 : index
    %75 = vector.load %arg10[%c1_57, %c0_58, %c0_59] : memref<4x1x32xf32, #tpu.memory_space<vmem>>, vector<1x1x32xf32>
    %76 = vector.shape_cast %75 : vector<1x1x32xf32> to vector<1x32xf32>
    %77 = vector.broadcast %76 : vector<1x32xf32> to vector<128x32xf32>
    %78 = arith.addf %74, %77 : vector<128x32xf32>
    %79 = arith.truncf %64 : vector<64x32xf32> to vector<64x32xbf16>
    %80 = arith.truncf %71 : vector<128x32xf32> to vector<128x32xbf16>
    %cst_60 = arith.constant dense<0.000000e+00> : vector<64x128xf32>
    %81 = tpu.matmul %79, %80, %cst_60 {dimension_numbers = #tpu.dot_dimension_numbers<[1], [1], [0], [0], [0, 0, 1, 0], [], []>} : vector<64x32xbf16>, vector<128x32xbf16>, vector<64x128xf32> -> vector<64x128xf32>
    %cst_61 = arith.constant 0.176776692 : f32
    %82 = vector.broadcast %cst_61 : f32 to vector<64x128xf32>
    %83 = arith.mulf %81, %82 : vector<64x128xf32>
    %84 = vector.broadcast %12 : vector<1x128xf32> to vector<64x128xf32>
    %85 = arith.addf %83, %84 : vector<64x128xf32>
    %cst_62 = arith.constant dense<0xFF800000> : vector<64xf32>
    %86 = vector.multi_reduction <maximumf>, %85, %cst_62 [1] : vector<64x128xf32> to vector<64xf32>
    %87 = vector.shape_cast %86 : vector<64xf32> to vector<64x1xf32>
    %88 = vector.broadcast %87 : vector<64x1xf32> to vector<64x128xf32>
    %89 = arith.subf %85, %88 : vector<64x128xf32>
    %90 = math.exp %89 : vector<64x128xf32>
    %cst_63 = arith.constant dense<0.000000e+00> : vector<64xf32>
    %91 = vector.multi_reduction <add>, %90, %cst_63 [1] : vector<64x128xf32> to vector<64xf32>
    %92 = vector.shape_cast %91 : vector<64xf32> to vector<64x1xf32>
    %93 = tpu.reciprocal %92 {approx = true} : vector<64x1xf32> -> vector<64x1xf32>
    %94 = vector.broadcast %93 : vector<64x1xf32> to vector<64x128xf32>
    %95 = arith.mulf %90, %94 : vector<64x128xf32>
    %96 = arith.truncf %95 : vector<64x128xf32> to vector<64x128xbf16>
    %97 = arith.truncf %78 : vector<128x32xf32> to vector<128x32xbf16>
    %cst_64 = arith.constant dense<0.000000e+00> : vector<64x32xf32>
    %98 = tpu.matmul %96, %97, %cst_64 {dimension_numbers = #tpu.dot_dimension_numbers<[1], [0], [0], [1], [0, 0, 1, 1], [], []>} : vector<64x128xbf16>, vector<128x32xbf16>, vector<64x32xf32> -> vector<64x32xf32>
    %99 = arith.truncf %98 : vector<64x32xf32> to vector<64x32xbf16>
    %c1_65 = arith.constant 1 : index
    %c0_66 = arith.constant 0 : index
    %c0_67 = arith.constant 0 : index
    %100 = vector.load %arg11[%c1_65, %c0_66, %c0_67] : memref<4x32x128xbf16, #tpu.memory_space<vmem>>, vector<1x32x128xbf16>
    %101 = vector.shape_cast %100 : vector<1x32x128xbf16> to vector<32x128xbf16>
    %cst_68 = arith.constant dense<0.000000e+00> : vector<64x128xf32>
    %102 = tpu.matmul %99, %101, %cst_68 {dimension_numbers = #tpu.dot_dimension_numbers<[1], [0], [0], [1], [0, 0, 1, 1], [], []>} : vector<64x32xbf16>, vector<32x128xbf16>, vector<64x128xf32> -> vector<64x128xf32>
    %103 = arith.addf %57, %102 : vector<64x128xf32>
    %c2 = arith.constant 2 : index
    %c0_69 = arith.constant 0 : index
    %c0_70 = arith.constant 0 : index
    %104 = vector.load %arg5[%c2, %c0_69, %c0_70] : memref<4x128x32xbf16, #tpu.memory_space<vmem>>, vector<1x128x32xbf16>
    %105 = vector.shape_cast %104 : vector<1x128x32xbf16> to vector<128x32xbf16>
    %cst_71 = arith.constant dense<0.000000e+00> : vector<64x32xf32>
    %106 = tpu.matmul %6, %105, %cst_71 {dimension_numbers = #tpu.dot_dimension_numbers<[1], [0], [0], [1], [0, 0, 1, 1], [], []>} : vector<64x128xbf16>, vector<128x32xbf16>, vector<64x32xf32> -> vector<64x32xf32>
    %c2_72 = arith.constant 2 : index
    %c0_73 = arith.constant 0 : index
    %c0_74 = arith.constant 0 : index
    %107 = vector.load %arg6[%c2_72, %c0_73, %c0_74] : memref<4x1x32xf32, #tpu.memory_space<vmem>>, vector<1x1x32xf32>
    %108 = vector.shape_cast %107 : vector<1x1x32xf32> to vector<1x32xf32>
    %109 = vector.broadcast %108 : vector<1x32xf32> to vector<64x32xf32>
    %110 = arith.addf %106, %109 : vector<64x32xf32>
    %c2_75 = arith.constant 2 : index
    %c0_76 = arith.constant 0 : index
    %c0_77 = arith.constant 0 : index
    %111 = vector.load %arg7[%c2_75, %c0_76, %c0_77] : memref<4x128x32xbf16, #tpu.memory_space<vmem>>, vector<1x128x32xbf16>
    %112 = vector.shape_cast %111 : vector<1x128x32xbf16> to vector<128x32xbf16>
    %cst_78 = arith.constant dense<0.000000e+00> : vector<128x32xf32>
    %113 = tpu.matmul %7, %112, %cst_78 {dimension_numbers = #tpu.dot_dimension_numbers<[1], [0], [0], [1], [0, 0, 1, 1], [], []>} : vector<128x128xbf16>, vector<128x32xbf16>, vector<128x32xf32> -> vector<128x32xf32>
    %c2_79 = arith.constant 2 : index
    %c0_80 = arith.constant 0 : index
    %c0_81 = arith.constant 0 : index
    %114 = vector.load %arg8[%c2_79, %c0_80, %c0_81] : memref<4x1x32xf32, #tpu.memory_space<vmem>>, vector<1x1x32xf32>
    %115 = vector.shape_cast %114 : vector<1x1x32xf32> to vector<1x32xf32>
    %116 = vector.broadcast %115 : vector<1x32xf32> to vector<128x32xf32>
    %117 = arith.addf %113, %116 : vector<128x32xf32>
    %c2_82 = arith.constant 2 : index
    %c0_83 = arith.constant 0 : index
    %c0_84 = arith.constant 0 : index
    %118 = vector.load %arg9[%c2_82, %c0_83, %c0_84] : memref<4x128x32xbf16, #tpu.memory_space<vmem>>, vector<1x128x32xbf16>
    %119 = vector.shape_cast %118 : vector<1x128x32xbf16> to vector<128x32xbf16>
    %cst_85 = arith.constant dense<0.000000e+00> : vector<128x32xf32>
    %120 = tpu.matmul %7, %119, %cst_85 {dimension_numbers = #tpu.dot_dimension_numbers<[1], [0], [0], [1], [0, 0, 1, 1], [], []>} : vector<128x128xbf16>, vector<128x32xbf16>, vector<128x32xf32> -> vector<128x32xf32>
    %c2_86 = arith.constant 2 : index
    %c0_87 = arith.constant 0 : index
    %c0_88 = arith.constant 0 : index
    %121 = vector.load %arg10[%c2_86, %c0_87, %c0_88] : memref<4x1x32xf32, #tpu.memory_space<vmem>>, vector<1x1x32xf32>
    %122 = vector.shape_cast %121 : vector<1x1x32xf32> to vector<1x32xf32>
    %123 = vector.broadcast %122 : vector<1x32xf32> to vector<128x32xf32>
    %124 = arith.addf %120, %123 : vector<128x32xf32>
    %125 = arith.truncf %110 : vector<64x32xf32> to vector<64x32xbf16>
    %126 = arith.truncf %117 : vector<128x32xf32> to vector<128x32xbf16>
    %cst_89 = arith.constant dense<0.000000e+00> : vector<64x128xf32>
    %127 = tpu.matmul %125, %126, %cst_89 {dimension_numbers = #tpu.dot_dimension_numbers<[1], [1], [0], [0], [0, 0, 1, 0], [], []>} : vector<64x32xbf16>, vector<128x32xbf16>, vector<64x128xf32> -> vector<64x128xf32>
    %cst_90 = arith.constant 0.176776692 : f32
    %128 = vector.broadcast %cst_90 : f32 to vector<64x128xf32>
    %129 = arith.mulf %127, %128 : vector<64x128xf32>
    %130 = vector.broadcast %12 : vector<1x128xf32> to vector<64x128xf32>
    %131 = arith.addf %129, %130 : vector<64x128xf32>
    %cst_91 = arith.constant dense<0xFF800000> : vector<64xf32>
    %132 = vector.multi_reduction <maximumf>, %131, %cst_91 [1] : vector<64x128xf32> to vector<64xf32>
    %133 = vector.shape_cast %132 : vector<64xf32> to vector<64x1xf32>
    %134 = vector.broadcast %133 : vector<64x1xf32> to vector<64x128xf32>
    %135 = arith.subf %131, %134 : vector<64x128xf32>
    %136 = math.exp %135 : vector<64x128xf32>
    %cst_92 = arith.constant dense<0.000000e+00> : vector<64xf32>
    %137 = vector.multi_reduction <add>, %136, %cst_92 [1] : vector<64x128xf32> to vector<64xf32>
    %138 = vector.shape_cast %137 : vector<64xf32> to vector<64x1xf32>
    %139 = tpu.reciprocal %138 {approx = true} : vector<64x1xf32> -> vector<64x1xf32>
    %140 = vector.broadcast %139 : vector<64x1xf32> to vector<64x128xf32>
    %141 = arith.mulf %136, %140 : vector<64x128xf32>
    %142 = arith.truncf %141 : vector<64x128xf32> to vector<64x128xbf16>
    %143 = arith.truncf %124 : vector<128x32xf32> to vector<128x32xbf16>
    %cst_93 = arith.constant dense<0.000000e+00> : vector<64x32xf32>
    %144 = tpu.matmul %142, %143, %cst_93 {dimension_numbers = #tpu.dot_dimension_numbers<[1], [0], [0], [1], [0, 0, 1, 1], [], []>} : vector<64x128xbf16>, vector<128x32xbf16>, vector<64x32xf32> -> vector<64x32xf32>
    %145 = arith.truncf %144 : vector<64x32xf32> to vector<64x32xbf16>
    %c2_94 = arith.constant 2 : index
    %c0_95 = arith.constant 0 : index
    %c0_96 = arith.constant 0 : index
    %146 = vector.load %arg11[%c2_94, %c0_95, %c0_96] : memref<4x32x128xbf16, #tpu.memory_space<vmem>>, vector<1x32x128xbf16>
    %147 = vector.shape_cast %146 : vector<1x32x128xbf16> to vector<32x128xbf16>
    %cst_97 = arith.constant dense<0.000000e+00> : vector<64x128xf32>
    %148 = tpu.matmul %145, %147, %cst_97 {dimension_numbers = #tpu.dot_dimension_numbers<[1], [0], [0], [1], [0, 0, 1, 1], [], []>} : vector<64x32xbf16>, vector<32x128xbf16>, vector<64x128xf32> -> vector<64x128xf32>
    %149 = arith.addf %103, %148 : vector<64x128xf32>
    %c3 = arith.constant 3 : index
    %c0_98 = arith.constant 0 : index
    %c0_99 = arith.constant 0 : index
    %150 = vector.load %arg5[%c3, %c0_98, %c0_99] : memref<4x128x32xbf16, #tpu.memory_space<vmem>>, vector<1x128x32xbf16>
    %151 = vector.shape_cast %150 : vector<1x128x32xbf16> to vector<128x32xbf16>
    %cst_100 = arith.constant dense<0.000000e+00> : vector<64x32xf32>
    %152 = tpu.matmul %6, %151, %cst_100 {dimension_numbers = #tpu.dot_dimension_numbers<[1], [0], [0], [1], [0, 0, 1, 1], [], []>} : vector<64x128xbf16>, vector<128x32xbf16>, vector<64x32xf32> -> vector<64x32xf32>
    %c3_101 = arith.constant 3 : index
    %c0_102 = arith.constant 0 : index
    %c0_103 = arith.constant 0 : index
    %153 = vector.load %arg6[%c3_101, %c0_102, %c0_103] : memref<4x1x32xf32, #tpu.memory_space<vmem>>, vector<1x1x32xf32>
    %154 = vector.shape_cast %153 : vector<1x1x32xf32> to vector<1x32xf32>
    %155 = vector.broadcast %154 : vector<1x32xf32> to vector<64x32xf32>
    %156 = arith.addf %152, %155 : vector<64x32xf32>
    %c3_104 = arith.constant 3 : index
    %c0_105 = arith.constant 0 : index
    %c0_106 = arith.constant 0 : index
    %157 = vector.load %arg7[%c3_104, %c0_105, %c0_106] : memref<4x128x32xbf16, #tpu.memory_space<vmem>>, vector<1x128x32xbf16>
    %158 = vector.shape_cast %157 : vector<1x128x32xbf16> to vector<128x32xbf16>
    %cst_107 = arith.constant dense<0.000000e+00> : vector<128x32xf32>
    %159 = tpu.matmul %7, %158, %cst_107 {dimension_numbers = #tpu.dot_dimension_numbers<[1], [0], [0], [1], [0, 0, 1, 1], [], []>} : vector<128x128xbf16>, vector<128x32xbf16>, vector<128x32xf32> -> vector<128x32xf32>
    %c3_108 = arith.constant 3 : index
    %c0_109 = arith.constant 0 : index
    %c0_110 = arith.constant 0 : index
    %160 = vector.load %arg8[%c3_108, %c0_109, %c0_110] : memref<4x1x32xf32, #tpu.memory_space<vmem>>, vector<1x1x32xf32>
    %161 = vector.shape_cast %160 : vector<1x1x32xf32> to vector<1x32xf32>
    %162 = vector.broadcast %161 : vector<1x32xf32> to vector<128x32xf32>
    %163 = arith.addf %159, %162 : vector<128x32xf32>
    %c3_111 = arith.constant 3 : index
    %c0_112 = arith.constant 0 : index
    %c0_113 = arith.constant 0 : index
    %164 = vector.load %arg9[%c3_111, %c0_112, %c0_113] : memref<4x128x32xbf16, #tpu.memory_space<vmem>>, vector<1x128x32xbf16>
    %165 = vector.shape_cast %164 : vector<1x128x32xbf16> to vector<128x32xbf16>
    %cst_114 = arith.constant dense<0.000000e+00> : vector<128x32xf32>
    %166 = tpu.matmul %7, %165, %cst_114 {dimension_numbers = #tpu.dot_dimension_numbers<[1], [0], [0], [1], [0, 0, 1, 1], [], []>} : vector<128x128xbf16>, vector<128x32xbf16>, vector<128x32xf32> -> vector<128x32xf32>
    %c3_115 = arith.constant 3 : index
    %c0_116 = arith.constant 0 : index
    %c0_117 = arith.constant 0 : index
    %167 = vector.load %arg10[%c3_115, %c0_116, %c0_117] : memref<4x1x32xf32, #tpu.memory_space<vmem>>, vector<1x1x32xf32>
    %168 = vector.shape_cast %167 : vector<1x1x32xf32> to vector<1x32xf32>
    %169 = vector.broadcast %168 : vector<1x32xf32> to vector<128x32xf32>
    %170 = arith.addf %166, %169 : vector<128x32xf32>
    %171 = arith.truncf %156 : vector<64x32xf32> to vector<64x32xbf16>
    %172 = arith.truncf %163 : vector<128x32xf32> to vector<128x32xbf16>
    %cst_118 = arith.constant dense<0.000000e+00> : vector<64x128xf32>
    %173 = tpu.matmul %171, %172, %cst_118 {dimension_numbers = #tpu.dot_dimension_numbers<[1], [1], [0], [0], [0, 0, 1, 0], [], []>} : vector<64x32xbf16>, vector<128x32xbf16>, vector<64x128xf32> -> vector<64x128xf32>
    %cst_119 = arith.constant 0.176776692 : f32
    %174 = vector.broadcast %cst_119 : f32 to vector<64x128xf32>
    %175 = arith.mulf %173, %174 : vector<64x128xf32>
    %176 = vector.broadcast %12 : vector<1x128xf32> to vector<64x128xf32>
    %177 = arith.addf %175, %176 : vector<64x128xf32>
    %cst_120 = arith.constant dense<0xFF800000> : vector<64xf32>
    %178 = vector.multi_reduction <maximumf>, %177, %cst_120 [1] : vector<64x128xf32> to vector<64xf32>
    %179 = vector.shape_cast %178 : vector<64xf32> to vector<64x1xf32>
    %180 = vector.broadcast %179 : vector<64x1xf32> to vector<64x128xf32>
    %181 = arith.subf %177, %180 : vector<64x128xf32>
    %182 = math.exp %181 : vector<64x128xf32>
    %cst_121 = arith.constant dense<0.000000e+00> : vector<64xf32>
    %183 = vector.multi_reduction <add>, %182, %cst_121 [1] : vector<64x128xf32> to vector<64xf32>
    %184 = vector.shape_cast %183 : vector<64xf32> to vector<64x1xf32>
    %185 = tpu.reciprocal %184 {approx = true} : vector<64x1xf32> -> vector<64x1xf32>
    %186 = vector.broadcast %185 : vector<64x1xf32> to vector<64x128xf32>
    %187 = arith.mulf %182, %186 : vector<64x128xf32>
    %188 = arith.truncf %187 : vector<64x128xf32> to vector<64x128xbf16>
    %189 = arith.truncf %170 : vector<128x32xf32> to vector<128x32xbf16>
    %cst_122 = arith.constant dense<0.000000e+00> : vector<64x32xf32>
    %190 = tpu.matmul %188, %189, %cst_122 {dimension_numbers = #tpu.dot_dimension_numbers<[1], [0], [0], [1], [0, 0, 1, 1], [], []>} : vector<64x128xbf16>, vector<128x32xbf16>, vector<64x32xf32> -> vector<64x32xf32>
    %191 = arith.truncf %190 : vector<64x32xf32> to vector<64x32xbf16>
    %c3_123 = arith.constant 3 : index
    %c0_124 = arith.constant 0 : index
    %c0_125 = arith.constant 0 : index
    %192 = vector.load %arg11[%c3_123, %c0_124, %c0_125] : memref<4x32x128xbf16, #tpu.memory_space<vmem>>, vector<1x32x128xbf16>
    %193 = vector.shape_cast %192 : vector<1x32x128xbf16> to vector<32x128xbf16>
    %cst_126 = arith.constant dense<0.000000e+00> : vector<64x128xf32>
    %194 = tpu.matmul %191, %193, %cst_126 {dimension_numbers = #tpu.dot_dimension_numbers<[1], [0], [0], [1], [0, 0, 1, 1], [], []>} : vector<64x32xbf16>, vector<32x128xbf16>, vector<64x128xf32> -> vector<64x128xf32>
    %195 = arith.addf %149, %194 : vector<64x128xf32>
    %c0_127 = arith.constant 0 : index
    %c0_128 = arith.constant 0 : index
    %196 = vector.load %arg12[%c0_127, %c0_128] : memref<1x128xf32, #tpu.memory_space<vmem>>, vector<1x128xf32>
    %197 = vector.broadcast %196 : vector<1x128xf32> to vector<64x128xf32>
    %198 = arith.addf %195, %197 : vector<64x128xf32>
    %199 = arith.addf %1, %198 : vector<64x128xf32>
    %c0_129 = arith.constant 0 : index
    %c0_130 = arith.constant 0 : index
    %200 = vector.load %arg13[%c0_129, %c0_130] : memref<1x128xf32, #tpu.memory_space<vmem>>, vector<1x128xf32>
    %c0_131 = arith.constant 0 : index
    %c0_132 = arith.constant 0 : index
    %201 = vector.load %arg14[%c0_131, %c0_132] : memref<1x128xf32, #tpu.memory_space<vmem>>, vector<1x128xf32>
    %cst_133 = arith.constant dense<0.000000e+00> : vector<64xf32>
    %202 = vector.multi_reduction <add>, %199, %cst_133 [1] : vector<64x128xf32> to vector<64xf32>
    %203 = vector.shape_cast %202 : vector<64xf32> to vector<64x1xf32>
    %cst_134 = arith.constant 1.280000e+02 : f32
    %204 = vector.broadcast %cst_134 : f32 to vector<64x1xf32>
    %205 = arith.divf %203, %204 : vector<64x1xf32>
    %206 = vector.broadcast %205 : vector<64x1xf32> to vector<64x128xf32>
    %207 = arith.subf %199, %206 : vector<64x128xf32>
    %208 = arith.mulf %207, %207 : vector<64x128xf32>
    %cst_135 = arith.constant dense<0.000000e+00> : vector<64xf32>
    %209 = vector.multi_reduction <add>, %208, %cst_135 [1] : vector<64x128xf32> to vector<64xf32>
    %210 = vector.shape_cast %209 : vector<64xf32> to vector<64x1xf32>
    %cst_136 = arith.constant 1.280000e+02 : f32
    %211 = vector.broadcast %cst_136 : f32 to vector<64x1xf32>
    %212 = arith.divf %210, %211 : vector<64x1xf32>
    %213 = vector.broadcast %205 : vector<64x1xf32> to vector<64x128xf32>
    %214 = arith.subf %199, %213 : vector<64x128xf32>
    %cst_137 = arith.constant 9.99999974E-6 : f32
    %215 = vector.broadcast %cst_137 : f32 to vector<64x1xf32>
    %216 = arith.addf %212, %215 : vector<64x1xf32>
    %217 = math.rsqrt %216 : vector<64x1xf32>
    %218 = vector.broadcast %217 : vector<64x1xf32> to vector<64x128xf32>
    %219 = arith.mulf %214, %218 : vector<64x128xf32>
    %220 = vector.broadcast %200 : vector<1x128xf32> to vector<64x128xf32>
    %221 = arith.mulf %219, %220 : vector<64x128xf32>
    %222 = vector.broadcast %201 : vector<1x128xf32> to vector<64x128xf32>
    %223 = arith.addf %221, %222 : vector<64x128xf32>
    %224 = arith.truncf %223 : vector<64x128xf32> to vector<64x128xbf16>
    %c0_138 = arith.constant 0 : index
    %c0_139 = arith.constant 0 : index
    %225 = vector.load %arg15[%c0_138, %c0_139] : memref<128x128xbf16, #tpu.memory_space<vmem>>, vector<128x128xbf16>
    %cst_140 = arith.constant dense<0.000000e+00> : vector<64x128xf32>
    %226 = tpu.matmul %224, %225, %cst_140 {dimension_numbers = #tpu.dot_dimension_numbers<[1], [0], [0], [1], [0, 0, 1, 1], [], []>} : vector<64x128xbf16>, vector<128x128xbf16>, vector<64x128xf32> -> vector<64x128xf32>
    %c0_141 = arith.constant 0 : index
    %c0_142 = arith.constant 0 : index
    %227 = vector.load %arg16[%c0_141, %c0_142] : memref<1x128xf32, #tpu.memory_space<vmem>>, vector<1x128xf32>
    %228 = vector.broadcast %227 : vector<1x128xf32> to vector<64x128xf32>
    %229 = arith.addf %226, %228 : vector<64x128xf32>
    %cst_143 = arith.constant 0.000000e+00 : f32
    %230 = vector.broadcast %cst_143 : f32 to vector<64x128xf32>
    %231 = arith.maximumf %229, %230 : vector<64x128xf32>
    %232 = arith.truncf %231 : vector<64x128xf32> to vector<64x128xbf16>
    %c0_144 = arith.constant 0 : index
    %c0_145 = arith.constant 0 : index
    %233 = vector.load %arg17[%c0_144, %c0_145] : memref<128x128xbf16, #tpu.memory_space<vmem>>, vector<128x128xbf16>
    %cst_146 = arith.constant dense<0.000000e+00> : vector<64x128xf32>
    %234 = tpu.matmul %232, %233, %cst_146 {dimension_numbers = #tpu.dot_dimension_numbers<[1], [0], [0], [1], [0, 0, 1, 1], [], []>} : vector<64x128xbf16>, vector<128x128xbf16>, vector<64x128xf32> -> vector<64x128xf32>
    %c0_147 = arith.constant 0 : index
    %c0_148 = arith.constant 0 : index
    %235 = vector.load %arg18[%c0_147, %c0_148] : memref<1x128xf32, #tpu.memory_space<vmem>>, vector<1x128xf32>
    %236 = vector.broadcast %235 : vector<1x128xf32> to vector<64x128xf32>
    %237 = arith.addf %234, %236 : vector<64x128xf32>
    %238 = arith.addf %223, %237 : vector<64x128xf32>
    %c0_149 = arith.constant 0 : index
    %c0_150 = arith.constant 0 : index
    %239 = vector.load %arg19[%c0_149, %c0_150] : memref<1x128xf32, #tpu.memory_space<vmem>>, vector<1x128xf32>
    %c0_151 = arith.constant 0 : index
    %c0_152 = arith.constant 0 : index
    %240 = vector.load %arg20[%c0_151, %c0_152] : memref<1x128xf32, #tpu.memory_space<vmem>>, vector<1x128xf32>
    %cst_153 = arith.constant dense<0.000000e+00> : vector<64xf32>
    %241 = vector.multi_reduction <add>, %238, %cst_153 [1] : vector<64x128xf32> to vector<64xf32>
    %242 = vector.shape_cast %241 : vector<64xf32> to vector<64x1xf32>
    %cst_154 = arith.constant 1.280000e+02 : f32
    %243 = vector.broadcast %cst_154 : f32 to vector<64x1xf32>
    %244 = arith.divf %242, %243 : vector<64x1xf32>
    %245 = vector.broadcast %244 : vector<64x1xf32> to vector<64x128xf32>
    %246 = arith.subf %238, %245 : vector<64x128xf32>
    %247 = arith.mulf %246, %246 : vector<64x128xf32>
    %cst_155 = arith.constant dense<0.000000e+00> : vector<64xf32>
    %248 = vector.multi_reduction <add>, %247, %cst_155 [1] : vector<64x128xf32> to vector<64xf32>
    %249 = vector.shape_cast %248 : vector<64xf32> to vector<64x1xf32>
    %cst_156 = arith.constant 1.280000e+02 : f32
    %250 = vector.broadcast %cst_156 : f32 to vector<64x1xf32>
    %251 = arith.divf %249, %250 : vector<64x1xf32>
    %252 = vector.broadcast %244 : vector<64x1xf32> to vector<64x128xf32>
    %253 = arith.subf %238, %252 : vector<64x128xf32>
    %cst_157 = arith.constant 9.99999974E-6 : f32
    %254 = vector.broadcast %cst_157 : f32 to vector<64x1xf32>
    %255 = arith.addf %251, %254 : vector<64x1xf32>
    %256 = math.rsqrt %255 : vector<64x1xf32>
    %257 = vector.broadcast %256 : vector<64x1xf32> to vector<64x128xf32>
    %258 = arith.mulf %253, %257 : vector<64x128xf32>
    %259 = vector.broadcast %239 : vector<1x128xf32> to vector<64x128xf32>
    %260 = arith.mulf %258, %259 : vector<64x128xf32>
    %261 = vector.broadcast %240 : vector<1x128xf32> to vector<64x128xf32>
    %262 = arith.addf %260, %261 : vector<64x128xf32>
    %c0_158 = arith.constant 0 : index
    %c0_159 = arith.constant 0 : index
    %c0_160 = arith.constant 0 : index
    %263 = vector.load %arg21[%c0_158, %c0_159, %c0_160] : memref<1x64x128xf32, #tpu.memory_space<vmem>>, vector<1x64x128xf32>
    %264 = vector.shape_cast %263 : vector<1x64x128xf32> to vector<64x128xf32>
    %265 = vector.shape_cast %262 : vector<64x128xf32> to vector<1x64x128xf32>
    tpu.vector_store %arg21[%c0_158, %c0_159, %c0_160], %265 {strides = array<i32>} : memref<1x64x128xf32, #tpu.memory_space<vmem>>, vector<1x64x128xf32>,
    return
  }
  func.func @transform_0(%arg0: i32, %arg1: i32) -> (i32, i32, i32) {
    %c0_i32 = arith.constant 0 : i32
    %c0_i32_0 = arith.constant 0 : i32
    return %arg0, %arg1, %c0_i32 : i32, i32, i32
  }
  func.func @transform_1(%arg0: i32, %arg1: i32) -> (i32, i32, i32) {
    %c0_i32 = arith.constant 0 : i32
    %c0_i32_0 = arith.constant 0 : i32
    %c0_i32_1 = arith.constant 0 : i32
    return %arg0, %c0_i32, %c0_i32_0 : i32, i32, i32
  }
  func.func @transform_2(%arg0: i32, %arg1: i32) -> (i32, i32, i32) {
    %c0_i32 = arith.constant 0 : i32
    %c0_i32_0 = arith.constant 0 : i32
    %c0_i32_1 = arith.constant 0 : i32
    return %arg0, %c0_i32, %c0_i32_0 : i32, i32, i32
  }
  func.func @transform_3(%arg0: i32, %arg1: i32) -> (i32, i32, i32) {
    %c0_i32 = arith.constant 0 : i32
    %c0_i32_0 = arith.constant 0 : i32
    %c0_i32_1 = arith.constant 0 : i32
    %c0_i32_2 = arith.constant 0 : i32
    return %c0_i32, %c0_i32_0, %c0_i32_1 : i32, i32, i32
  }
  func.func @transform_4(%arg0: i32, %arg1: i32) -> (i32, i32, i32) {
    %c0_i32 = arith.constant 0 : i32
    %c0_i32_0 = arith.constant 0 : i32
    %c0_i32_1 = arith.constant 0 : i32
    %c0_i32_2 = arith.constant 0 : i32
    return %c0_i32, %c0_i32_0, %c0_i32_1 : i32, i32, i32
  }
  func.func @transform_5(%arg0: i32, %arg1: i32) -> (i32, i32, i32) {
    %c0_i32 = arith.constant 0 : i32
    %c0_i32_0 = arith.constant 0 : i32
    %c0_i32_1 = arith.constant 0 : i32
    %c0_i32_2 = arith.constant 0 : i32
    return %c0_i32, %c0_i32_0, %c0_i32_1 : i32, i32, i32
  }
  func.func @transform_6(%arg0: i32, %arg1: i32) -> (i32, i32, i32) {
    %c0_i32 = arith.constant 0 : i32
    %c0_i32_0 = arith.constant 0 : i32
    %c0_i32_1 = arith.constant 0 : i32
    %c0_i32_2 = arith.constant 0 : i32
    return %c0_i32, %c0_i32_0, %c0_i32_1 : i32, i32, i32
  }
  func.func @transform_7(%arg0: i32, %arg1: i32) -> (i32, i32, i32) {
    %c0_i32 = arith.constant 0 : i32
    %c0_i32_0 = arith.constant 0 : i32
    %c0_i32_1 = arith.constant 0 : i32
    %c0_i32_2 = arith.constant 0 : i32
    return %c0_i32, %c0_i32_0, %c0_i32_1 : i32, i32, i32
  }
  func.func @transform_8(%arg0: i32, %arg1: i32) -> (i32, i32, i32) {
    %c0_i32 = arith.constant 0 : i32
    %c0_i32_0 = arith.constant 0 : i32
    %c0_i32_1 = arith.constant 0 : i32
    %c0_i32_2 = arith.constant 0 : i32
    return %c0_i32, %c0_i32_0, %c0_i32_1 : i32, i32, i32
  }
  func.func @transform_9(%arg0: i32, %arg1: i32) -> (i32, i32, i32) {
    %c0_i32 = arith.constant 0 : i32
    %c0_i32_0 = arith.constant 0 : i32
    %c0_i32_1 = arith.constant 0 : i32
    %c0_i32_2 = arith.constant 0 : i32
    return %c0_i32, %c0_i32_0, %c0_i32_1 : i32, i32, i32
  }
  func.func @transform_10(%arg0: i32, %arg1: i32) -> (i32, i32) {
    %c0_i32 = arith.constant 0 : i32
    %c0_i32_0 = arith.constant 0 : i32
    %c0_i32_1 = arith.constant 0 : i32
    return %c0_i32, %c0_i32_0 : i32, i32
  }
  func.func @transform_11(%arg0: i32, %arg1: i32) -> (i32, i32) {
    %c0_i32 = arith.constant 0 : i32
    %c0_i32_0 = arith.constant 0 : i32
    %c0_i32_1 = arith.constant 0 : i32
    return %c0_i32, %c0_i32_0 : i32, i32
  }
  func.func @transform_12(%arg0: i32, %arg1: i32) -> (i32, i32) {
    %c0_i32 = arith.constant 0 : i32
    %c0_i32_0 = arith.constant 0 : i32
    %c0_i32_1 = arith.constant 0 : i32
    return %c0_i32, %c0_i32_0 : i32, i32
  }
  func.func @transform_13(%arg0: i32, %arg1: i32) -> (i32, i32) {
    %c0_i32 = arith.constant 0 : i32
    %c0_i32_0 = arith.constant 0 : i32
    %c0_i32_1 = arith.constant 0 : i32
    return %c0_i32, %c0_i32_0 : i32, i32
  }
  func.func @transform_14(%arg0: i32, %arg1: i32) -> (i32, i32) {
    %c0_i32 = arith.constant 0 : i32
    %c0_i32_0 = arith.constant 0 : i32
    %c0_i32_1 = arith.constant 0 : i32
    return %c0_i32, %c0_i32_0 : i32, i32
  }
  func.func @transform_15(%arg0: i32, %arg1: i32) -> (i32, i32) {
    %c0_i32 = arith.constant 0 : i32
    %c0_i32_0 = arith.constant 0 : i32
    %c0_i32_1 = arith.constant 0 : i32
    return %c0_i32, %c0_i32_0 : i32, i32
  }
  func.func @transform_16(%arg0: i32, %arg1: i32) -> (i32, i32) {
    %c0_i32 = arith.constant 0 : i32
    %c0_i32_0 = arith.constant 0 : i32
    %c0_i32_1 = arith.constant 0 : i32
    return %c0_i32, %c0_i32_0 : i32, i32
  }
  func.func @transform_17(%arg0: i32, %arg1: i32) -> (i32, i32) {
    %c0_i32 = arith.constant 0 : i32
    %c0_i32_0 = arith.constant 0 : i32
    %c0_i32_1 = arith.constant 0 : i32
    return %c0_i32, %c0_i32_0 : i32, i32
  }
  func.func @transform_18(%arg0: i32, %arg1: i32) -> (i32, i32) {
    %c0_i32 = arith.constant 0 : i32
    %c0_i32_0 = arith.constant 0 : i32
    %c0_i32_1 = arith.constant 0 : i32
    return %c0_i32, %c0_i32_0 : i32, i32
  }
  func.func @transform_19(%arg0: i32, %arg1: i32) -> (i32, i32, i32) {
    %c0_i32 = arith.constant 0 : i32
    %c0_i32_0 = arith.constant 0 : i32
    return %arg0, %arg1, %c0_i32 : i32, i32, i32
  }
}

</mosaic_0001>

<bundles_post_ra>
// kernel: tpu_custom_call.1
= control target key start
LH: loop header
LB: loop body
LE: loop exit
PB: predicated region body
PF: predicated region fallthrough
CT: control target
= control target key end

     0   :  { %s8042_s0 = inlined_call_operand.vmem [shape: f32[2,128,128], index: 0, kind: input, shape index: {}]   ;;  %s8043_s1 = inlined_call_operand.vmem [shape: f32[2,128,128], index: 1, kind: input, shape index: {}]   ;;  %s8044_s2 = inlined_call_operand.vmem [shape: f32[2,1,128], index: 2, kind: input, shape index: {}]   ;;  %s8045_s3 = inlined_call_operand.vmem [shape: bf16[4,128,32], index: 3, kind: input, shape index: {}]   ;;  %s8046_s4 = inlined_call_operand.vmem [shape: f32[4,1,32], index: 4, kind: input, shape index: {}]   ;;  %s8047_s5 = inlined_call_operand.vmem [shape: bf16[4,128,32], index: 5, kind: input, shape index: {}]   ;;  %s8048_s6 = inlined_call_operand.vmem [shape: f32[4,1,32], index: 6, kind: input, shape index: {}]   ;;  %s8049_s7 = inlined_call_operand.vmem [shape: bf16[4,128,32], index: 7, kind: input, shape index: {}]   ;;  %s8050_s8 = inlined_call_operand.vmem [shape: f32[4,1,32], index: 8, kind: input, shape index: {}]   ;;  %s8051_s9 = inlined_call_operand.vmem [shape: bf16[4,32,128], index: 9, kind: input, shape index: {}]   ;;  %s8052_s10 = inlined_call_operand.vmem [shape: f32[1,128], index: 10, kind: input, shape index: {}]   ;;  %s8053_s11 = inlined_call_operand.vmem [shape: f32[1,128], index: 11, kind: input, shape index: {}]   ;;  %s8054_s12 = inlined_call_operand.vmem [shape: f32[1,128], index: 12, kind: input, shape index: {}]   ;;  %s8055_s13 = inlined_call_operand.vmem [shape: bf16[128,128], index: 13, kind: input, shape index: {}]   ;;  %s8056_s14 = inlined_call_operand.vmem [shape: f32[1,128], index: 14, kind: input, shape index: {}]   ;;  %s8057_s15 = inlined_call_operand.vmem [shape: bf16[128,128], index: 15, kind: input, shape index: {}]   ;;  %s8058_s16 = inlined_call_operand.vmem [shape: f32[1,128], index: 16, kind: input, shape index: {}]   ;;  %s8059_s17 = inlined_call_operand.vmem [shape: f32[1,128], index: 17, kind: input, shape index: {}]   ;;  %s8060_s18 = inlined_call_operand.vmem [shape: f32[1,128], index: 18, kind: input, shape index: {}]   ;;  %s8061_s19 = inlined_call_operand.hbm [shape: f32[2,128,128], index: 19, kind: output, shape index: {}]  }
   0x1   :  { %8077 = sst [smem:[#allocation17_spill]] %s8042_s0 }
   0x2   :  { %8078 = sst [smem:[#allocation18_spill]] %s8043_s1 }
   0x3   :  { %8079 = sst [smem:[#allocation19_spill]] %s8044_s2 }
   0x4   :  { %8080 = sst [smem:[#allocation20_spill]] %s8045_s3 }
   0x5   :  { %8081 = sst [smem:[#allocation21_spill]] %s8060_s18 }
   0x6   :  { %8082 = sst [smem:[#allocation22_spill]] %s8061_s19 }
   0x7   :  { %24 = vsyncpa [#allocation3], 0 }
   0x8   :  { %26 = vsyncpa [#allocation3 + $0x1], 0  ;;  %s6753_s0 = smov 0   ;;  %s6755_s30 = smov 0  }
   0x9   :  { %s6757_s20 = smov 0   ;;  %s6759_s21 = smov 0  }
   0xa   :  { %s6761_s1 = smov 0   ;;  %s6763_s22 = smov 0  }
   0xb   :  { %s6765_s2 = smov 0   ;;  %s6767_s23 = smov 0  }
   0xc LB: > { %8083 = sst [smem:[#allocation5_spill]] %s6619_s0  ;;  %s4821_s24 = sadd.s32 4294967295, %s6647_s23   ;;  %s6647_s23 = sphi %s6767_s23, %s32_s23   ;;  %s6643_s2 = sphi %s6765_s2, %s8115_s2   ;;  %s6639_s22 = sphi %s6763_s22, %s8114_s22   ;;  %s6635_s1 = sphi %s6761_s1, %s8118_s1   ;;  %s6631_s21 = sphi %s6759_s21, %s8112_s21   ;;  %s6627_s20 = sphi %s6757_s20, %s8111_s20   ;;  %s6623_s30 = sphi %s6755_s30, %s8117_s30   ;;  %s6619_s0 = sphi %s6753_s0, %s8116_s0  }
   0xd   : > { %8084 = sst [smem:[#allocation6_spill]] %s6627_s20  ;;  %s4822_s25 = sadd.s32 4294967294, %s6647_s23  }
   0xe   : > { %8085 = sst [smem:[#allocation7_spill]] %s6635_s1  ;;  %s41_s3 = sadd.s32 1, %s6639_s22 }
   0xf   : > { %8086 = sst [smem:[#allocation8_spill]] %s6639_s22  ;;  %p42_p0 = scmp.ge.s32.totalorder %s41_s3, 2 }
  0x10   : > { %8087 = sst [smem:[#allocation9_spill]] %s6643_s2  ;;  %s44_s26 = sadd.s32 1, %s6643_s2 }
  0x11   : > { %8088 = sst [smem:[#allocation10_spill]] %s6647_s23  ;;  %p479_p1 = scmp.ne.s32.totalorder %s6627_s20, %s6623_s30 }
  0x12   : > { %p480_p2 = scmp.eq.s32.totalorder %s4821_s24, 3  ;;  %s8120_s3 = smov (%p42_p0, %s41_s3), 0 }
  0x13   : > { %8089 = sst [smem:[#allocation11_spill]] %s8120_s3  ;;  %s8122_s26 = smov (!%p42_p0, %s44_s26), %s6643_s2 }
  0x14   : > { %s465_s27 = ssub.s32 %s6639_s22, %s8120_s3  ;;  %p6804_p3 = por %p480_p2, %p479_p1 }
  0x15   : > { %p46_p4 = scmp.ge.s32.totalorder %s8122_s26, 2  ;;  %p485_p5 = scmp.ne.s32.totalorder %s6623_s30, %s6619_s0 }
  0x16   : > { %s8090_s28 = scalar_select %p6804_p3, 1, 0 }
  0x17   : > { %p486_p6 = scmp.eq.s32.totalorder %s4822_s25, 3  ;;  %p4825_p7 = scmp.ge.s32.totalorder %s6647_s23, 1 }
  0x18   : > { %8091 = sst [smem:[#allocation12_spill]] %s8090_s28  ;;  %s8124_s26 = smov (%p46_p4, %s8122_s26), 0 }
  0x19   : > { %8092 = sst [smem:[#allocation13_spill]] %s8124_s26  ;;  %p6813_p8 = por %p486_p6, %p485_p5 }
  0x1a   : > { %p579_p9 = scmp.lt.s32.totalorder %s6647_s23, 5  ;;  %s464_s24 = ssub.s32 %s6643_s2, %s8124_s26 }
  0x1b   : > { %s8093_s29 = scalar_select %p6813_p8, 1, 0 }
  0x1c   : > { %s469_s19 = sadd.s32 1, %s6627_s20  ;;  %s466_s18 = sor.u32 %s465_s27, %s464_s24 }
  0x1d   : > { %8094 = sst [smem:[#allocation14_spill]] %s8093_s29  ;;  %p580_p10 = pnand %p4825_p7, %p579_p9 }
  0x1e   : > { %p467_p11 = scmp.eq.s32.totalorder %s466_s18, 0 }
  0x1f   : > { %583 = sbr.rel (%p580_p10) target bundleno = 5185 (0x1441), region = 96 }
  0x20   : > { %s6822_s3 = scalar_select %p467_p11, %s6627_s20, %s469_s19  }
  0x22   : > { %8095 = sst [smem:[#allocation15_spill]] %s6822_s3 }
  0x26   : > { %v6265_v0 = vld [vmem:[%s8047_s5] sm:$0xff]   ;;  %p648_p12 = scmp.lt.s32.totalorder %s6635_s1, 1  ;;  %v6266_v1 = vld [vmem:[%s8047_s5 + $0x8] sm:$0xff]   ;;  %v6267_v2 = vld [vmem:[%s8047_s5 + $0x10] sm:$0xff]   ;;  %s8096_s24 = sld [smem:[#allocation18_spill]]  ;;  %vm1190_vm0 = vcmask 261120  }
  0x27   : > { %5519 = vmatprep.subr.bf16.mxu1 %v6265_v0  ;;  %s6844_s28 = sshll.u32 %s6631_s21, 3  ;;  %v6268_v3 = vld [vmem:[%s8047_s5 + $0x18] sm:$0xff]   ;;  %s8098_s22 = sld [smem:[#allocation20_spill]]  ;;  %v6269_v8 = vld [vmem:[%s8047_s5 + $0x20] sm:$0xff]   ;;  %v6270_v11 = vld [vmem:[%s8047_s5 + $0x28] sm:$0xff]  }
  0x28   : > { %s6832_s26 = scalar_select %p648_p12, %s6635_s1, 1  ;;  %5520 = vmatpush3.bf16.msra.mxu1 %v6265_v0  ;;  %v6271_v13 = vld [vmem:[%s8047_s5 + $0x30] sm:$0xff]   ;;  %v6272_v18 = vld [vmem:[%s8047_s5 + $0x38] sm:$0xff]   ;;  %v6957_v53 = vld [vmem:[%s8048_s6] ss:$0 sm:$0xff] }
  0x29   : > { %5521 = vmatprep.subr.bf16.mxu1 %v6266_v1  ;;  %8097 = sst [smem:[#allocation16_spill]] %s6844_s28  ;;  %p650_p13 = scmp.lt.s32.totalorder %s6844_s28, 15 }
  0x2a   : > { %s5174_s0 = sshll.u32 %s6832_s26, 7  ;;  %s4828_s18 = sshll.u32 %s6832_s26, 4 }
  0x2b   : > { %s651_s19 = scalar_select %p650_p13, %s6844_s28, 15 }
  0x2c   : > { %s6841_s2 = scalar_lea.vmem %s8096_s24, %s5174_s0  ;;  %5522 = vmatpush3.bf16.msra.mxu1 %v6266_v1  ;;  %s644_s21 = sand.u32 1, %s6623_s30  }
  0x2d   : > { %5523 = vmatprep.subr.bf16.mxu1 %v6267_v2  ;;  %v675_v4 = vld [vmem:[%s6841_s2] sm:$0xff]  ;;  %v676_v5 = vld [vmem:[%s6841_s2 + $0x8] sm:$0xff]  ;;  %s8099_s27 = smov %s8098_s22  ;;  %s653_s3 = sadd.s32 %s4828_s18, %s651_s19  ;;  %v677_v19 = vld [vmem:[%s6841_s2 + $0x10] sm:$0xff] }
  0x2e   : > { %v6853_v6 = vpack.c.bf16 %v676_v5, %v675_v4  ;;  %v6273_v7 = vld [vmem:[%s8098_s22] sm:$0xff]   ;;  %v6274_v9 = vld [vmem:[%s8099_s27 + $0x8] sm:$0xff]   ;;  %v6275_v10 = vld [vmem:[%s8099_s27 + $0x10] sm:$0xff]   ;;  %s4829_s1 = sshll.u32 %s653_s3, 3  ;;  %s8100_s19 = sld [smem:[#allocation17_spill]] }
  0x2f   : > { %5495 = vmatprep.subr.bf16.mxu0 %v6273_v7  ;;  %v6276_v12 = vld [vmem:[%s8099_s27 + $0x18] sm:$0xff]   ;;  %v6277_v16 = vld [vmem:[%s8099_s27 + $0x20] sm:$0xff]   ;;  %v6278_v21 = vld [vmem:[%s8099_s27 + $0x28] sm:$0xff]   ;;  %s8101_s18 = sld [smem:[#allocation19_spill]]  ;;  %s8102_s23 = sld [smem:[#allocation21_spill]] }
  0x30   : > { %5524 = vmatpush3.bf16.msra.mxu1 %v6267_v2  ;;  %5535 = vmatprep.mubr.bf16.mxu1 %v6853_v6  ;;  %v678_v20 = vld [vmem:[%s6841_s2 + $0x18] sm:$0xff]  ;;  %v679_v22 = vld [vmem:[%s6841_s2 + $0x20] sm:$0xff]  ;;  %v680_v23 = vld [vmem:[%s6841_s2 + $0x28] sm:$0xff]  ;;  %s8104_s29 = sld [smem:[#allocation16_spill]] }
  0x31   : > { %5525 = vmatprep.subr.bf16.mxu1 %v6268_v3  ;;  %5496 = vmatpush3.bf16.msra.mxu0 %v6273_v7  ;;  %v6279_v24 = vld [vmem:[%s8099_s27 + $0x30] sm:$0xff]   ;;  %v6904_v25 = vpack.c.bf16 %v678_v20, %v677_v19  ;;  %v6906_v26 = vpack.c.bf16 %v680_v23, %v679_v22  ;;  %v682_v28 = vld [vmem:[%s6841_s2 + $0x38] sm:$0xff]  ;;  %v683_v30 = vld [vmem:[%s6841_s2 + $0x40] sm:$0xff] }
  0x32   : > { %5497 = vmatprep.subr.bf16.mxu0 %v6274_v9  ;;  %v681_v27 = vld [vmem:[%s6841_s2 + $0x30] sm:$0xff]  ;;  %v6280_v29 = vld [vmem:[%s8099_s27 + $0x38] sm:$0xff]   ;;  %v684_v31 = vld [vmem:[%s6841_s2 + $0x48] sm:$0xff] }
  0x33   : > { %v6921_v36 = vpack.c.bf16 %v682_v28, %v681_v27  ;;  %v6923_v37 = vpack.c.bf16 %v684_v31, %v683_v30  ;;  %v685_v38 = vld [vmem:[%s6841_s2 + $0x50] sm:$0xff]  ;;  %v686_v39 = vld [vmem:[%s6841_s2 + $0x58] sm:$0xff]  ;;  %v687_v41 = vld [vmem:[%s6841_s2 + $0x60] sm:$0xff] }
  0x34   : > { %5526 = vmatpush3.bf16.msra.mxu1 %v6268_v3  ;;  %s6875_s22 = scalar_lea.vmem %s8100_s19, %s4829_s1  ;;  %v688_v42 = vld [vmem:[%s6841_s2 + $0x68] sm:$0xff]  ;;  %v6938_v46 = vpack.c.bf16 %v686_v39, %v685_v38  ;;  %v689_v48 = vld [vmem:[%s6841_s2 + $0x70] sm:$0xff]  ;;  %v690_v49 = vld [vmem:[%s6841_s2 + $0x78] sm:$0xff] }
  0x35   : > { %5527 = vmatprep.subr.bf16.mxu1 %v6269_v8  ;;  %5498 = vmatpush3.bf16.msra.mxu0 %v6274_v9  ;;  %v667_v14 = vld [vmem:[%s6875_s22] sm:$0xff]  ;;  %v668_v15 = vld [vmem:[%s6875_s22 + $0x8] sm:$0xff]  ;;  %v669_v32 = vld [vmem:[%s6875_s22 + $0x10] sm:$0xff]  ;;  %v6941_v47 = vpack.c.bf16 %v688_v42, %v687_v41  ;;  %v6950_v51 = vpack.c.bf16 %v690_v49, %v689_v48  ;;  %s664_s19 = scalar_lea.vmem %s8101_s18, %s6832_s26  ;;  %s4826_s18 = sshll.u32 %s644_s21, 6 }
  0x36   : > { %5499 = vmatprep.subr.bf16.mxu0 %v6275_v10  ;;  %v6888_v17 = vpack.c.bf16 %v668_v15, %v667_v14  ;;  %v670_v33 = vld [vmem:[%s6875_s22 + $0x18] sm:$0xff]  ;;  %v671_v34 = vld [vmem:[%s6875_s22 + $0x20] sm:$0xff]  ;;  %v672_v35 = vld [vmem:[%s6875_s22 + $0x28] sm:$0xff]  ;;  %s7963_s28 = scalar_lea.vmem [#allocation2], %s4826_s18  ;;  %s8106_s18 = sld [smem:[#allocation22_spill]] }
  0x37   : > { %v6927_v40 = vpack.c.bf16 %v670_v33, %v669_v32  ;;  %v6932_v43 = vpack.c.bf16 %v672_v35, %v671_v34  ;;  %v673_v44 = vld [vmem:[%s6875_s22 + $0x30] sm:$0xff]  ;;  %v674_v45 = vld [vmem:[%s6875_s22 + $0x38] sm:$0xff]  ;;  %v4832_v3 = vld [vmem:[%s8046_s4] ss:$0 sm:$0xff]  ;;  %s4718_s25 = sshll.u32 %s7963_s28, 4  ;;  %s7990_s26 = scalar_lea.sflag [#allocation3], %s644_s21  ;;  %s7984_s25 = int_to_ptr.vmem [resolvable:$true] %s4718_s25 }
  0x38   : > { %5528 = vmatpush3.bf16.msra.mxu1 %v6269_v8  ;;  %5511 = vmatprep.mubr.bf16.mxu0 %v6888_v17  ;;  %v6945_v50 = vpack.c.bf16 %v674_v45, %v673_v44 }
  0x39   : > { %5529 = vmatprep.subr.bf16.mxu1 %v6270_v11  ;;  %5500 = vmatpush3.bf16.msra.mxu0 %v6275_v10 }
  0x3a   : > { %5501 = vmatprep.subr.bf16.mxu0 %v6276_v12 }
  0x3c   : > { %5530 = vmatpush3.bf16.msra.mxu1 %v6270_v11 }
  0x3d   : > { %5531 = vmatprep.subr.bf16.mxu1 %v6271_v13  ;;  %5502 = vmatpush3.bf16.msra.mxu0 %v6276_v12 }
  0x3e   : > { %5503 = vmatprep.subr.bf16.mxu0 %v6277_v16 }
  0x40   : > { %5532 = vmatpush3.bf16.msra.mxu1 %v6271_v13 }
  0x41   : > { %5533 = vmatprep.subr.bf16.mxu1 %v6272_v18  ;;  %5504 = vmatpush3.bf16.msra.mxu0 %v6277_v16 }
  0x42   : > { %5505 = vmatprep.subr.bf16.mxu0 %v6278_v21 }
  0x44   : > { %5534 = vmatpush3.bf16.msra.mxu1 %v6272_v18 }
  0x45   : > { %5506 = vmatpush3.bf16.msra.mxu0 %v6278_v21 }
  0x46   : > { %5507 = vmatprep.subr.bf16.mxu0 %v6279_v24 }
  0x47   : > { %5536 = vmatmul.mubr.bf16.vlgmr.msra.gmra.mrb[0].mxu1 %v6904_v25 }
  0x48   : > { %5539 = vmatprep.mubr.bf16.mxu1 %v6906_v26 }
  0x49   : > { %5508 = vmatpush3.bf16.msra.mxu0 %v6279_v24 }
  0x4a   : > { %5509 = vmatprep.subr.bf16.mxu0 %v6280_v29 }
  0x4d   : > { %5510 = vmatpush3.bf16.msra.mxu0 %v6280_v29 }
  0x4f   : > { %5540 = vmatmul.mubr.bf16.gmra.mrb[4].mxu1 %v6921_v36 }
  0x50   : > { %5543 = vmatprep.mubr.bf16.mxu1 %v6923_v37  ;;  %5512 = vmatmul.mubr.bf16.vlgmr.msra.gmra.mrb[0].mxu0 %v6927_v40 }
  0x51   : > { %5515 = vmatprep.mubr.bf16.mxu0 %v6932_v43 }
  0x57   : > { %5544 = vmatmul.mubr.bf16.gmra.mrb[8].mxu1 %v6938_v46 }
  0x58   : > { %5547 = vmatprep.mubr.bf16.mxu1 %v6941_v47  ;;  %5516 = vmatmul.mubr.bf16.gmra.mrb[4].mxu0 %v6945_v50 }
  0x59   : > { %5567 = vmatprep.mubr.bf16.mxu0 %v6853_v6 }
  0x5f   : > { %5548 = vmatmul.mubr.bf16.gmra.mrb[12].mxu1 %v6950_v51 }
 0x11a   : > { %v5537_v52 = vpop.f32.mrb[0].mxu1 }
 0x11b   : > { %v947_v54 = vpop.f32.mrb[1].mxu1  ;;  %v956_v56 = vadd.f32 %v5537_v52, %v6957_v53 }
 0x11c   : > { %v5538_v55 = vpop.f32.mrb[2].mxu1  ;;  %v948_v59 = vadd.f32 %v6957_v53, %v947_v54 }
 0x11d   : > { %v959_v57 = vadd.f32 %v5538_v55, %v6957_v53  ;;  %v950_v58 = vpop.f32.mrb[3].mxu1 }
 0x11e   : > { %v951_v60 = vadd.f32 %v6957_v53, %v950_v58 }
 0x11f   : > { %v1183_v61 = vpack.c.bf16 %v959_v57, %v956_v56 }
 0x120   : > { %v1182_v62 = vpack.c.bf16 %v951_v60, %v948_v59 }
 0x121   : > { %v1207_v21 = vsel %vm1190_vm0, %v1183_v61, 0 }
 0x122   : > { %6159 = vmatprep.subr.msk.bf16.mxu1 %vm1190_vm0, %v1182_v62  ;;  %v1204_v63 = vsel %vm1190_vm0, %v1182_v62, 0  ;;  %v5541_v0 = vpop.f32.mrb[4].mxu1 }
 0x123   : > { %5584 = vmatpush3.bf16.xpose.msra.mxu1 %v1204_v63  ;;  %v972_v1 = vadd.f32 %v5541_v0, %v6957_v53  ;;  %v963_v2 = vpop.f32.mrb[5].mxu1  ;;  %v5513_v9 = vpop.f32.mrb[0].mxu0 }
 0x124   : > { %6160 = vmatprep.subr.msk.bf16.mxu1 %vm1190_vm0, %v1183_v61  ;;  %v964_v4 = vadd.f32 %v6957_v53, %v963_v2  ;;  %v5542_v5 = vpop.f32.mrb[6].mxu1  ;;  %v6973_v11 = vadd.f32 %v5513_v9, %v4832_v3  ;;  %v811_v12 = vpop.f32.mrb[1].mxu0  ;;  %v6283_v9 = vld [vmem:[%s8049_s7 + $0x10] sm:$0xff]  }
 0x125   : > { %v975_v7 = vadd.f32 %v5542_v5, %v6957_v53  ;;  %v966_v8 = vpop.f32.mrb[7].mxu1  ;;  %v812_v14 = vadd.f32 %v4832_v3, %v811_v12  ;;  %v5514_v15 = vpop.f32.mrb[2].mxu0  ;;  %v6286_v12 = vld [vmem:[%s8049_s7 + $0x28] sm:$0xff]  }
 0x126   : > { %v967_v10 = vadd.f32 %v6957_v53, %v966_v8  ;;  %v823_v18 = vadd.f32 %v5514_v15, %v4832_v3  ;;  %v814_v19 = vpop.f32.mrb[3].mxu0  ;;  %v6282_v8 = vld [vmem:[%s8049_s7 + $0x8] sm:$0xff]   ;;  %v1301_v15 = vlaneseq }
 0x127   : > { %v1185_v13 = vpack.c.bf16 %v975_v7, %v972_v1  ;;  %v815_v20 = vadd.f32 %v4832_v3, %v814_v19  ;;  %v6281_v7 = vld [vmem:[%s8049_s7] sm:$0xff]  }
 0x128   : > { %v1184_v16 = vpack.c.bf16 %v967_v10, %v964_v4  ;;  %v1179_v23 = vpack.c.bf16 %v823_v18, %v6973_v11  ;;  %5551 = vmatprep.subr.bf16.mxu0 %v6281_v7  ;;  %v6284_v10 = vld [vmem:[%s8049_s7 + $0x18] sm:$0xff]   ;;  %v6285_v11 = vld [vmem:[%s8049_s7 + $0x20] sm:$0xff]   ;;  %v1302_v18 = vshrl.u32 %v1301_v15, 7 }
 0x129   : > { %v1178_v28 = vpack.c.bf16 %v815_v20, %v812_v14  ;;  %v1213_v2 = vsel %vm1190_vm0, %v1185_v13, 0  ;;  %5552 = vmatpush3.bf16.msra.mxu0 %v6281_v7  ;;  %v6288_v14 = vld [vmem:[%s8049_s7 + $0x38] sm:$0xff]   ;;  %v6649_v20 = vmov 0.0  }
 0x12a   : > { %v5545_v22 = vpop.f32.mrb[8].mxu1  ;;  %v1210_v52 = vsel %vm1190_vm0, %v1184_v16, 0  ;;  %5553 = vmatprep.subr.bf16.mxu0 %v6282_v8  ;;  %v1303_v19 = vsub.s32 0, %v1302_v18 }
 0x12b   : > { %5586 = vmatpush3.bf16.xpose.msra.mxu1 %v1207_v21  ;;  %v988_v24 = vadd.f32 %v5545_v22, %v6957_v53  ;;  %v979_v27 = vpop.f32.mrb[9].mxu1  ;;  %5599 = vmatprep.mubr.msk.bf16.mxu1 %vm1190_vm0, %v1178_v28  ;;  %v5517_v33 = vpop.f32.mrb[4].mxu0 }
 0x12c   : > { %6161 = vmatprep.subr.msk.bf16.mxu1 %vm1190_vm0, %v1184_v16  ;;  %v980_v29 = vadd.f32 %v6957_v53, %v979_v27  ;;  %v5546_v30 = vpop.f32.mrb[10].mxu1  ;;  %v836_v35 = vadd.f32 %v5517_v33, %v4832_v3  ;;  %v827_v38 = vpop.f32.mrb[5].mxu0  ;;  %v691_v16 = vld [vmem:[%s664_s19] sm:$0x1] }
 0x12d   : > { %v991_v31 = vadd.f32 %v5546_v30, %v6957_v53  ;;  %v982_v32 = vpop.f32.mrb[11].mxu1  ;;  %v828_v41 = vadd.f32 %v4832_v3, %v827_v38  ;;  %v5518_v42 = vpop.f32.mrb[6].mxu0  ;;  %5554 = vmatpush3.bf16.msra.mxu0 %v6282_v8  ;;  %vm704_vm1 = vcmp.eq.f32.partialorder %v691_v16, 0.0 }
 0x12e   : > { %v983_v34 = vadd.f32 %v6957_v53, %v982_v32  ;;  %v839_v45 = vadd.f32 %v5518_v42, %v4832_v3  ;;  %v830_v48 = vpop.f32.mrb[7].mxu0  ;;  %5555 = vmatprep.subr.bf16.mxu0 %v6283_v9  ;;  %v705_v21 = vsel %vm704_vm1, -1e+09, %v6649_v20 }
 0x12f   : > { %v1187_v39 = vpack.c.bf16 %v991_v31, %v988_v24  ;;  %v831_v49 = vadd.f32 %v4832_v3, %v830_v48  ;;  %v7037_v22 = vrot.slane %v705_v21, %v1303_v19 }
 0x130   : > { %v1186_v44 = vpack.c.bf16 %v983_v34, %v980_v29  ;;  %v1181_v55 = vpack.c.bf16 %v839_v45, %v836_v35 }
 0x131   : > { %v1180_v58 = vpack.c.bf16 %v831_v49, %v828_v41  ;;  %v1219_v4 = vsel %vm1190_vm0, %v1187_v39, 0  ;;  %5556 = vmatpush3.bf16.msra.mxu0 %v6283_v9 }
 0x132   : > { %v5549_v54 = vpop.f32.mrb[12].mxu1  ;;  %v1216_v3 = vsel %vm1190_vm0, %v1186_v44, 0  ;;  %5557 = vmatprep.subr.bf16.mxu0 %v6284_v10 }
 0x133   : > { %5588 = vmatpush3.bf16.xpose.msra.mxu1 %v1210_v52  ;;  %v1004_v56 = vadd.f32 %v5549_v54, %v6957_v53  ;;  %v995_v57 = vpop.f32.mrb[13].mxu1 }
 0x134   : > { %6162 = vmatprep.subr.msk.bf16.mxu1 %vm1190_vm0, %v1185_v13  ;;  %v996_v59 = vadd.f32 %v6957_v53, %v995_v57  ;;  %v5550_v60 = vpop.f32.mrb[14].mxu1  ;;  %v6287_v13 = vld [vmem:[%s8049_s7 + $0x30] sm:$0xff]  }
 0x135   : > { %v1007_v61 = vadd.f32 %v5550_v60, %v6957_v53  ;;  %v998_v62 = vpop.f32.mrb[15].mxu1  ;;  %5558 = vmatpush3.bf16.msra.mxu0 %v6284_v10  ;;  %v6291_v60 = vld [vmem:[%s8047_s5 + $0x50] sm:$0xff]  }
 0x136   : > { %v999_v63 = vadd.f32 %v6957_v53, %v998_v62  ;;  %5559 = vmatprep.subr.bf16.mxu0 %v6285_v11  ;;  %v6293_v62 = vld [vmem:[%s8047_s5 + $0x60] sm:$0xff]  }
 0x137   : > { %v1189_v0 = vpack.c.bf16 %v1007_v61, %v1004_v56  ;;  %v6292_v61 = vld [vmem:[%s8047_s5 + $0x58] sm:$0xff]  }
 0x138   : > { %v1188_v1 = vpack.c.bf16 %v999_v63, %v996_v59  ;;  %v6290_v59 = vld [vmem:[%s8047_s5 + $0x48] sm:$0xff]  }
 0x139   : > { %v1225_v53 = vsel %vm1190_vm0, %v1189_v0, 0  ;;  %5560 = vmatpush3.bf16.msra.mxu0 %v6285_v11  ;;  %v6294_v63 = vld [vmem:[%s8047_s5 + $0x68] sm:$0xff]  }
 0x13a   : > { %v1222_v5 = vsel %vm1190_vm0, %v1188_v1, 0  ;;  %5561 = vmatprep.subr.bf16.mxu0 %v6286_v12 }
 0x13b   : > { %5590 = vmatpush3.bf16.xpose.msra.mxu1 %v1213_v2  ;;  %v7105_v2 = vld [vmem:[%s8050_s8] ss:$0 sm:$0xff] }
 0x13c   : > { %6163 = vmatprep.subr.msk.bf16.mxu1 %vm1190_vm0, %v1186_v44 }
 0x13d   : > { %5562 = vmatpush3.bf16.msra.mxu0 %v6286_v12 }
 0x13e   : > { %5563 = vmatprep.subr.bf16.mxu0 %v6287_v13 }
 0x141   : > { %5564 = vmatpush3.bf16.msra.mxu0 %v6287_v13 }
 0x142   : > { %5565 = vmatprep.subr.bf16.mxu0 %v6288_v14 }
 0x143   : > { %5592 = vmatpush3.bf16.xpose.msra.mxu1 %v1216_v3 }
 0x144   : > { %6164 = vmatprep.subr.msk.bf16.mxu1 %vm1190_vm0, %v1187_v39 }
 0x145   : > { %5566 = vmatpush3.bf16.msra.mxu0 %v6288_v14 }
 0x148   : > { %5568 = vmatmul.mubr.bf16.vlgmr.msra.gmra.mrb[8].mxu0 %v6904_v25 }
 0x149   : > { %5571 = vmatprep.mubr.bf16.mxu0 %v6906_v26 }
 0x14b   : > { %5594 = vmatpush3.bf16.xpose.msra.mxu1 %v1219_v4 }
 0x14c   : > { %6165 = vmatprep.subr.msk.bf16.mxu1 %vm1190_vm0, %v1188_v1  ;;  %v6296_v1 = vld [vmem:[%s8047_s5 + $0x78] sm:$0xff]  }
 0x150   : > { %5572 = vmatmul.mubr.bf16.gmra.mrb[12].mxu0 %v6921_v36 }
 0x151   : > { %5575 = vmatprep.mubr.bf16.mxu0 %v6923_v37 }
 0x153   : > { %5596 = vmatpush3.bf16.xpose.msra.mxu1 %v1222_v5 }
 0x154   : > { %6166 = vmatprep.subr.msk.bf16.mxu1 %vm1190_vm0, %v1189_v0  ;;  %v6295_v0 = vld [vmem:[%s8047_s5 + $0x70] sm:$0xff]  }
 0x158   : > { %5576 = vmatmul.mubr.bf16.gmra.mrb[16].mxu0 %v6938_v46 }
 0x159   : > { %5579 = vmatprep.mubr.bf16.mxu0 %v6941_v47 }
 0x15b   : > { %5598 = vmatpush3.bf16.xpose.msra.mxu1 %v1225_v53 }
 0x160   : > { %5580 = vmatmul.mubr.bf16.gmra.mrb[20].mxu0 %v6950_v51 }
 0x162   : > { %5600 = vmatmul.mubr.msk.bf16.vlgmr.msra.gmra.mrb[16].mxu1 %vm1190_vm0, %v1179_v23 }
 0x163   : > { %5603 = vmatprep.mubr.msk.bf16.mxu1 %vm1190_vm0, %v1180_v58  ;;  %v6289_v58 = vld [vmem:[%s8047_s5 + $0x40] sm:$0xff]  }
 0x164   : > { %5655 = vmatprep.subr.bf16.mxu1 %v6289_v58 }
 0x165   : > { %5656 = vmatpush3.bf16.msra.mxu1 %v6289_v58 }
 0x166   : > { %5657 = vmatprep.subr.bf16.mxu1 %v6290_v59 }
 0x169   : > { %5658 = vmatpush3.bf16.msra.mxu1 %v6290_v59 }
 0x16a   : > { %5604 = vmatmul.mubr.msk.bf16.gmra.mrb[20].mxu1 %vm1190_vm0, %v1181_v55  ;;  %5659 = vmatprep.subr.bf16.mxu1 %v6291_v60 }
 0x16b   : > { %5671 = vmatprep.mubr.bf16.mxu1 %v6853_v6 }
 0x16d   : > { %5660 = vmatpush3.bf16.msra.mxu1 %v6291_v60 }
 0x16e   : > { %5661 = vmatprep.subr.bf16.mxu1 %v6292_v61 }
 0x171   : > { %5662 = vmatpush3.bf16.msra.mxu1 %v6292_v61 }
 0x172   : > { %5663 = vmatprep.subr.bf16.mxu1 %v6293_v62 }
 0x175   : > { %5664 = vmatpush3.bf16.msra.mxu1 %v6293_v62 }
 0x176   : > { %5665 = vmatprep.subr.bf16.mxu1 %v6294_v63 }
 0x179   : > { %5666 = vmatpush3.bf16.msra.mxu1 %v6294_v63 }
 0x17a   : > { %5667 = vmatprep.subr.bf16.mxu1 %v6295_v0 }
 0x17d   : > { %5668 = vmatpush3.bf16.msra.mxu1 %v6295_v0 }
 0x17e   : > { %5669 = vmatprep.subr.bf16.mxu1 %v6296_v1 }
 0x181   : > { %5670 = vmatpush3.bf16.msra.mxu1 %v6296_v1 }
 0x184   : > { %5672 = vmatmul.mubr.bf16.vlgmr.msra.gmra.mrb[24].mxu1 %v6904_v25 }
 0x185   : > { %5675 = vmatprep.mubr.bf16.mxu1 %v6906_v26 }
 0x18c   : > { %5676 = vmatmul.mubr.bf16.gmra.mrb[28].mxu1 %v6921_v36 }
 0x18d   : > { %5679 = vmatprep.mubr.bf16.mxu1 %v6923_v37 }
 0x194   : > { %5680 = vmatmul.mubr.bf16.gmra.mrb[32].mxu1 %v6938_v46 }
 0x195   : > { %5683 = vmatprep.mubr.bf16.mxu1 %v6941_v47 }
 0x19c   : > { %5684 = vmatmul.mubr.bf16.gmra.mrb[36].mxu1 %v6950_v51 }
 0x21b   : > { %v5569_v3 = vpop.f32.mrb[8].mxu0 }
 0x21c   : > { %v1124_v4 = vadd.f32 %v5569_v3, %v7105_v2  ;;  %v1115_v5 = vpop.f32.mrb[9].mxu0 }
 0x21d   : > { %v1116_v53 = vadd.f32 %v7105_v2, %v1115_v5  ;;  %v5570_v7 = vpop.f32.mrb[10].mxu0 }
 0x21e   : > { %v1127_v8 = vadd.f32 %v5570_v7, %v7105_v2  ;;  %v1118_v9 = vpop.f32.mrb[11].mxu0 }
 0x21f   : > { %v1119_v10 = vadd.f32 %v7105_v2, %v1118_v9 }
 0x220   : > { %v1391_v11 = vpack.c.bf16 %v1127_v8, %v1124_v4 }
 0x221   : > { %v1390_v12 = vpack.c.bf16 %v1119_v10, %v1116_v53 }
 0x223   : > { %v5573_v13 = vpop.f32.mrb[12].mxu0  ;;  %5607 = vmatprep.subr.bf16.mxu0 %v1390_v12 }
 0x224   : > { %v1140_v15 = vadd.f32 %v5573_v13, %v7105_v2  ;;  %v1131_v16 = vpop.f32.mrb[13].mxu0  ;;  %5608 = vmatpush3.bf16.msra.mxu0 %v1390_v12 }
 0x225   : > { %v1132_v20 = vadd.f32 %v7105_v2, %v1131_v16  ;;  %v5574_v21 = vpop.f32.mrb[14].mxu0  ;;  %5609 = vmatprep.subr.bf16.mxu0 %v1391_v11 }
 0x228   : > { %5610 = vmatpush3.bf16.msra.mxu0 %v1391_v11 }
 0x235   : > { %v5601_v23 = vpop.f32.mrb[16].mxu1 }
 0x236   : > { %v1294_v24 = vmul.f32 0.17677669, %v5601_v23  ;;  %v1261_v27 = vpop.f32.mrb[17].mxu1 }
 0x237   : > { %v1292_v28 = vmul.f32 0.17677669, %v1261_v27  ;;  %v5602_v29 = vpop.f32.mrb[18].mxu1  ;;  %v1134_v27 = vpop.f32.mrb[15].mxu0 }
 0x238   : > { %v1295_v30 = vmul.f32 0.17677669, %v5602_v29  ;;  %v1264_v31 = vpop.f32.mrb[19].mxu1  ;;  %v7040_v32 = vadd.f32 %v7037_v22, %v1294_v24  ;;  %v1143_v24 = vadd.f32 %v5574_v21, %v7105_v2 }
 0x239   : > { %v1293_v33 = vmul.f32 0.17677669, %v1264_v31  ;;  %v7043_v34 = vadd.f32 %v7037_v22, %v1292_v28  ;;  %v1135_v28 = vadd.f32 %v7105_v2, %v1134_v27 }
 0x23a   : > { %1318 = vmax.xlane.f32.xlu1 %v7040_v32  ;;  %v7048_v35 = vadd.f32 %v7037_v22, %v1295_v30  ;;  %v1393_v31 = vpack.c.bf16 %v1143_v24, %v1140_v15 }
 0x23b   : > { %1314 = vmax.xlane.f32.xlu0 %v7043_v34  ;;  %v7051_v39 = vadd.f32 %v7037_v22, %v1293_v33 }
 0x23d   : > { %v5605_v38 = vpop.f32.mrb[20].mxu1 }
 0x23e   : > { %1320 = vmax.xlane.f32.xlu1 %v7048_v35  ;;  %v1277_v41 = vpop.f32.mrb[21].mxu1  ;;  %v1298_v42 = vmul.f32 0.17677669, %v5605_v38 }
 0x23f   : > { %v1296_v44 = vmul.f32 0.17677669, %v1277_v41  ;;  %1316 = vmax.xlane.f32.xlu0 %v7051_v39  ;;  %v5606_v45 = vpop.f32.mrb[22].mxu1  ;;  %v1392_v41 = vpack.c.bf16 %v1135_v28, %v1132_v20 }
 0x240   : > { %v1280_v48 = vpop.f32.mrb[23].mxu1  ;;  %v1299_v49 = vmul.f32 0.17677669, %v5606_v45  ;;  %v7063_v56 = vadd.f32 %v7037_v22, %v1298_v42 }
 0x241   : > { %v1297_v52 = vmul.f32 0.17677669, %v1280_v48  ;;  %v7056_v54 = vadd.f32 %v7037_v22, %v1296_v44  ;;  %v5577_v44 = vpop.f32.mrb[16].mxu0  ;;  %5611 = vmatprep.subr.bf16.mxu0 %v1392_v41 }
 0x242   : > { %v7067_v57 = vadd.f32 %v7037_v22, %v1299_v49  ;;  %v1156_v45 = vadd.f32 %v5577_v44, %v7105_v2  ;;  %v1147_v48 = vpop.f32.mrb[17].mxu0  ;;  %5612 = vmatpush3.bf16.msra.mxu0 %v1392_v41 }
 0x243   : > { %1322 = vmax.xlane.f32.xlu0 %v7056_v54  ;;  %v7060_v55 = vadd.f32 %v7037_v22, %v1297_v52  ;;  %v1148_v58 = vadd.f32 %v7105_v2, %v1147_v48  ;;  %v5578_v59 = vpop.f32.mrb[18].mxu0  ;;  %5613 = vmatprep.subr.bf16.mxu0 %v1393_v31 }
 0x244   : > { %v1159_v60 = vadd.f32 %v5578_v59, %v7105_v2 }
 0x245   : > { %1324 = vmax.xlane.f32.xlu1 %v7060_v55 }
 0x246   : > { %v1395_v1 = vpack.c.bf16 %v1159_v60, %v1156_v45  ;;  %5614 = vmatpush3.bf16.msra.mxu0 %v1393_v31 }
 0x247   : > { %1326 = vmax.xlane.f32.xlu0 %v7063_v56 }
 0x249   : > { %1328 = vmax.xlane.f32.xlu1 %v7067_v57 }
 0x257   : > { %v5673_v31 = vpop.f32.mrb[24].mxu1 }
 0x2c7   : > { %v1319_v14 = vpop.xlane.xlu1 %1318 }
 0x2c8   : > { %v1332_v18 = vsub.f32 %v7040_v32, %v1319_v14  ;;  %v1315_v19 = vpop.xlane.xlu0 %1314 }
 0x2c9   : > { %v1330_v23 = vsub.f32 %v7043_v34, %v1315_v19 }
 0x2ca   : > { %v1342_v33 = vmul.f32 1.442695, %v1332_v18 }
 0x2cb   : > { %v1338_v29 = vmul.f32 1.442695, %v1330_v23  ;;  %v1321_v30 = vpop.xlane.xlu1 %1320 }
 0x2cc   : > { %v1333_v38 = vsub.f32 %v7048_v35, %v1321_v30  ;;  %v1317_v32 = vpop.xlane.xlu0 %1316  ;;  %v7164_v30 = vld [vmem:[%s8048_s6 + $0x1] ss:$0 sm:$0xff] }
 0x2cd   : > { %6385 = vpow2.f32 %v1338_v29  ;;  %v1331_v42 = vsub.f32 %v7051_v39, %v1317_v32  ;;  %v1150_v39 = vpop.f32.mrb[19].mxu0  ;;  %v7158_v29 = vld [vmem:[%s8099_s27 + $0x40] sm:$0xff]  }
 0x2ce   : > { %6387 = vpow2.f32 %v1342_v33  ;;  %v1344_v49 = vmul.f32 1.442695, %v1333_v38  ;;  %v1151_v62 = vadd.f32 %v7105_v2, %v1150_v39  ;;  %v1716_v33 = vpop.f32.mrb[25].mxu1 }
 0x2cf   : > { %v1340_v34 = vmul.f32 1.442695, %v1331_v42  ;;  %v1717_v38 = vadd.f32 %v7164_v30, %v1716_v33  ;;  %v5674_v32 = vpop.f32.mrb[26].mxu1 }
 0x2d0   : > { %v1323_v52 = vpop.xlane.xlu0 %1322  ;;  %v1394_v4 = vpack.c.bf16 %v1151_v62, %v1148_v58  ;;  %v1728_v41 = vadd.f32 %v5674_v32, %v7164_v30  ;;  %v1719_v42 = vpop.f32.mrb[27].mxu1 }
 0x2d1   : > { %6389 = vpow2.f32 %v1340_v34  ;;  %v1334_v35 = vsub.f32 %v7056_v54, %v1323_v52  ;;  %v5581_v54 = vpop.f32.mrb[20].mxu0  ;;  %v1720_v44 = vadd.f32 %v7164_v30, %v1719_v42  ;;  %v5677_v52 = vpop.f32.mrb[28].mxu1 }
 0x2d2   : > { %v1325_v61 = vpop.xlane.xlu1 %1324  ;;  %6391 = vpow2.f32 %v1344_v49  ;;  %5615 = vmatprep.subr.bf16.mxu0 %v1394_v4  ;;  %v1163_v11 = vpop.f32.mrb[21].mxu0  ;;  %v1172_v16 = vadd.f32 %v5581_v54, %v7105_v2  ;;  %v1741_v58 = vadd.f32 %v5677_v52, %v7164_v30 }
 0x2d3   : > { %v1346_v63 = vmul.f32 1.442695, %v1334_v35  ;;  %v1335_v0 = vsub.f32 %v7060_v55, %v1325_v61  ;;  %5616 = vmatpush3.bf16.msra.mxu0 %v1394_v4  ;;  %v1164_v18 = vadd.f32 %v7105_v2, %v1163_v11  ;;  %v5582_v19 = vpop.f32.mrb[22].mxu0  ;;  %v1953_v45 = vpack.c.bf16 %v1720_v44, %v1717_v38  ;;  %v1732_v59 = vpop.f32.mrb[29].mxu1 }
 0x2d4   : > { %v1327_v3 = vpop.xlane.xlu0 %1326  ;;  %5617 = vmatprep.subr.bf16.mxu0 %v1395_v1  ;;  %v1175_v21 = vadd.f32 %v5582_v19, %v7105_v2  ;;  %v1166_v23 = vpop.f32.mrb[23].mxu0  ;;  %v1733_v35 = vadd.f32 %v7164_v30, %v1732_v59 }
 0x2d5   : > { %6393 = vpow2.f32 %v1346_v63  ;;  %v1348_v5 = vmul.f32 1.442695, %v1335_v0  ;;  %v1336_v53 = vsub.f32 %v7063_v56, %v1327_v3  ;;  %v1167_v24 = vadd.f32 %v7105_v2, %v1166_v23  ;;  %6167 = vmatprep.subr.msk.bf16.mxu1 %vm1190_vm0, %v1953_v45  ;;  %v5678_v60 = vpop.f32.mrb[30].mxu1 }
 0x2d6   : > { %v1329_v7 = vpop.xlane.xlu1 %1328  ;;  %v1397_v27 = vpack.c.bf16 %v1175_v21, %v1172_v16  ;;  %v1725_v2 = vadd.f32 %v5673_v31, %v7164_v30  ;;  %v1974_v49 = vsel %vm1190_vm0, %v1953_v45, 0  ;;  %v1744_v39 = vadd.f32 %v5678_v60, %v7164_v30  ;;  %v1735_v61 = vpop.f32.mrb[31].mxu1 }
 0x2d7   : > { %v7126_v8 = vpop.eup %6385  ;;  %v1350_v9 = vmul.f32 1.442695, %v1336_v53  ;;  %v1337_v10 = vsub.f32 %v7067_v57, %v1329_v7  ;;  %6395 = vpow2.f32 %v1348_v5  ;;  %5618 = vmatpush3.bf16.msra.mxu0 %v1395_v1  ;;  %v1396_v28 = vpack.c.bf16 %v1167_v24, %v1164_v18  ;;  %5720 = vmatpush3.bf16.xpose.msra.mxu1 %v1974_v49  ;;  %v5681_v7 = vpop.f32.mrb[32].mxu1 }
 0x2d8   : > { %1354 = vadd.xlane.f32.xlu0 %v7126_v8  ;;  %v7130_v12 = vpop.eup %6387  ;;  %v1954_v34 = vpack.c.bf16 %v1728_v41, %v1725_v2  ;;  %v1736_v0 = vadd.f32 %v7164_v30, %v1735_v61  ;;  %v1956_v1 = vpack.c.bf16 %v1744_v39, %v1741_v58  ;;  %v1757_v54 = vadd.f32 %v5681_v7, %v7164_v30  ;;  %v6303_v61 = vld [vmem:[%s8099_s27 + $0x70] sm:$0xff]  }
 0x2d9   : > { %6397 = vpow2.f32 %v1350_v9  ;;  %v1352_v55 = vmul.f32 1.442695, %v1337_v10  ;;  %5619 = vmatprep.subr.bf16.mxu0 %v1396_v28  ;;  %v1748_v9 = vpop.f32.mrb[33].mxu1 }
 0x2da   : > { %6168 = vmatprep.subr.msk.bf16.mxu1 %vm1190_vm0, %v1954_v34  ;;  %v1977_v3 = vsel %vm1190_vm0, %v1954_v34, 0  ;;  %v1955_v4 = vpack.c.bf16 %v1736_v0, %v1733_v35  ;;  %v5682_v10 = vpop.f32.mrb[34].mxu1  ;;  %v1749_v16 = vadd.f32 %v7164_v30, %v1748_v9  ;;  %v6299_v35 = vld [vmem:[%s8099_s27 + $0x50] sm:$0xff]  }
 0x2db   : > { %v7132_v13 = vpop.eup %6389  ;;  %6399 = vpow2.f32 %v1352_v55  ;;  %5620 = vmatpush3.bf16.msra.mxu0 %v1396_v28  ;;  %v1760_v18 = vadd.f32 %v5682_v10, %v7164_v30  ;;  %v1751_v19 = vpop.f32.mrb[35].mxu1 }
 0x2dc   : > { %1358 = vadd.xlane.f32.xlu0 %v7130_v12  ;;  %1356 = vadd.xlane.f32.xlu1 %v7132_v13  ;;  %v7136_v56 = vpop.eup %6391  ;;  %v1980_v23 = vsel %vm1190_vm0, %v1955_v4, 0 }
 0x2dd   : > { %5621 = vmatprep.subr.bf16.mxu0 %v1397_v27  ;;  %v7183_v24 = vpack.c.bf16 %v1760_v18, %v1757_v54 }
 0x2df   : > { %v7138_v57 = vpop.eup %6393  ;;  %5622 = vmatpush3.bf16.msra.mxu0 %v1397_v27  ;;  %5722 = vmatpush3.bf16.xpose.msra.mxu1 %v1977_v3  ;;  %v1752_v27 = vadd.f32 %v7164_v30, %v1751_v19  ;;  %v1989_v0 = vsel %vm1190_vm0, %v7183_v24, 0 }
 0x2e0   : > { %1362 = vadd.xlane.f32.xlu0 %v7138_v57  ;;  %1360 = vadd.xlane.f32.xlu1 %v7136_v56 }
 0x2e1   : > { %v7142_v14 = vpop.eup %6395  ;;  %5631 = vmatprep.subr.bf16.mxu0 %v7158_v29  ;;  %6169 = vmatprep.subr.msk.bf16.mxu1 %vm1190_vm0, %v1955_v4  ;;  %v1957_v2 = vpack.c.bf16 %v1752_v27, %v1749_v16 }
 0x2e3   : > { %v7144_v15 = vpop.eup %6397 }
 0x2e4   : > { %1366 = vadd.xlane.f32.xlu0 %v7144_v15  ;;  %1364 = vadd.xlane.f32.xlu1 %v7142_v14 }
 0x2e5   : > { %v7150_v20 = vpop.eup %6399 }
 0x2e7   : > { %5724 = vmatpush3.bf16.xpose.msra.mxu1 %v1980_v23 }
 0x2e8   : > { %1368 = vadd.xlane.f32.xlu1 %v7150_v20  ;;  %6170 = vmatprep.subr.msk.bf16.mxu1 %vm1190_vm0, %v1956_v1 }
 0x365   : > { %v1355_v48 = vpop.xlane.xlu0 %1354 }
 0x366   : > { %6401 = vrcp.f32 %v1355_v48  ;;  %v1983_v48 = vsel %vm1190_vm0, %v1956_v1, 0 }
 0x367   : > { %5726 = vmatpush3.bf16.xpose.msra.mxu1 %v1983_v48 }
 0x368   : > { %6171 = vmatprep.subr.msk.bf16.mxu1 %vm1190_vm0, %v1957_v2 }
 0x369   : > { %v1359_v62 = vpop.xlane.xlu0 %1358  ;;  %v1357_v63 = vpop.xlane.xlu1 %1356 }
 0x36a   : > { %6403 = vrcp.f32 %v1357_v63  ;;  %v5685_v63 = vpop.f32.mrb[36].mxu1 }
 0x36b   : > { %6405 = vrcp.f32 %v1359_v62  ;;  %v6304_v62 = vld [vmem:[%s8099_s27 + $0x78] sm:$0xff]   ;;  %v1773_v1 = vadd.f32 %v5685_v63, %v7164_v30  ;;  %v1764_v3 = vpop.f32.mrb[37].mxu1  ;;  %v6310_v63 = vld [vmem:[%s8049_s7 + $0x68] sm:$0xff]  }
 0x36c   : > { %v5686_v4 = vpop.f32.mrb[38].mxu1 }
 0x36d   : > { %v1363_v5 = vpop.xlane.xlu0 %1362  ;;  %v1361_v53 = vpop.xlane.xlu1 %1360 }
 0x36e   : > { %6407 = vrcp.f32 %v1361_v53  ;;  %v1776_v53 = vadd.f32 %v5686_v4, %v7164_v30  ;;  %v1767_v7 = vpop.f32.mrb[39].mxu1 }
 0x36f   : > { %6409 = vrcp.f32 %v1363_v5  ;;  %v1765_v5 = vadd.f32 %v7164_v30, %v1764_v3  ;;  %v1768_v9 = vadd.f32 %v7164_v30, %v1767_v7 }
 0x370   : > { %v6402_v21 = vpop.eup %6401  ;;  %v1960_v54 = vpack.c.bf16 %v1776_v53, %v1773_v1  ;;  %v6312_v1 = vld [vmem:[%s8049_s7 + $0x78] sm:$0xff]  }
 0x371   : > { %v1367_v11 = vpop.xlane.xlu0 %1366  ;;  %v1365_v55 = vpop.xlane.xlu1 %1364  ;;  %v1378_v33 = vmul.f32 %v6402_v21, %v7126_v8  ;;  %v6298_v8 = vld [vmem:[%s8099_s27 + $0x48] sm:$0xff]   ;;  %v1959_v10 = vpack.c.bf16 %v1768_v9, %v1765_v5 }
 0x372   : > { %6411 = vrcp.f32 %v1365_v55  ;;  %v1995_v55 = vsel %vm1190_vm0, %v1960_v54, 0 }
 0x373   : > { %6413 = vrcp.f32 %v1367_v11  ;;  %v1992_v11 = vsel %vm1190_vm0, %v1959_v10, 0 }
 0x374   : > { %v6404_v28 = vpop.eup %6403 }
 0x375   : > { %v1369_v31 = vpop.xlane.xlu1 %1368  ;;  %v1379_v38 = vmul.f32 %v6404_v28, %v7132_v13  ;;  %v6406_v32 = vpop.eup %6405 }
 0x376   : > { %6415 = vrcp.f32 %v1369_v31  ;;  %v1380_v44 = vmul.f32 %v6406_v32, %v7130_v12  ;;  %v4880_v32 = vld [vmem:[%s8046_s4 + $0x1] ss:$0 sm:$0xff] }
 0x377   : > { %v1386_v41 = vpack.c.bf16 %v1379_v38, %v1378_v33 }
 0x378   : > { %v6408_v42 = vpop.eup %6407 }
 0x379   : > { %v1381_v34 = vmul.f32 %v6408_v42, %v7136_v56  ;;  %5623 = vmatprep.mubr.bf16.mxu0 %v1386_v41  ;;  %v6410_v45 = vpop.eup %6409 }
 0x37a   : > { %v1382_v58 = vmul.f32 %v6410_v45, %v7138_v57 }
 0x37b   : > { %v1387_v49 = vpack.c.bf16 %v1381_v34, %v1380_v44 }
 0x37c   : > { %v6412_v13 = vpop.eup %6411 }
 0x37d   : > { %v6414_v52 = vpop.eup %6413  ;;  %5624 = vmatmul.mubr.bf16.vlgmr.msra.gmra.mrb[24].mxu0 %v1387_v49  ;;  %v1383_v59 = vmul.f32 %v6412_v13, %v7142_v14  ;;  %v1986_v14 = vsel %vm1190_vm0, %v1957_v2, 0 }
 0x37e   : > { %5632 = vmatpush3.bf16.msra.mxu0 %v7158_v29  ;;  %v1384_v60 = vmul.f32 %v6414_v52, %v7144_v15  ;;  %v6300_v29 = vld [vmem:[%s8099_s27 + $0x58] sm:$0xff]   ;;  %5728 = vmatpush3.bf16.xpose.msra.mxu1 %v1986_v14  ;;  %v6301_v15 = vld [vmem:[%s8099_s27 + $0x60] sm:$0xff]  }
 0x37f   : > { %5633 = vmatprep.subr.bf16.mxu0 %v6298_v8  ;;  %v1388_v56 = vpack.c.bf16 %v1383_v59, %v1382_v58  ;;  %6172 = vmatprep.subr.msk.bf16.mxu1 %vm1190_vm0, %v7183_v24 }
 0x380   : > { %v6416_v12 = vpop.eup %6415 }
 0x381   : > { %v1385_v39 = vmul.f32 %v6416_v12, %v7150_v20  ;;  %5627 = vmatprep.mubr.bf16.mxu0 %v1388_v56  ;;  %v6302_v20 = vld [vmem:[%s8099_s27 + $0x68] sm:$0xff]  }
 0x382   : > { %5634 = vmatpush3.bf16.msra.mxu0 %v6298_v8 }
 0x383   : > { %v1389_v57 = vpack.c.bf16 %v1385_v39, %v1384_v60  ;;  %5635 = vmatprep.subr.bf16.mxu0 %v6299_v35 }
 0x385   : > { %5628 = vmatmul.mubr.bf16.gmra.mrb[28].mxu0 %v1389_v57 }
 0x386   : > { %5636 = vmatpush3.bf16.msra.mxu0 %v6299_v35  ;;  %5647 = vmatprep.mubr.bf16.mxu0 %v6888_v17 }
 0x387   : > { %5637 = vmatprep.subr.bf16.mxu0 %v6300_v29  ;;  %5730 = vmatpush3.bf16.xpose.msra.mxu1 %v1989_v0  ;;  %v6311_v0 = vld [vmem:[%s8049_s7 + $0x70] sm:$0xff]  }
 0x388   : > { %6173 = vmatprep.subr.msk.bf16.mxu1 %vm1190_vm0, %v1959_v10 }
 0x38a   : > { %5638 = vmatpush3.bf16.msra.mxu0 %v6300_v29  ;;  %v6305_v29 = vld [vmem:[%s8049_s7 + $0x40] sm:$0xff]  }
 0x38b   : > { %5639 = vmatprep.subr.bf16.mxu0 %v6301_v15 }
 0x38e   : > { %5640 = vmatpush3.bf16.msra.mxu0 %v6301_v15  ;;  %v6306_v15 = vld [vmem:[%s8049_s7 + $0x48] sm:$0xff]  }
 0x38f   : > { %5641 = vmatprep.subr.bf16.mxu0 %v6302_v20  ;;  %5732 = vmatpush3.bf16.xpose.msra.mxu1 %v1992_v11 }
 0x390   : > { %6174 = vmatprep.subr.msk.bf16.mxu1 %vm1190_vm0, %v1960_v54 }
 0x392   : > { %5642 = vmatpush3.bf16.msra.mxu0 %v6302_v20  ;;  %v6307_v20 = vld [vmem:[%s8049_s7 + $0x50] sm:$0xff]  }
 0x393   : > { %5643 = vmatprep.subr.bf16.mxu0 %v6303_v61 }
 0x396   : > { %5644 = vmatpush3.bf16.msra.mxu0 %v6303_v61  ;;  %v6308_v61 = vld [vmem:[%s8049_s7 + $0x58] sm:$0xff]  }
 0x397   : > { %5645 = vmatprep.subr.bf16.mxu0 %v6304_v62  ;;  %5734 = vmatpush3.bf16.xpose.msra.mxu1 %v1995_v55 }
 0x39a   : > { %5646 = vmatpush3.bf16.msra.mxu0 %v6304_v62  ;;  %v6309_v62 = vld [vmem:[%s8049_s7 + $0x60] sm:$0xff]  }
 0x39b   : > { %5687 = vmatprep.subr.bf16.mxu0 %v6305_v29 }
 0x39d   : > { %5648 = vmatmul.mubr.bf16.vlgmr.msra.gmra.mrb[32].mxu0 %v6927_v40 }
 0x39e   : > { %5651 = vmatprep.mubr.bf16.mxu0 %v6932_v43  ;;  %5688 = vmatpush3.bf16.msra.mxu0 %v6305_v29 }
 0x39f   : > { %5689 = vmatprep.subr.bf16.mxu0 %v6306_v15 }
 0x3a2   : > { %5690 = vmatpush3.bf16.msra.mxu0 %v6306_v15 }
 0x3a3   : > { %5691 = vmatprep.subr.bf16.mxu0 %v6307_v20 }
 0x3a5   : > { %5652 = vmatmul.mubr.bf16.gmra.mrb[36].mxu0 %v6945_v50 }
 0x3a6   : > { %5703 = vmatprep.mubr.bf16.mxu0 %v6853_v6  ;;  %5692 = vmatpush3.bf16.msra.mxu0 %v6307_v20 }
 0x3a7   : > { %5693 = vmatprep.subr.bf16.mxu0 %v6308_v61 }
 0x3aa   : > { %5694 = vmatpush3.bf16.msra.mxu0 %v6308_v61 }
 0x3ab   : > { %5695 = vmatprep.subr.bf16.mxu0 %v6309_v62 }
 0x3ae   : > { %5696 = vmatpush3.bf16.msra.mxu0 %v6309_v62 }
 0x3af   : > { %5697 = vmatprep.subr.bf16.mxu0 %v6310_v63 }
 0x3b2   : > { %5698 = vmatpush3.bf16.msra.mxu0 %v6310_v63 }
 0x3b3   : > { %5699 = vmatprep.subr.bf16.mxu0 %v6311_v0 }
 0x3b6   : > { %5700 = vmatpush3.bf16.msra.mxu0 %v6311_v0 }
 0x3b7   : > { %5701 = vmatprep.subr.bf16.mxu0 %v6312_v1 }
 0x3ba   : > { %5702 = vmatpush3.bf16.msra.mxu0 %v6312_v1 }
 0x3bd   : > { %5704 = vmatmul.mubr.bf16.vlgmr.msra.gmra.mrb[40].mxu0 %v6904_v25 }
 0x3be   : > { %5707 = vmatprep.mubr.bf16.mxu0 %v6906_v26 }
 0x3c5   : > { %5708 = vmatmul.mubr.bf16.gmra.mrb[44].mxu0 %v6921_v36 }
 0x3c6   : > { %5711 = vmatprep.mubr.bf16.mxu0 %v6923_v37 }
 0x3cd   : > { %5712 = vmatmul.mubr.bf16.gmra.mrb[48].mxu0 %v6938_v46 }
 0x3ce   : > { %5715 = vmatprep.mubr.bf16.mxu0 %v6941_v47 }
 0x3d5   : > { %5716 = vmatmul.mubr.bf16.gmra.mrb[52].mxu0 %v6950_v51 }
 0x450   : > { %v7237_v16 = vpop.f32.mrb[24].mxu0 }
 0x451   : > { %v7239_v18 = vpop.f32.mrb[25].mxu0 }
 0x452   : > { %v7241_v19 = vpop.f32.mrb[26].mxu0 }
 0x453   : > { %v1464_v30 = vpack.c.bf16 %v7241_v19, %v7237_v16  ;;  %v7245_v21 = vpop.f32.mrb[27].mxu0  ;;  %v6321_v16 = vld [vmem:[%s8047_s5 + $0xa0] sm:$0xff]   ;;  %v6322_v19 = vld [vmem:[%s8047_s5 + $0xa8] sm:$0xff]  }
 0x454   : > { %v1463_v23 = vpack.c.bf16 %v7245_v21, %v7239_v18  ;;  %v6319_v18 = vld [vmem:[%s8047_s5 + $0x90] sm:$0xff]   ;;  %v6320_v21 = vld [vmem:[%s8047_s5 + $0x98] sm:$0xff]  }
 0x458   : > { %v7249_v24 = vpop.f32.mrb[28].mxu0 }
 0x459   : > { %v7251_v27 = vpop.f32.mrb[29].mxu0 }
 0x45a   : > { %v7253_v28 = vpop.f32.mrb[30].mxu0 }
 0x45b   : > { %v1466_v31 = vpack.c.bf16 %v7253_v28, %v7249_v24  ;;  %v7257_v2 = vpop.f32.mrb[31].mxu0 }
 0x45c   : > { %v1465_v33 = vpack.c.bf16 %v7257_v2, %v7251_v27  ;;  %v4978_v27 = vld [vmem:[%s8046_s4 + $0x2] ss:$0 sm:$0xff] }
 0x470   : > { %v5649_v38 = vpop.f32.mrb[32].mxu0 }
 0x471   : > { %v1578_v41 = vpop.f32.mrb[33].mxu0  ;;  %v1587_v44 = vadd.f32 %v5649_v38, %v4880_v32 }
 0x472   : > { %v5650_v42 = vpop.f32.mrb[34].mxu0  ;;  %v1579_v48 = vadd.f32 %v4880_v32, %v1578_v41 }
 0x473   : > { %v1590_v34 = vadd.f32 %v5650_v42, %v4880_v32  ;;  %v1581_v45 = vpop.f32.mrb[35].mxu0 }
 0x474   : > { %v1582_v49 = vadd.f32 %v4880_v32, %v1581_v45 }
 0x475   : > { %v1950_v8 = vpack.c.bf16 %v1590_v34, %v1587_v44 }
 0x476   : > { %v1949_v13 = vpack.c.bf16 %v1582_v49, %v1579_v48 }
 0x478   : > { %v5653_v52 = vpop.f32.mrb[36].mxu0  ;;  %5735 = vmatprep.mubr.msk.bf16.mxu1 %vm1190_vm0, %v1949_v13 }
 0x479   : > { %v1594_v58 = vpop.f32.mrb[37].mxu0  ;;  %5736 = vmatmul.mubr.msk.bf16.vlgmr.msra.gmra.mrb[40].mxu1 %vm1190_vm0, %v1950_v8  ;;  %v1603_v12 = vadd.f32 %v5653_v52, %v4880_v32 }
 0x47a   : > { %v5654_v59 = vpop.f32.mrb[38].mxu0  ;;  %v1595_v60 = vadd.f32 %v4880_v32, %v1594_v58 }
 0x47b   : > { %v1606_v56 = vadd.f32 %v5654_v59, %v4880_v32  ;;  %v1597_v35 = vpop.f32.mrb[39].mxu0 }
 0x47c   : > { %v1598_v39 = vadd.f32 %v4880_v32, %v1597_v35 }
 0x47d   : > { %v1952_v57 = vpack.c.bf16 %v1606_v56, %v1603_v12  ;;  %v7323_v12 = vld [vmem:[%s8050_s8 + $0x1] ss:$0 sm:$0xff] }
 0x47e   : > { %v1951_v14 = vpack.c.bf16 %v1598_v39, %v1595_v60 }
 0x480   : > { %5739 = vmatprep.mubr.msk.bf16.mxu1 %vm1190_vm0, %v1951_v14 }
 0x481   : > { %5740 = vmatmul.mubr.msk.bf16.gmra.mrb[44].mxu1 %vm1190_vm0, %v1952_v57 }
 0x482   : > { %5807 = vmatprep.mubr.bf16.mxu1 %v6888_v17 }
 0x490   : > { %v5705_v56 = vpop.f32.mrb[40].mxu0 }
 0x491   : > { %v1895_v35 = vadd.f32 %v5705_v56, %v7323_v12  ;;  %v1886_v60 = vpop.f32.mrb[41].mxu0 }
 0x492   : > { %v1887_v39 = vadd.f32 %v7323_v12, %v1886_v60  ;;  %v5706_v57 = vpop.f32.mrb[42].mxu0 }
 0x493   : > { %v1898_v14 = vadd.f32 %v5706_v57, %v7323_v12  ;;  %v1889_v29 = vpop.f32.mrb[43].mxu0 }
 0x494   : > { %v1890_v15 = vadd.f32 %v7323_v12, %v1889_v29 }
 0x495   : > { %v2155_v20 = vpack.c.bf16 %v1898_v14, %v1895_v35 }
 0x496   : > { %v2154_v61 = vpack.c.bf16 %v1890_v15, %v1887_v39 }
 0x498   : > { %v5709_v62 = vpop.f32.mrb[44].mxu0  ;;  %5743 = vmatprep.subr.bf16.mxu0 %v2154_v61 }
 0x499   : > { %v1911_v63 = vadd.f32 %v5709_v62, %v7323_v12  ;;  %v1902_v0 = vpop.f32.mrb[45].mxu0  ;;  %5744 = vmatpush3.bf16.msra.mxu0 %v2154_v61 }
 0x49a   : > { %5745 = vmatprep.subr.bf16.mxu0 %v2155_v20 }
 0x49d   : > { %5746 = vmatpush3.bf16.msra.mxu0 %v2155_v20 }
 0x54c   : > { %v5737_v3 = vpop.f32.mrb[40].mxu1 }
 0x54d   : > { %v2031_v4 = vpop.f32.mrb[41].mxu1  ;;  %v2064_v54 = vmul.f32 0.17677669, %v5737_v3  ;;  %v1903_v3 = vadd.f32 %v7323_v12, %v1902_v0 }
 0x54e   : > { %v2062_v5 = vmul.f32 0.17677669, %v2031_v4  ;;  %v5738_v53 = vpop.f32.mrb[42].mxu1  ;;  %v5710_v4 = vpop.f32.mrb[46].mxu0 }
 0x54f   : > { %v2034_v7 = vpop.f32.mrb[43].mxu1  ;;  %v2065_v11 = vmul.f32 0.17677669, %v5738_v53  ;;  %v2072_v32 = vadd.f32 %v2064_v54, %v7037_v22  ;;  %v1914_v53 = vadd.f32 %v5710_v4, %v7323_v12 }
 0x550   : > { %v2063_v9 = vmul.f32 0.17677669, %v2034_v7  ;;  %v2070_v10 = vadd.f32 %v2062_v5, %v7037_v22  ;;  %v1905_v7 = vpop.f32.mrb[47].mxu0 }
 0x551   : > { %v2073_v34 = vadd.f32 %v2065_v11, %v7037_v22 }
 0x552   : > { %2078 = vmax.xlane.f32.xlu0 %v2070_v10  ;;  %v2071_v55 = vadd.f32 %v2063_v9, %v7037_v22  ;;  %v1906_v9 = vadd.f32 %v7323_v12, %v1905_v7 }
 0x554   : > { %2080 = vmax.xlane.f32.xlu1 %v2071_v55  ;;  %v5741_v38 = vpop.f32.mrb[44].mxu1 }
 0x555   : > { %v2047_v41 = vpop.f32.mrb[45].mxu1  ;;  %v2068_v48 = vmul.f32 0.17677669, %v5741_v38 }
 0x556   : > { %v2066_v42 = vmul.f32 0.17677669, %v2047_v41  ;;  %2082 = vmax.xlane.f32.xlu0 %v2072_v32  ;;  %v5742_v44 = vpop.f32.mrb[46].mxu1  ;;  %v2157_v41 = vpack.c.bf16 %v1914_v53, %v1911_v63 }
 0x557   : > { %v2050_v45 = vpop.f32.mrb[47].mxu1  ;;  %v2069_v13 = vmul.f32 0.17677669, %v5742_v44  ;;  %v7313_v58 = vadd.f32 %v2068_v48, %v7037_v22  ;;  %v2156_v44 = vpack.c.bf16 %v1906_v9, %v1903_v3 }
 0x558   : > { %v2067_v49 = vmul.f32 0.17677669, %v2050_v45  ;;  %2084 = vmax.xlane.f32.xlu1 %v2073_v34  ;;  %v7305_v8 = vadd.f32 %v2066_v42, %v7037_v22 }
 0x559   : > { %v7317_v59 = vadd.f32 %v2069_v13, %v7037_v22  ;;  %v5713_v13 = vpop.f32.mrb[48].mxu0  ;;  %5747 = vmatprep.subr.bf16.mxu0 %v2156_v44 }
 0x55a   : > { %2086 = vmax.xlane.f32.xlu0 %v7305_v8  ;;  %v7309_v52 = vadd.f32 %v2067_v49, %v7037_v22  ;;  %v1927_v35 = vadd.f32 %v5713_v13, %v7323_v12  ;;  %v1918_v60 = vpop.f32.mrb[49].mxu0  ;;  %5748 = vmatpush3.bf16.msra.mxu0 %v2156_v44 }
 0x55b   : > { %v5714_v57 = vpop.f32.mrb[50].mxu0  ;;  %5749 = vmatprep.subr.bf16.mxu0 %v2157_v41 }
 0x55c   : > { %2088 = vmax.xlane.f32.xlu1 %v7309_v52  ;;  %v1921_v15 = vpop.f32.mrb[51].mxu0 }
 0x55d   : > { %v1922_v61 = vadd.f32 %v7323_v12, %v1921_v15 }
 0x55e   : > { %2090 = vmax.xlane.f32.xlu0 %v7313_v58  ;;  %5750 = vmatpush3.bf16.msra.mxu0 %v2157_v41 }
 0x560   : > { %2092 = vmax.xlane.f32.xlu1 %v7317_v59 }
 0x5df   : > { %v2079_v1 = vpop.xlane.xlu0 %2078 }
 0x5e0   : > { %v2094_v5 = vsub.f32 %v2070_v10, %v2079_v1 }
 0x5e1   : > { %v2081_v54 = vpop.xlane.xlu1 %2080 }
 0x5e2   : > { %v2102_v11 = vmul.f32 1.442695, %v2094_v5  ;;  %v2095_v38 = vsub.f32 %v2071_v55, %v2081_v54  ;;  %v1919_v55 = vadd.f32 %v7323_v12, %v1918_v60 }
 0x5e3   : > { %v2083_v42 = vpop.xlane.xlu0 %2082 }
 0x5e4   : > { %6417 = vpow2.f32 %v2102_v11  ;;  %v2104_v45 = vmul.f32 1.442695, %v2095_v38  ;;  %v2096_v48 = vsub.f32 %v2072_v32, %v2083_v42  ;;  %v1930_v32 = vadd.f32 %v5714_v57, %v7323_v12 }
 0x5e5   : > { %v2085_v49 = vpop.xlane.xlu1 %2084  ;;  %v2158_v1 = vpack.c.bf16 %v1922_v61, %v1919_v55 }
 0x5e6   : > { %6419 = vpow2.f32 %v2104_v45  ;;  %v2106_v10 = vmul.f32 1.442695, %v2096_v48  ;;  %v2097_v56 = vsub.f32 %v2073_v34, %v2085_v49  ;;  %v2159_v63 = vpack.c.bf16 %v1930_v32, %v1927_v35 }
 0x5e7   : > { %v2087_v39 = vpop.xlane.xlu0 %2086  ;;  %5751 = vmatprep.subr.bf16.mxu0 %v2158_v1 }
 0x5e8   : > { %6421 = vpow2.f32 %v2106_v10  ;;  %v2108_v14 = vmul.f32 1.442695, %v2097_v56  ;;  %v2098_v29 = vsub.f32 %v7305_v8, %v2087_v39  ;;  %v5717_v8 = vpop.f32.mrb[52].mxu0  ;;  %5752 = vmatpush3.bf16.msra.mxu0 %v2158_v1 }
 0x5e9   : > { %v2089_v20 = vpop.xlane.xlu1 %2088  ;;  %v1943_v9 = vadd.f32 %v5717_v8, %v7323_v12  ;;  %v1934_v11 = vpop.f32.mrb[53].mxu0  ;;  %5753 = vmatprep.subr.bf16.mxu0 %v2159_v63 }
 0x5ea   : > { %6423 = vpow2.f32 %v2108_v14  ;;  %v2110_v34 = vmul.f32 1.442695, %v2098_v29  ;;  %v2099_v62 = vsub.f32 %v7309_v52, %v2089_v20  ;;  %v1935_v52 = vadd.f32 %v7323_v12, %v1934_v11  ;;  %v5718_v38 = vpop.f32.mrb[54].mxu0 }
 0x5eb   : > { %v2091_v0 = vpop.xlane.xlu0 %2090  ;;  %v1946_v42 = vadd.f32 %v5718_v38, %v7323_v12  ;;  %v1937_v44 = vpop.f32.mrb[55].mxu0 }
 0x5ec   : > { %6425 = vpow2.f32 %v2110_v34  ;;  %v2112_v3 = vmul.f32 1.442695, %v2099_v62  ;;  %v2100_v4 = vsub.f32 %v7313_v58, %v2091_v0  ;;  %v1938_v45 = vadd.f32 %v7323_v12, %v1937_v44  ;;  %5754 = vmatpush3.bf16.msra.mxu0 %v2159_v63  ;;  %v6313_v12 = vld [vmem:[%s8051_s9 + $0x10] sm:$0xff]  }
 0x5ed   : > { %v2093_v5 = vpop.xlane.xlu1 %2092 }
 0x5ee   : > { %v6418_v53 = vpop.eup %6417  ;;  %6427 = vpow2.f32 %v2112_v3  ;;  %v2114_v7 = vmul.f32 1.442695, %v2100_v4  ;;  %v2101_v54 = vsub.f32 %v7317_v59, %v2093_v5  ;;  %v2161_v59 = vpack.c.bf16 %v1946_v42, %v1943_v9 }
 0x5ef   : > { %2118 = vadd.xlane.f32.xlu0 %v6418_v53  ;;  %v2160_v49 = vpack.c.bf16 %v1938_v45, %v1935_v52  ;;  %v6315_v45 = vld [vmem:[%s8051_s9] sm:$0xff]  }
 0x5f0   : > { %v6420_v41 = vpop.eup %6419  ;;  %6429 = vpow2.f32 %v2114_v7  ;;  %v2116_v58 = vmul.f32 1.442695, %v2101_v54  ;;  %v6314_v54 = vld [vmem:[%s8051_s9 + $0x18] sm:$0xff]  }
 0x5f1   : > { %2120 = vadd.xlane.f32.xlu1 %v6420_v41  ;;  %5755 = vmatprep.subr.bf16.mxu0 %v2160_v49 }
 0x5f2   : > { %v6422_v48 = vpop.eup %6421  ;;  %6431 = vpow2.f32 %v2116_v58  ;;  %5756 = vmatpush3.bf16.msra.mxu0 %v2160_v49  ;;  %v6327_v49 = vld [vmem:[%s8099_s27 + $0x90] sm:$0xff]  }
 0x5f3   : > { %2122 = vadd.xlane.f32.xlu0 %v6422_v48  ;;  %5757 = vmatprep.subr.bf16.mxu0 %v2161_v59 }
 0x5f4   : > { %v6424_v13 = vpop.eup %6423 }
 0x5f5   : > { %2124 = vadd.xlane.f32.xlu1 %v6424_v13 }
 0x5f6   : > { %v6426_v10 = vpop.eup %6425  ;;  %5758 = vmatpush3.bf16.msra.mxu0 %v2161_v59  ;;  %v6326_v59 = vld [vmem:[%s8099_s27 + $0x88] sm:$0xff]  }
 0x5f7   : > { %2126 = vadd.xlane.f32.xlu0 %v6426_v10  ;;  %5767 = vmatprep.subr.bf16.mxu0 %v6313_v12 }
 0x5f8   : > { %v6428_v56 = vpop.eup %6427 }
 0x5f9   : > { %2128 = vadd.xlane.f32.xlu1 %v6428_v56 }
 0x5fa   : > { %v6430_v35 = vpop.eup %6429 }
 0x5fb   : > { %2130 = vadd.xlane.f32.xlu0 %v6430_v35 }
 0x5fc   : > { %v6432_v60 = vpop.eup %6431 }
 0x5fd   : > { %2132 = vadd.xlane.f32.xlu1 %v6432_v60 }
 0x67c   : > { %v2119_v39 = vpop.xlane.xlu0 %2118 }
 0x67d   : > { %6433 = vrcp.f32 %v2119_v39 }
 0x67e   : > { %v2121_v55 = vpop.xlane.xlu1 %2120 }
 0x67f   : > { %6435 = vrcp.f32 %v2121_v55 }
 0x680   : > { %v2123_v57 = vpop.xlane.xlu0 %2122 }
 0x681   : > { %6437 = vrcp.f32 %v2123_v57 }
 0x682   : > { %v2125_v14 = vpop.xlane.xlu1 %2124 }
 0x683   : > { %6439 = vrcp.f32 %v2125_v14 }
 0x684   : > { %v2127_v29 = vpop.xlane.xlu0 %2126 }
 0x685   : > { %6441 = vrcp.f32 %v2127_v29 }
 0x686   : > { %v2129_v32 = vpop.xlane.xlu1 %2128 }
 0x687   : > { %v6434_v15 = vpop.eup %6433  ;;  %6443 = vrcp.f32 %v2129_v32  ;;  %v6316_v32 = vld [vmem:[%s8051_s9 + $0x8] sm:$0xff]  }
 0x688   : > { %v2131_v20 = vpop.xlane.xlu0 %2130  ;;  %v2142_v62 = vmul.f32 %v6434_v15, %v6418_v53 }
 0x689   : > { %v6436_v61 = vpop.eup %6435  ;;  %6445 = vrcp.f32 %v2131_v20 }
 0x68a   : > { %v2133_v34 = vpop.xlane.xlu1 %2132  ;;  %v2143_v63 = vmul.f32 %v6436_v61, %v6420_v41  ;;  %v6317_v61 = vld [vmem:[%s8047_s5 + $0x80] sm:$0xff]  }
 0x68b   : > { %v6438_v0 = vpop.eup %6437  ;;  %6447 = vrcp.f32 %v2133_v34 }
 0x68c   : > { %v2150_v1 = vpack.c.bf16 %v2143_v63, %v2142_v62  ;;  %v2144_v4 = vmul.f32 %v6438_v0, %v6422_v48  ;;  %v6325_v48 = vld [vmem:[%s8099_s27 + $0x80] sm:$0xff]  }
 0x68d   : > { %v6440_v3 = vpop.eup %6439  ;;  %5791 = vmatprep.subr.bf16.mxu1 %v6325_v48 }
 0x68e   : > { %v2145_v5 = vmul.f32 %v6440_v3, %v6424_v13  ;;  %5759 = vmatprep.mubr.bf16.mxu0 %v2150_v1  ;;  %5792 = vmatpush3.bf16.msra.mxu1 %v6325_v48  ;;  %v6328_v13 = vld [vmem:[%s8099_s27 + $0x98] sm:$0xff]   ;;  %v6318_v1 = vld [vmem:[%s8047_s5 + $0x88] sm:$0xff]   ;;  %v5004_v48 = vld [vmem:[%s8048_s6 + $0x2] ss:$0 sm:$0xff] }
 0x68f   : > { %v6442_v8 = vpop.eup %6441  ;;  %5793 = vmatprep.subr.bf16.mxu1 %v6326_v59 }
 0x690   : > { %v2151_v7 = vpack.c.bf16 %v2145_v5, %v2144_v4  ;;  %v2146_v11 = vmul.f32 %v6442_v8, %v6426_v10  ;;  %v6329_v10 = vld [vmem:[%s8099_s27 + $0xa0] sm:$0xff]  }
 0x691   : > { %v6444_v9 = vpop.eup %6443 }
 0x692   : > { %5760 = vmatmul.mubr.bf16.vlgmr.msra.gmra.mrb[56].mxu0 %v2151_v7  ;;  %v2147_v52 = vmul.f32 %v6444_v9, %v6428_v56  ;;  %5794 = vmatpush3.bf16.msra.mxu1 %v6326_v59  ;;  %v6330_v56 = vld [vmem:[%s8099_s27 + $0xa8] sm:$0xff]  }
 0x693   : > { %v6446_v38 = vpop.eup %6445  ;;  %5768 = vmatpush3.bf16.msra.mxu0 %v6313_v12  ;;  %5795 = vmatprep.subr.bf16.mxu1 %v6327_v49 }
 0x694   : > { %v2152_v53 = vpack.c.bf16 %v2147_v52, %v2146_v11  ;;  %5769 = vmatprep.subr.bf16.mxu0 %v6314_v54  ;;  %v2148_v58 = vmul.f32 %v6446_v38, %v6430_v35  ;;  %v6331_v35 = vld [vmem:[%s8099_s27 + $0xb0] sm:$0xff]  }
 0x695   : > { %v6448_v41 = vpop.eup %6447 }
 0x696   : > { %5763 = vmatprep.mubr.bf16.mxu0 %v2152_v53  ;;  %v2149_v42 = vmul.f32 %v6448_v41, %v6432_v60  ;;  %5796 = vmatpush3.bf16.msra.mxu1 %v6327_v49  ;;  %v6332_v60 = vld [vmem:[%s8099_s27 + $0xb8] sm:$0xff]  }
 0x697   : > { %5770 = vmatpush3.bf16.msra.mxu0 %v6314_v54  ;;  %5797 = vmatprep.subr.bf16.mxu1 %v6328_v13 }
 0x698   : > { %v2153_v44 = vpack.c.bf16 %v2149_v42, %v2148_v58  ;;  %5779 = vmatprep.subr.bf16.mxu0 %v6315_v45 }
 0x69a   : > { %5764 = vmatmul.mubr.bf16.gmra.mrb[60].mxu0 %v2153_v44  ;;  %5798 = vmatpush3.bf16.msra.mxu1 %v6328_v13 }
 0x69b   : > { %5799 = vmatprep.subr.bf16.mxu1 %v6329_v10 }
 0x69e   : > { %5800 = vmatpush3.bf16.msra.mxu1 %v6329_v10 }
 0x69f   : > { %5801 = vmatprep.subr.bf16.mxu1 %v6330_v56 }
 0x6a2   : > { %5802 = vmatpush3.bf16.msra.mxu1 %v6330_v56 }
 0x6a3   : > { %5803 = vmatprep.subr.bf16.mxu1 %v6331_v35 }
 0x6a6   : > { %5804 = vmatpush3.bf16.msra.mxu1 %v6331_v35 }
 0x6a7   : > { %5805 = vmatprep.subr.bf16.mxu1 %v6332_v60 }
 0x6aa   : > { %5806 = vmatpush3.bf16.msra.mxu1 %v6332_v60 }
 0x6ad   : > { %5808 = vmatmul.mubr.bf16.vlgmr.msra.gmra.mrb[48].mxu1 %v6927_v40 }
 0x6ae   : > { %5811 = vmatprep.mubr.bf16.mxu1 %v6932_v43 }
 0x6b5   : > { %5812 = vmatmul.mubr.bf16.gmra.mrb[52].mxu1 %v6945_v50 }
 0x6b6   : > { %5863 = vmatprep.mubr.bf16.mxu1 %v6853_v6 }
 0x765   : > { %v5761_v12 = vpop.f32.mrb[56].mxu0 }
 0x766   : > { %v2196_v39 = vpop.f32.mrb[57].mxu0 }
 0x767   : > { %v5762_v55 = vpop.f32.mrb[58].mxu0 }
 0x768   : > { %v2228_v57 = vpack.c.bf16 %v5762_v55, %v5761_v12  ;;  %v2199_v14 = vpop.f32.mrb[59].mxu0 }
 0x769   : > { %v2227_v29 = vpack.c.bf16 %v2199_v14, %v2196_v39 }
 0x76b   : > { %5771 = vmatprep.mubr.msk.bf16.mxu0 %vm1190_vm0, %v2227_v29 }
 0x76c   : > { %5772 = vmatmul.mubr.msk.bf16.vlgmr.msra.gmra.mrb[64].mxu0 %vm1190_vm0, %v2228_v57 }
 0x76d   : > { %5780 = vmatpush3.bf16.msra.mxu0 %v6315_v45  ;;  %v5765_v15 = vpop.f32.mrb[60].mxu0 }
 0x76e   : > { %v2212_v20 = vpop.f32.mrb[61].mxu0  ;;  %5781 = vmatprep.subr.bf16.mxu0 %v6316_v32 }
 0x76f   : > { %v5766_v34 = vpop.f32.mrb[62].mxu0 }
 0x770   : > { %v2230_v62 = vpack.c.bf16 %v5766_v34, %v5765_v15  ;;  %v2215_v63 = vpop.f32.mrb[63].mxu0 }
 0x771   : > { %v2229_v0 = vpack.c.bf16 %v2215_v63, %v2212_v20  ;;  %5782 = vmatpush3.bf16.msra.mxu0 %v6316_v32 }
 0x772   : > { %5815 = vmatprep.subr.bf16.mxu0 %v6317_v61 }
 0x773   : > { %5775 = vmatprep.mubr.msk.bf16.mxu0 %vm1190_vm0, %v2229_v0 }
 0x774   : > { %5776 = vmatmul.mubr.msk.bf16.gmra.mrb[68].mxu0 %vm1190_vm0, %v2230_v62 }
 0x775   : > { %5783 = vmatprep.mubr.msk.bf16.mxu0 %vm1190_vm0, %v1463_v23  ;;  %v6324_v23 = vld [vmem:[%s8047_s5 + $0xb8] sm:$0xff]  }
 0x77c   : > { %5784 = vmatmul.mubr.msk.bf16.vlgmr.msra.gmra.mrb[64].mxu0 %vm1190_vm0, %v1464_v30  ;;  %v6323_v30 = vld [vmem:[%s8047_s5 + $0xb0] sm:$0xff]  }
 0x77d   : > { %5816 = vmatpush3.bf16.msra.mxu0 %v6317_v61  ;;  %5787 = vmatprep.mubr.msk.bf16.mxu0 %vm1190_vm0, %v1465_v33 }
 0x77e   : > { %5817 = vmatprep.subr.bf16.mxu0 %v6318_v1 }
 0x780   : > { %v5809_v24 = vpop.f32.mrb[48].mxu1 }
 0x781   : > { %5818 = vmatpush3.bf16.msra.mxu0 %v6318_v1  ;;  %v7440_v28 = vadd.f32 %v5809_v24, %v4978_v27 }
 0x782   : > { %5819 = vmatprep.subr.bf16.mxu0 %v6319_v18 }
 0x784   : > { %5788 = vmatmul.mubr.msk.bf16.gmra.mrb[68].mxu0 %vm1190_vm0, %v1466_v31  ;;  %v2521_v31 = vpop.f32.mrb[49].mxu1 }
 0x785   : > { %5820 = vmatpush3.bf16.msra.mxu0 %v6319_v18  ;;  %5831 = vmatprep.mubr.bf16.mxu0 %v6853_v6  ;;  %v2522_v2 = vadd.f32 %v4978_v27, %v2521_v31  ;;  %v5810_v33 = vpop.f32.mrb[50].mxu1 }
 0x786   : > { %5821 = vmatprep.subr.bf16.mxu0 %v6320_v21  ;;  %v7442_v3 = vadd.f32 %v5810_v33, %v4978_v27  ;;  %v2524_v4 = vpop.f32.mrb[51].mxu1 }
 0x787   : > { %v2525_v5 = vadd.f32 %v4978_v27, %v2524_v4 }
 0x788   : > { %v2893_v8 = vpack.c.bf16 %v7442_v3, %v7440_v28  ;;  %v5813_v54 = vpop.f32.mrb[52].mxu1  ;;  %v6334_v28 = vld [vmem:[%s8049_s7 + $0x88] sm:$0xff]   ;;  %v6335_v3 = vld [vmem:[%s8049_s7 + $0x90] sm:$0xff]  }
 0x789   : > { %5822 = vmatpush3.bf16.msra.mxu0 %v6320_v21  ;;  %v2892_v7 = vpack.c.bf16 %v2525_v5, %v2522_v2  ;;  %v7447_v9 = vadd.f32 %v5813_v54, %v4978_v27  ;;  %v2537_v11 = vpop.f32.mrb[53].mxu1 }
 0x78a   : > { %5823 = vmatprep.subr.bf16.mxu0 %v6321_v16  ;;  %v7449_v52 = vadd.f32 %v4978_v27, %v2537_v11  ;;  %v5814_v38 = vpop.f32.mrb[54].mxu1 }
 0x78b   : > { %v7451_v53 = vadd.f32 %v5814_v38, %v4978_v27  ;;  %v2540_v41 = vpop.f32.mrb[55].mxu1 }
 0x78c   : > { %v7453_v58 = vadd.f32 %v4978_v27, %v2540_v41 }
 0x78d   : > { %5824 = vmatpush3.bf16.msra.mxu0 %v6321_v16  ;;  %v2895_v42 = vpack.c.bf16 %v7451_v53, %v7447_v9  ;;  %v6337_v9 = vld [vmem:[%s8049_s7 + $0xa0] sm:$0xff]   ;;  %v6339_v53 = vld [vmem:[%s8049_s7 + $0xb0] sm:$0xff]  }
 0x78e   : > { %5825 = vmatprep.subr.bf16.mxu0 %v6322_v19  ;;  %v2894_v44 = vpack.c.bf16 %v7453_v58, %v7449_v52  ;;  %v6338_v52 = vld [vmem:[%s8049_s7 + $0xa8] sm:$0xff]   ;;  %v6340_v58 = vld [vmem:[%s8049_s7 + $0xb8] sm:$0xff]  }
 0x791   : > { %5826 = vmatpush3.bf16.msra.mxu0 %v6322_v19 }
 0x792   : > { %5827 = vmatprep.subr.bf16.mxu0 %v6323_v30 }
 0x795   : > { %5828 = vmatpush3.bf16.msra.mxu0 %v6323_v30 }
 0x796   : > { %5829 = vmatprep.subr.bf16.mxu0 %v6324_v23 }
 0x799   : > { %5830 = vmatpush3.bf16.msra.mxu0 %v6324_v23 }
 0x79c   : > { %5832 = vmatmul.mubr.bf16.vlgmr.msra.gmra.mrb[72].mxu0 %v6904_v25 }
 0x79d   : > { %5835 = vmatprep.mubr.bf16.mxu0 %v6906_v26 }
 0x7a4   : > { %5836 = vmatmul.mubr.bf16.gmra.mrb[76].mxu0 %v6921_v36 }
 0x7a5   : > { %5839 = vmatprep.mubr.bf16.mxu0 %v6923_v37 }
 0x7ac   : > { %5840 = vmatmul.mubr.bf16.gmra.mrb[80].mxu0 %v6938_v46 }
 0x7ad   : > { %5843 = vmatprep.mubr.bf16.mxu0 %v6941_v47 }
 0x7b4   : > { %5844 = vmatmul.mubr.bf16.gmra.mrb[84].mxu0 %v6950_v51 }
 0x7b5   : > { %5895 = vmatprep.mubr.msk.bf16.mxu0 %vm1190_vm0, %v2892_v7 }
 0x86f   : > { %v5833_v45 = vpop.f32.mrb[72].mxu0 }
 0x870   : > { %v2659_v59 = vpop.f32.mrb[73].mxu0  ;;  %v2668_v13 = vadd.f32 %v5833_v45, %v5004_v48 }
 0x871   : > { %v5834_v49 = vpop.f32.mrb[74].mxu0  ;;  %v2660_v35 = vadd.f32 %v5004_v48, %v2659_v59 }
 0x872   : > { %v2671_v10 = vadd.f32 %v5834_v49, %v5004_v48  ;;  %v2662_v56 = vpop.f32.mrb[75].mxu0 }
 0x873   : > { %v2663_v60 = vadd.f32 %v5004_v48, %v2662_v56 }
 0x874   : > { %v2897_v12 = vpack.c.bf16 %v2671_v10, %v2668_v13 }
 0x875   : > { %v2896_v39 = vpack.c.bf16 %v2663_v60, %v2660_v35  ;;  %v6333_v35 = vld [vmem:[%s8049_s7 + $0x80] sm:$0xff]  }
 0x876   : > { %v2920_v0 = vsel %vm1190_vm0, %v2897_v12, 0  ;;  %5847 = vmatprep.subr.bf16.mxu1 %v6333_v35 }
 0x877   : > { %6175 = vmatprep.subr.msk.bf16.mxu0 %vm1190_vm0, %v2896_v39  ;;  %v2917_v55 = vsel %vm1190_vm0, %v2896_v39, 0  ;;  %v5837_v57 = vpop.f32.mrb[76].mxu0  ;;  %5848 = vmatpush3.bf16.msra.mxu1 %v6333_v35 }
 0x878   : > { %5880 = vmatpush3.bf16.xpose.msra.mxu0 %v2917_v55  ;;  %v2684_v14 = vadd.f32 %v5837_v57, %v5004_v48  ;;  %v2675_v29 = vpop.f32.mrb[77].mxu0  ;;  %5849 = vmatprep.subr.bf16.mxu1 %v6334_v28 }
 0x879   : > { %6176 = vmatprep.subr.msk.bf16.mxu0 %vm1190_vm0, %v2897_v12  ;;  %v2676_v32 = vadd.f32 %v5004_v48, %v2675_v29  ;;  %v5838_v15 = vpop.f32.mrb[78].mxu0 }
 0x87a   : > { %v2687_v20 = vadd.f32 %v5838_v15, %v5004_v48  ;;  %v2678_v61 = vpop.f32.mrb[79].mxu0 }
 0x87b   : > { %v2679_v34 = vadd.f32 %v5004_v48, %v2678_v61  ;;  %5850 = vmatpush3.bf16.msra.mxu1 %v6334_v28 }
 0x87c   : > { %v2899_v62 = vpack.c.bf16 %v2687_v20, %v2684_v14  ;;  %5851 = vmatprep.subr.bf16.mxu1 %v6335_v3 }
 0x87d   : > { %v2898_v63 = vpack.c.bf16 %v2679_v34, %v2676_v32 }
 0x87e   : > { %v2926_v49 = vsel %vm1190_vm0, %v2899_v62, 0 }
 0x87f   : > { %v5841_v1 = vpop.f32.mrb[80].mxu0  ;;  %v2923_v2 = vsel %vm1190_vm0, %v2898_v63, 0  ;;  %5852 = vmatpush3.bf16.msra.mxu1 %v6335_v3 }
 0x880   : > { %5882 = vmatpush3.bf16.xpose.msra.mxu0 %v2920_v0  ;;  %v2700_v18 = vadd.f32 %v5841_v1, %v5004_v48  ;;  %v2691_v21 = vpop.f32.mrb[81].mxu0 }
 0x881   : > { %6177 = vmatprep.subr.msk.bf16.mxu0 %vm1190_vm0, %v2898_v63  ;;  %v2692_v16 = vadd.f32 %v5004_v48, %v2691_v21  ;;  %v5842_v19 = vpop.f32.mrb[82].mxu0 }
 0x882   : > { %v2703_v30 = vadd.f32 %v5842_v19, %v5004_v48  ;;  %v2694_v23 = vpop.f32.mrb[83].mxu0 }
 0x883   : > { %v2695_v24 = vadd.f32 %v5004_v48, %v2694_v23 }
 0x884   : > { %v2901_v27 = vpack.c.bf16 %v2703_v30, %v2700_v18 }
 0x885   : > { %v2900_v31 = vpack.c.bf16 %v2695_v24, %v2692_v16  ;;  %v7544_v24 = vld [vmem:[%s8050_s8 + $0x2] ss:$0 sm:$0xff] }
 0x886   : > { %v2932_v10 = vsel %vm1190_vm0, %v2901_v27, 0 }
 0x887   : > { %v5845_v33 = vpop.f32.mrb[84].mxu0  ;;  %v2929_v13 = vsel %vm1190_vm0, %v2900_v31, 0 }
 0x888   : > { %5884 = vmatpush3.bf16.xpose.msra.mxu0 %v2923_v2  ;;  %v2716_v4 = vadd.f32 %v5845_v33, %v5004_v48  ;;  %v2707_v5 = vpop.f32.mrb[85].mxu0 }
 0x889   : > { %6178 = vmatprep.subr.msk.bf16.mxu0 %vm1190_vm0, %v2899_v62  ;;  %v2708_v7 = vadd.f32 %v5004_v48, %v2707_v5  ;;  %v5846_v54 = vpop.f32.mrb[86].mxu0 }
 0x88a   : > { %v2719_v11 = vadd.f32 %v5846_v54, %v5004_v48  ;;  %v2710_v38 = vpop.f32.mrb[87].mxu0 }
 0x88b   : > { %v2711_v41 = vadd.f32 %v5004_v48, %v2710_v38 }
 0x88c   : > { %v2903_v45 = vpack.c.bf16 %v2719_v11, %v2716_v4 }
 0x88d   : > { %v2902_v59 = vpack.c.bf16 %v2711_v41, %v2708_v7 }
 0x88e   : > { %v2938_v48 = vsel %vm1190_vm0, %v2903_v45, 0 }
 0x88f   : > { %v2935_v56 = vsel %vm1190_vm0, %v2902_v59, 0 }
 0x890   : > { %5886 = vmatpush3.bf16.xpose.msra.mxu0 %v2926_v49 }
 0x891   : > { %6179 = vmatprep.subr.msk.bf16.mxu0 %vm1190_vm0, %v2900_v31 }
 0x898   : > { %5888 = vmatpush3.bf16.xpose.msra.mxu0 %v2929_v13 }
 0x899   : > { %6180 = vmatprep.subr.msk.bf16.mxu0 %vm1190_vm0, %v2901_v27 }
 0x8a0   : > { %5890 = vmatpush3.bf16.xpose.msra.mxu0 %v2932_v10 }
 0x8a1   : > { %6181 = vmatprep.subr.msk.bf16.mxu0 %vm1190_vm0, %v2902_v59 }
 0x8a8   : > { %5892 = vmatpush3.bf16.xpose.msra.mxu0 %v2935_v56 }
 0x8a9   : > { %6182 = vmatprep.subr.msk.bf16.mxu0 %vm1190_vm0, %v2903_v45 }
 0x8b0   : > { %5894 = vmatpush3.bf16.xpose.msra.mxu0 %v2938_v48 }
 0x8b7   : > { %5896 = vmatmul.mubr.msk.bf16.vlgmr.msra.gmra.mrb[88].mxu0 %vm1190_vm0, %v2893_v8  ;;  %v6336_v8 = vld [vmem:[%s8049_s7 + $0x98] sm:$0xff]  }
 0x8b8   : > { %5899 = vmatprep.mubr.msk.bf16.mxu0 %vm1190_vm0, %v2894_v44  ;;  %5853 = vmatprep.subr.bf16.mxu1 %v6336_v8 }
 0x8b9   : > { %5854 = vmatpush3.bf16.msra.mxu1 %v6336_v8 }
 0x8ba   : > { %5855 = vmatprep.subr.bf16.mxu1 %v6337_v9 }
 0x8bd   : > { %5856 = vmatpush3.bf16.msra.mxu1 %v6337_v9 }
 0x8be   : > { %5857 = vmatprep.subr.bf16.mxu1 %v6338_v52 }
 0x8bf   : > { %5900 = vmatmul.mubr.msk.bf16.gmra.mrb[92].mxu0 %vm1190_vm0, %v2895_v42 }
 0x8c1   : > { %5858 = vmatpush3.bf16.msra.mxu1 %v6338_v52 }
 0x8c2   : > { %5859 = vmatprep.subr.bf16.mxu1 %v6339_v53 }
 0x8c5   : > { %5860 = vmatpush3.bf16.msra.mxu1 %v6339_v53 }
 0x8c6   : > { %5861 = vmatprep.subr.bf16.mxu1 %v6340_v58 }
 0x8c9   : > { %5862 = vmatpush3.bf16.msra.mxu1 %v6340_v58 }
 0x8cc   : > { %5864 = vmatmul.mubr.bf16.vlgmr.msra.gmra.mrb[56].mxu1 %v6904_v25 }
 0x8cd   : > { %5867 = vmatprep.mubr.bf16.mxu1 %v6906_v26 }
 0x8d4   : > { %5868 = vmatmul.mubr.bf16.gmra.mrb[60].mxu1 %v6921_v36 }
 0x8d5   : > { %5871 = vmatprep.mubr.bf16.mxu1 %v6923_v37 }
 0x8dc   : > { %5872 = vmatmul.mubr.bf16.gmra.mrb[64].mxu1 %v6938_v46 }
 0x8dd   : > { %5875 = vmatprep.mubr.bf16.mxu1 %v6941_v47 }
 0x8e4   : > { %5876 = vmatmul.mubr.bf16.gmra.mrb[68].mxu1 %v6950_v51 }
 0x98a   : > { %v5897_v42 = vpop.f32.mrb[88].mxu0 }
 0x98b   : > { %v2974_v44 = vpop.f32.mrb[89].mxu0  ;;  %v3007_v55 = vmul.f32 0.17677669, %v5897_v42 }
 0x98c   : > { %v3005_v60 = vmul.f32 0.17677669, %v2974_v44  ;;  %v5898_v12 = vpop.f32.mrb[90].mxu0 }
 0x98d   : > { %v2977_v39 = vpop.f32.mrb[91].mxu0  ;;  %v3008_v29 = vmul.f32 0.17677669, %v5898_v12  ;;  %v3015_v20 = vadd.f32 %v3007_v55, %v7037_v22 }
 0x98e   : > { %v3006_v57 = vmul.f32 0.17677669, %v2977_v39  ;;  %v3013_v14 = vadd.f32 %v3005_v60, %v7037_v22 }
 0x98f   : > { %v3016_v0 = vadd.f32 %v3008_v29, %v7037_v22 }
 0x990   : > { %3021 = vmax.xlane.f32.xlu0 %v3013_v14  ;;  %v3014_v32 = vadd.f32 %v3006_v57, %v7037_v22 }
 0x992   : > { %3023 = vmax.xlane.f32.xlu1 %v3014_v32  ;;  %v5901_v15 = vpop.f32.mrb[92].mxu0 }
 0x993   : > { %v2990_v61 = vpop.f32.mrb[93].mxu0  ;;  %v3011_v34 = vmul.f32 0.17677669, %v5901_v15 }
 0x994   : > { %v3009_v62 = vmul.f32 0.17677669, %v2990_v61  ;;  %3025 = vmax.xlane.f32.xlu0 %v3015_v20  ;;  %v5902_v63 = vpop.f32.mrb[94].mxu0 }
 0x995   : > { %v2993_v1 = vpop.f32.mrb[95].mxu0  ;;  %v3012_v18 = vmul.f32 0.17677669, %v5902_v63  ;;  %v7533_v30 = vadd.f32 %v3011_v34, %v7037_v22 }
 0x996   : > { %v3010_v21 = vmul.f32 0.17677669, %v2993_v1  ;;  %3027 = vmax.xlane.f32.xlu1 %v3016_v0  ;;  %v7526_v16 = vadd.f32 %v3009_v62, %v7037_v22 }
 0x997   : > { %v7537_v23 = vadd.f32 %v3012_v18, %v7037_v22 }
 0x998   : > { %3029 = vmax.xlane.f32.xlu0 %v7526_v16  ;;  %v7530_v19 = vadd.f32 %v3010_v21, %v7037_v22 }
 0x99a   : > { %3031 = vmax.xlane.f32.xlu1 %v7530_v19 }
 0x99c   : > { %3033 = vmax.xlane.f32.xlu0 %v7533_v30 }
 0x99e   : > { %3035 = vmax.xlane.f32.xlu1 %v7537_v23 }
 0x99f   : > { %v5865_v27 = vpop.f32.mrb[56].mxu1 }
 0x9a0   : > { %v2838_v31 = vadd.f32 %v5865_v27, %v7544_v24  ;;  %v2829_v2 = vpop.f32.mrb[57].mxu1 }
 0x9a1   : > { %v2830_v33 = vadd.f32 %v7544_v24, %v2829_v2  ;;  %v5866_v4 = vpop.f32.mrb[58].mxu1 }
 0x9a2   : > { %v2841_v5 = vadd.f32 %v5866_v4, %v7544_v24  ;;  %v2832_v7 = vpop.f32.mrb[59].mxu1 }
 0x9a3   : > { %v2833_v54 = vadd.f32 %v7544_v24, %v2832_v7 }
 0x9a4   : > { %v3098_v11 = vpack.c.bf16 %v2841_v5, %v2838_v31 }
 0x9a5   : > { %v3097_v38 = vpack.c.bf16 %v2833_v54, %v2830_v33 }
 0x9a7   : > { %v5869_v41 = vpop.f32.mrb[60].mxu1  ;;  %5903 = vmatprep.subr.bf16.mxu1 %v3097_v38 }
 0x9a8   : > { %v2854_v45 = vadd.f32 %v5869_v41, %v7544_v24  ;;  %v2845_v59 = vpop.f32.mrb[61].mxu1  ;;  %5904 = vmatpush3.bf16.msra.mxu1 %v3097_v38 }
 0x9a9   : > { %v2846_v13 = vadd.f32 %v7544_v24, %v2845_v59  ;;  %v5870_v10 = vpop.f32.mrb[62].mxu1  ;;  %5905 = vmatprep.subr.bf16.mxu1 %v3098_v11 }
 0x9aa   : > { %v2857_v48 = vadd.f32 %v5870_v10, %v7544_v24  ;;  %v2848_v35 = vpop.f32.mrb[63].mxu1 }
 0x9ab   : > { %v2849_v3 = vadd.f32 %v7544_v24, %v2848_v35 }
 0x9ac   : > { %v3100_v52 = vpack.c.bf16 %v2857_v48, %v2854_v45  ;;  %5906 = vmatpush3.bf16.msra.mxu1 %v3098_v11 }
 0x9ad   : > { %v3099_v58 = vpack.c.bf16 %v2849_v3, %v2846_v13 }
 0x9af   : > { %v5873_v12 = vpop.f32.mrb[64].mxu1  ;;  %5907 = vmatprep.subr.bf16.mxu1 %v3099_v58 }
 0x9b0   : > { %v2870_v57 = vadd.f32 %v5873_v12, %v7544_v24  ;;  %5908 = vmatpush3.bf16.msra.mxu1 %v3099_v58 }
 0x9b1   : > { %5909 = vmatprep.subr.bf16.mxu1 %v3100_v52 }
 0x9b4   : > { %5910 = vmatpush3.bf16.msra.mxu1 %v3100_v52 }
 0xa1d   : > { %v3022_v49 = vpop.xlane.xlu0 %3021 }
 0xa1e   : > { %v3037_v56 = vsub.f32 %v3013_v14, %v3022_v49  ;;  %v2861_v14 = vpop.f32.mrb[65].mxu1 }
 0xa1f   : > { %v3024_v28 = vpop.xlane.xlu1 %3023  ;;  %v5874_v15 = vpop.f32.mrb[66].mxu1 }
 0xa20   : > { %v3045_v8 = vmul.f32 1.442695, %v3037_v56  ;;  %v3038_v9 = vsub.f32 %v3014_v32, %v3024_v28  ;;  %v2862_v32 = vadd.f32 %v7544_v24, %v2861_v14  ;;  %v2864_v62 = vpop.f32.mrb[67].mxu1 }
 0xa21   : > { %v3026_v53 = vpop.xlane.xlu0 %3025  ;;  %v2865_v1 = vadd.f32 %v7544_v24, %v2864_v62 }
 0xa22   : > { %6449 = vpow2.f32 %v3045_v8  ;;  %v3047_v42 = vmul.f32 1.442695, %v3038_v9  ;;  %v3039_v44 = vsub.f32 %v3015_v20, %v3026_v53  ;;  %v2873_v20 = vadd.f32 %v5874_v15, %v7544_v24  ;;  %v6357_v9 = vld [vmem:[%s8051_s9 + $0x20] sm:$0xff]  }
 0xa23   : > { %v3028_v60 = vpop.xlane.xlu1 %3027  ;;  %v3101_v31 = vpack.c.bf16 %v2865_v1, %v2862_v32  ;;  %5927 = vmatprep.subr.bf16.mxu0 %v6357_v9  ;;  %v6342_v1 = vld [vmem:[%s8099_s27 + $0xc8] sm:$0xff]  }
 0xa24   : > { %6451 = vpow2.f32 %v3047_v42  ;;  %v3049_v39 = vmul.f32 1.442695, %v3039_v44  ;;  %v3040_v55 = vsub.f32 %v3016_v0, %v3028_v60  ;;  %v3102_v21 = vpack.c.bf16 %v2873_v20, %v2870_v57  ;;  %5928 = vmatpush3.bf16.msra.mxu0 %v6357_v9 }
 0xa25   : > { %v3030_v29 = vpop.xlane.xlu0 %3029  ;;  %5911 = vmatprep.subr.bf16.mxu1 %v3101_v31 }
 0xa26   : > { %6453 = vpow2.f32 %v3049_v39  ;;  %v3051_v61 = vmul.f32 1.442695, %v3040_v55  ;;  %v3041_v34 = vsub.f32 %v7526_v16, %v3030_v29  ;;  %v5877_v16 = vpop.f32.mrb[68].mxu1  ;;  %5912 = vmatpush3.bf16.msra.mxu1 %v3101_v31 }
 0xa27   : > { %v3032_v63 = vpop.xlane.xlu1 %3031  ;;  %v2886_v11 = vadd.f32 %v5877_v16, %v7544_v24  ;;  %v2877_v38 = vpop.f32.mrb[69].mxu1  ;;  %5913 = vmatprep.subr.bf16.mxu1 %v3102_v21 }
 0xa28   : > { %6455 = vpow2.f32 %v3051_v61  ;;  %v3053_v0 = vmul.f32 1.442695, %v3041_v34  ;;  %v3042_v18 = vsub.f32 %v7530_v19, %v3032_v63  ;;  %v2878_v19 = vadd.f32 %v7544_v24, %v2877_v38  ;;  %v5878_v41 = vpop.f32.mrb[70].mxu1  ;;  %v6347_v38 = vld [vmem:[%s8099_s27 + $0xf0] sm:$0xff]  }
 0xa29   : > { %v3034_v27 = vpop.xlane.xlu0 %3033  ;;  %v2889_v59 = vadd.f32 %v5878_v41, %v7544_v24  ;;  %v2880_v49 = vpop.f32.mrb[71].mxu1  ;;  %v6350_v41 = vld [vmem:[%s8047_s5 + $0xc8] sm:$0xff]  }
 0xa2a   : > { %6457 = vpow2.f32 %v3053_v0  ;;  %v3055_v2 = vmul.f32 1.442695, %v3042_v18  ;;  %v3043_v33 = vsub.f32 %v7533_v30, %v3034_v27  ;;  %v2881_v13 = vadd.f32 %v7544_v24, %v2880_v49  ;;  %5914 = vmatpush3.bf16.msra.mxu1 %v3102_v21  ;;  %v6341_v24 = vld [vmem:[%s8099_s27 + $0xc0] sm:$0xff]   ;;  %v6358_v49 = vld [vmem:[%s8051_s9 + $0x28] sm:$0xff]  }
 0xa2b   : > { %v3036_v4 = vpop.xlane.xlu1 %3035  ;;  %5929 = vmatprep.subr.bf16.mxu0 %v6358_v49 }
 0xa2c   : > { %v6450_v5 = vpop.eup %6449  ;;  %6459 = vpow2.f32 %v3055_v2  ;;  %v3057_v7 = vmul.f32 1.442695, %v3043_v33  ;;  %v3044_v54 = vsub.f32 %v7537_v23, %v3036_v4  ;;  %v3104_v23 = vpack.c.bf16 %v2889_v59, %v2886_v11  ;;  %v6343_v2 = vld [vmem:[%s8099_s27 + $0xd0] sm:$0xff]   ;;  %v6346_v11 = vld [vmem:[%s8099_s27 + $0xe8] sm:$0xff]   ;;  %v6356_v59 = vld [vmem:[%s8047_s5 + $0xf8] sm:$0xff]   ;;  %5930 = vmatpush3.bf16.msra.mxu0 %v6358_v49 }
 0xa2d   : > { %3061 = vadd.xlane.f32.xlu0 %v6450_v5  ;;  %v3103_v56 = vpack.c.bf16 %v2881_v13, %v2878_v19  ;;  %v6349_v19 = vld [vmem:[%s8047_s5 + $0xc0] sm:$0xff]  }
 0xa2e   : > { %v6452_v45 = vpop.eup %6451  ;;  %6461 = vpow2.f32 %v3057_v7  ;;  %v3059_v30 = vmul.f32 1.442695, %v3044_v54  ;;  %v6344_v7 = vld [vmem:[%s8099_s27 + $0xd8] sm:$0xff]   ;;  %v6345_v54 = vld [vmem:[%s8099_s27 + $0xe0] sm:$0xff]  }
 0xa2f   : > { %3063 = vadd.xlane.f32.xlu1 %v6452_v45  ;;  %5915 = vmatprep.subr.bf16.mxu1 %v3103_v56 }
 0xa30   : > { %v6454_v10 = vpop.eup %6453  ;;  %6463 = vpow2.f32 %v3059_v30  ;;  %5916 = vmatpush3.bf16.msra.mxu1 %v3103_v56  ;;  %v6352_v30 = vld [vmem:[%s8047_s5 + $0xd8] sm:$0xff]  }
 0xa31   : > { %3065 = vadd.xlane.f32.xlu0 %v6454_v10  ;;  %5917 = vmatprep.subr.bf16.mxu1 %v3104_v23 }
 0xa32   : > { %v6456_v48 = vpop.eup %6455 }
 0xa33   : > { %3067 = vadd.xlane.f32.xlu1 %v6456_v48 }
 0xa34   : > { %v6458_v35 = vpop.eup %6457  ;;  %5918 = vmatpush3.bf16.msra.mxu1 %v3104_v23 }
 0xa35   : > { %3069 = vadd.xlane.f32.xlu0 %v6458_v35  ;;  %5939 = vmatprep.subr.bf16.mxu1 %v6341_v24 }
 0xa36   : > { %v6460_v28 = vpop.eup %6459 }
 0xa37   : > { %3071 = vadd.xlane.f32.xlu1 %v6460_v28 }
 0xa38   : > { %v6462_v3 = vpop.eup %6461 }
 0xa39   : > { %3073 = vadd.xlane.f32.xlu0 %v6462_v3 }
 0xa3a   : > { %v6464_v8 = vpop.eup %6463 }
 0xa3b   : > { %3075 = vadd.xlane.f32.xlu1 %v6464_v8 }
 0xaba   : > { %v3062_v52 = vpop.xlane.xlu0 %3061 }
 0xabb   : > { %6465 = vrcp.f32 %v3062_v52 }
 0xabc   : > { %v3064_v53 = vpop.xlane.xlu1 %3063 }
 0xabd   : > { %6467 = vrcp.f32 %v3064_v53  ;;  %v5070_v53 = vld [vmem:[%s8046_s4 + $0x3] ss:$0 sm:$0xff] }
 0xabe   : > { %v3066_v58 = vpop.xlane.xlu0 %3065 }
 0xabf   : > { %6469 = vrcp.f32 %v3066_v58 }
 0xac0   : > { %v3068_v42 = vpop.xlane.xlu1 %3067 }
 0xac1   : > { %6471 = vrcp.f32 %v3068_v42 }
 0xac2   : > { %v3070_v44 = vpop.xlane.xlu0 %3069 }
 0xac3   : > { %6473 = vrcp.f32 %v3070_v44 }
 0xac4   : > { %v3072_v60 = vpop.xlane.xlu1 %3071 }
 0xac5   : > { %v6466_v12 = vpop.eup %6465  ;;  %6475 = vrcp.f32 %v3072_v60 }
 0xac6   : > { %v3074_v39 = vpop.xlane.xlu0 %3073  ;;  %v3085_v14 = vmul.f32 %v6466_v12, %v6450_v5 }
 0xac7   : > { %v6468_v55 = vpop.eup %6467  ;;  %6477 = vrcp.f32 %v3074_v39 }
 0xac8   : > { %v3076_v57 = vpop.xlane.xlu1 %3075  ;;  %v3086_v29 = vmul.f32 %v6468_v55, %v6452_v45  ;;  %v6351_v45 = vld [vmem:[%s8047_s5 + $0xd0] sm:$0xff]  }
 0xac9   : > { %v6470_v32 = vpop.eup %6469  ;;  %6479 = vrcp.f32 %v3076_v57 }
 0xaca   : > { %v3093_v15 = vpack.c.bf16 %v3086_v29, %v3085_v14  ;;  %v3087_v34 = vmul.f32 %v6470_v32, %v6454_v10 }
 0xacb   : > { %v6472_v61 = vpop.eup %6471 }
 0xacc   : > { %v3088_v20 = vmul.f32 %v6472_v61, %v6456_v48  ;;  %5919 = vmatprep.mubr.bf16.mxu1 %v3093_v15 }
 0xacd   : > { %v6474_v62 = vpop.eup %6473 }
 0xace   : > { %v3094_v63 = vpack.c.bf16 %v3088_v20, %v3087_v34  ;;  %v3089_v18 = vmul.f32 %v6474_v62, %v6458_v35 }
 0xacf   : > { %v6476_v0 = vpop.eup %6475 }
 0xad0   : > { %5920 = vmatmul.mubr.bf16.vlgmr.msra.gmra.mrb[72].mxu1 %v3094_v63  ;;  %v3090_v21 = vmul.f32 %v6476_v0, %v6460_v28 }
 0xad1   : > { %v6478_v27 = vpop.eup %6477  ;;  %5940 = vmatpush3.bf16.msra.mxu1 %v6341_v24 }
 0xad2   : > { %5941 = vmatprep.subr.bf16.mxu1 %v6342_v1  ;;  %v3095_v31 = vpack.c.bf16 %v3090_v21, %v3089_v18  ;;  %v3091_v4 = vmul.f32 %v6478_v27, %v6462_v3  ;;  %v5096_v21 = vld [vmem:[%s8048_s6 + $0x3] ss:$0 sm:$0xff] }
 0xad3   : > { %v6480_v33 = vpop.eup %6479 }
 0xad4   : > { %5923 = vmatprep.mubr.bf16.mxu1 %v3095_v31  ;;  %v3092_v16 = vmul.f32 %v6480_v33, %v6464_v8 }
 0xad5   : > { %5942 = vmatpush3.bf16.msra.mxu1 %v6342_v1 }
 0xad6   : > { %5943 = vmatprep.subr.bf16.mxu1 %v6343_v2  ;;  %v3096_v5 = vpack.c.bf16 %v3092_v16, %v3091_v4 }
 0xad8   : > { %5924 = vmatmul.mubr.bf16.gmra.mrb[76].mxu1 %v3096_v5 }
 0xad9   : > { %5944 = vmatpush3.bf16.msra.mxu1 %v6343_v2  ;;  %5955 = vmatprep.mubr.bf16.mxu1 %v6888_v17  ;;  %v6348_v17 = vld [vmem:[%s8099_s27 + $0xf8] sm:$0xff]  }
 0xada   : > { %5945 = vmatprep.subr.bf16.mxu1 %v6344_v7 }
 0xadd   : > { %5946 = vmatpush3.bf16.msra.mxu1 %v6344_v7 }
 0xade   : > { %5947 = vmatprep.subr.bf16.mxu1 %v6345_v54 }
 0xae1   : > { %5948 = vmatpush3.bf16.msra.mxu1 %v6345_v54 }
 0xae2   : > { %5949 = vmatprep.subr.bf16.mxu1 %v6346_v11 }
 0xae5   : > { %5950 = vmatpush3.bf16.msra.mxu1 %v6346_v11 }
 0xae6   : > { %5951 = vmatprep.subr.bf16.mxu1 %v6347_v38 }
 0xae9   : > { %5952 = vmatpush3.bf16.msra.mxu1 %v6347_v38 }
 0xaea   : > { %5953 = vmatprep.subr.bf16.mxu1 %v6348_v17 }
 0xaed   : > { %5954 = vmatpush3.bf16.msra.mxu1 %v6348_v17 }
 0xaee   : > { %5963 = vmatprep.subr.bf16.mxu1 %v6349_v19 }
 0xaf0   : > { %5956 = vmatmul.mubr.bf16.vlgmr.msra.gmra.mrb[80].mxu1 %v6927_v40  ;;  %v6353_v40 = vld [vmem:[%s8047_s5 + $0xe0] sm:$0xff]  }
 0xaf1   : > { %5964 = vmatpush3.bf16.msra.mxu1 %v6349_v19  ;;  %5959 = vmatprep.mubr.bf16.mxu1 %v6932_v43  ;;  %v6354_v43 = vld [vmem:[%s8047_s5 + $0xe8] sm:$0xff]  }
 0xaf2   : > { %5965 = vmatprep.subr.bf16.mxu1 %v6350_v41 }
 0xaf5   : > { %5966 = vmatpush3.bf16.msra.mxu1 %v6350_v41 }
 0xaf6   : > { %5967 = vmatprep.subr.bf16.mxu1 %v6351_v45 }
 0xaf8   : > { %5960 = vmatmul.mubr.bf16.gmra.mrb[84].mxu1 %v6945_v50  ;;  %v6355_v50 = vld [vmem:[%s8047_s5 + $0xf0] sm:$0xff]  }
 0xaf9   : > { %5968 = vmatpush3.bf16.msra.mxu1 %v6351_v45  ;;  %5979 = vmatprep.mubr.bf16.mxu1 %v6853_v6 }
 0xafa   : > { %5969 = vmatprep.subr.bf16.mxu1 %v6352_v30 }
 0xafd   : > { %5970 = vmatpush3.bf16.msra.mxu1 %v6352_v30 }
 0xafe   : > { %5971 = vmatprep.subr.bf16.mxu1 %v6353_v40 }
 0xb01   : > { %5972 = vmatpush3.bf16.msra.mxu1 %v6353_v40 }
 0xb02   : > { %5973 = vmatprep.subr.bf16.mxu1 %v6354_v43 }
 0xb05   : > { %5974 = vmatpush3.bf16.msra.mxu1 %v6354_v43 }
 0xb06   : > { %5975 = vmatprep.subr.bf16.mxu1 %v6355_v50 }
 0xb09   : > { %5976 = vmatpush3.bf16.msra.mxu1 %v6355_v50 }
 0xb0a   : > { %5977 = vmatprep.subr.bf16.mxu1 %v6356_v59 }
 0xb0d   : > { %5978 = vmatpush3.bf16.msra.mxu1 %v6356_v59 }
 0xb10   : > { %5980 = vmatmul.mubr.bf16.vlgmr.msra.gmra.mrb[88].mxu1 %v6904_v25 }
 0xb11   : > { %5983 = vmatprep.mubr.bf16.mxu1 %v6906_v26 }
 0xb18   : > { %5984 = vmatmul.mubr.bf16.gmra.mrb[92].mxu1 %v6921_v36 }
 0xb19   : > { %5987 = vmatprep.mubr.bf16.mxu1 %v6923_v37 }
 0xb20   : > { %5988 = vmatmul.mubr.bf16.gmra.mrb[96].mxu1 %v6938_v46 }
 0xb21   : > { %5991 = vmatprep.mubr.bf16.mxu1 %v6941_v47 }
 0xb28   : > { %5992 = vmatmul.mubr.bf16.gmra.mrb[100].mxu1 %v6950_v51 }
 0xba3   : > { %v5921_v13 = vpop.f32.mrb[72].mxu1 }
 0xba4   : > { %v3139_v10 = vpop.f32.mrb[73].mxu1 }
 0xba5   : > { %v5922_v23 = vpop.f32.mrb[74].mxu1 }
 0xba6   : > { %v3171_v56 = vpack.c.bf16 %v5922_v23, %v5921_v13  ;;  %v3142_v48 = vpop.f32.mrb[75].mxu1 }
 0xba7   : > { %v3170_v35 = vpack.c.bf16 %v3142_v48, %v3139_v10 }
 0xba9   : > { %5931 = vmatprep.mubr.msk.bf16.mxu0 %vm1190_vm0, %v3170_v35 }
 0xbaa   : > { %5932 = vmatmul.mubr.msk.bf16.vlgmr.msra.gmra.mrb[64].mxu0 %vm1190_vm0, %v3171_v56 }
 0xbab   : > { %v5925_v28 = vpop.f32.mrb[76].mxu1 }
 0xbac   : > { %v3155_v3 = vpop.f32.mrb[77].mxu1 }
 0xbad   : > { %v5926_v8 = vpop.f32.mrb[78].mxu1 }
 0xbae   : > { %v3173_v24 = vpack.c.bf16 %v5926_v8, %v5925_v28  ;;  %v3158_v9 = vpop.f32.mrb[79].mxu1 }
 0xbaf   : > { %v3172_v52 = vpack.c.bf16 %v3158_v9, %v3155_v3 }
 0xbb1   : > { %5935 = vmatprep.mubr.msk.bf16.mxu0 %vm1190_vm0, %v3172_v52 }
 0xbb2   : > { %5936 = vmatmul.mubr.msk.bf16.gmra.mrb[68].mxu0 %vm1190_vm0, %v3173_v24 }
 0xbb3   : > { %6011 = vmatprep.mubr.bf16.mxu0 %v6853_v6 }
 0xbc3   : > { %v5957_v58 = vpop.f32.mrb[80].mxu1 }
 0xbc4   : > { %v7640_v42 = vadd.f32 %v5957_v58, %v5070_v53  ;;  %v3383_v44 = vpop.f32.mrb[81].mxu1 }
 0xbc5   : > { %v5958_v60 = vpop.f32.mrb[82].mxu1  ;;  %v3384_v55 = vadd.f32 %v5070_v53, %v3383_v44 }
 0xbc6   : > { %v7642_v12 = vadd.f32 %v5958_v60, %v5070_v53  ;;  %v3386_v39 = vpop.f32.mrb[83].mxu1 }
 0xbc7   : > { %v3387_v57 = vadd.f32 %v5070_v53, %v3386_v39 }
 0xbc8   : > { %v3755_v14 = vpack.c.bf16 %v7642_v12, %v7640_v42  ;;  %v6360_v42 = vld [vmem:[%s8049_s7 + $0xc8] sm:$0xff]   ;;  %v6361_v12 = vld [vmem:[%s8049_s7 + $0xd0] sm:$0xff]  }
 0xbc9   : > { %v3754_v29 = vpack.c.bf16 %v3387_v57, %v3384_v55 }
 0xbcb   : > { %6043 = vmatprep.mubr.msk.bf16.mxu1 %vm1190_vm0, %v3754_v29  ;;  %v5961_v6 = vpop.f32.mrb[84].mxu1 }
 0xbcc   : > { %v7647_v32 = vadd.f32 %v5961_v6, %v5070_v53  ;;  %v3399_v15 = vpop.f32.mrb[85].mxu1 }
 0xbcd   : > { %v7649_v61 = vadd.f32 %v5070_v53, %v3399_v15  ;;  %v5962_v34 = vpop.f32.mrb[86].mxu1 }
 0xbce   : > { %v7651_v20 = vadd.f32 %v5962_v34, %v5070_v53  ;;  %v3402_v62 = vpop.f32.mrb[87].mxu1 }
 0xbcf   : > { %v7653_v63 = vadd.f32 %v5070_v53, %v3402_v62 }
 0xbd0   : > { %v3757_v1 = vpack.c.bf16 %v7651_v20, %v7647_v32  ;;  %v6363_v32 = vld [vmem:[%s8049_s7 + $0xe0] sm:$0xff]   ;;  %v6365_v20 = vld [vmem:[%s8049_s7 + $0xf0] sm:$0xff]  }
 0xbd1   : > { %v3756_v0 = vpack.c.bf16 %v7653_v63, %v7649_v61  ;;  %v6364_v61 = vld [vmem:[%s8049_s7 + $0xe8] sm:$0xff]   ;;  %v6366_v63 = vld [vmem:[%s8049_s7 + $0xf8] sm:$0xff]  }
 0xbe3   : > { %v5981_v18 = vpop.f32.mrb[88].mxu1 }
 0xbe4   : > { %v3521_v27 = vpop.f32.mrb[89].mxu1  ;;  %v3530_v2 = vadd.f32 %v5981_v18, %v5096_v21 }
 0xbe5   : > { %v5982_v31 = vpop.f32.mrb[90].mxu1  ;;  %v3522_v16 = vadd.f32 %v5096_v21, %v3521_v27  ;;  %v6359_v27 = vld [vmem:[%s8049_s7 + $0xc0] sm:$0xff]  }
 0xbe6   : > { %v3533_v33 = vadd.f32 %v5982_v31, %v5096_v21  ;;  %v3524_v4 = vpop.f32.mrb[91].mxu1  ;;  %5995 = vmatprep.subr.bf16.mxu0 %v6359_v27 }
 0xbe7   : > { %v3525_v5 = vadd.f32 %v5096_v21, %v3524_v4  ;;  %5996 = vmatpush3.bf16.msra.mxu0 %v6359_v27 }
 0xbe8   : > { %v3759_v7 = vpack.c.bf16 %v3533_v33, %v3530_v2  ;;  %5997 = vmatprep.subr.bf16.mxu0 %v6360_v42 }
 0xbe9   : > { %v3758_v54 = vpack.c.bf16 %v3525_v5, %v3522_v16 }
 0xbea   : > { %v3782_v49 = vsel %vm1190_vm0, %v3759_v7, 0 }
 0xbeb   : > { %6183 = vmatprep.subr.msk.bf16.mxu1 %vm1190_vm0, %v3758_v54  ;;  %v3779_v11 = vsel %vm1190_vm0, %v3758_v54, 0  ;;  %v5985_v38 = vpop.f32.mrb[92].mxu1  ;;  %5998 = vmatpush3.bf16.msra.mxu0 %v6360_v42 }
 0xbec   : > { %6028 = vmatpush3.bf16.xpose.msra.mxu1 %v3779_v11  ;;  %v3546_v17 = vadd.f32 %v5985_v38, %v5096_v21  ;;  %v3537_v19 = vpop.f32.mrb[93].mxu1  ;;  %5999 = vmatprep.subr.bf16.mxu0 %v6361_v12 }
 0xbed   : > { %6184 = vmatprep.subr.msk.bf16.mxu1 %vm1190_vm0, %v3759_v7  ;;  %v3538_v41 = vadd.f32 %v5096_v21, %v3537_v19  ;;  %v5986_v45 = vpop.f32.mrb[94].mxu1 }
 0xbee   : > { %v3549_v30 = vadd.f32 %v5986_v45, %v5096_v21  ;;  %v3540_v40 = vpop.f32.mrb[95].mxu1 }
 0xbef   : > { %v3541_v43 = vadd.f32 %v5096_v21, %v3540_v40  ;;  %6000 = vmatpush3.bf16.msra.mxu0 %v6361_v12  ;;  %v7744_v40 = vld [vmem:[%s8050_s8 + $0x3] ss:$0 sm:$0xff] }
 0xbf0   : > { %v3761_v50 = vpack.c.bf16 %v3549_v30, %v3546_v17 }
 0xbf1   : > { %v3760_v59 = vpack.c.bf16 %v3541_v43, %v3538_v41 }
 0xbf2   : > { %v3788_v15 = vsel %vm1190_vm0, %v3761_v50, 0 }
 0xbf3   : > { %v5989_v13 = vpop.f32.mrb[96].mxu1  ;;  %v3785_v9 = vsel %vm1190_vm0, %v3760_v59, 0 }
 0xbf4   : > { %6030 = vmatpush3.bf16.xpose.msra.mxu1 %v3782_v49  ;;  %v3562_v10 = vadd.f32 %v5989_v13, %v5096_v21  ;;  %v3553_v23 = vpop.f32.mrb[97].mxu1 }
 0xbf5   : > { %6185 = vmatprep.subr.msk.bf16.mxu1 %vm1190_vm0, %v3760_v59  ;;  %v3554_v56 = vadd.f32 %v5096_v21, %v3553_v23  ;;  %v5990_v48 = vpop.f32.mrb[98].mxu1 }
 0xbf6   : > { %v3565_v35 = vadd.f32 %v5990_v48, %v5096_v21  ;;  %v3556_v28 = vpop.f32.mrb[99].mxu1 }
 0xbf7   : > { %v3557_v3 = vadd.f32 %v5096_v21, %v3556_v28 }
 0xbf8   : > { %v3763_v8 = vpack.c.bf16 %v3565_v35, %v3562_v10 }
 0xbf9   : > { %v3762_v24 = vpack.c.bf16 %v3557_v3, %v3554_v56 }
 0xbfa   : > { %v3794_v62 = vsel %vm1190_vm0, %v3763_v8, 0 }
 0xbfb   : > { %v5993_v52 = vpop.f32.mrb[100].mxu1  ;;  %v3791_v34 = vsel %vm1190_vm0, %v3762_v24, 0 }
 0xbfc   : > { %6032 = vmatpush3.bf16.xpose.msra.mxu1 %v3785_v9  ;;  %v3578_v53 = vadd.f32 %v5993_v52, %v5096_v21  ;;  %v3569_v58 = vpop.f32.mrb[101].mxu1 }
 0xbfd   : > { %6186 = vmatprep.subr.msk.bf16.mxu1 %vm1190_vm0, %v3761_v50  ;;  %v3570_v44 = vadd.f32 %v5096_v21, %v3569_v58  ;;  %v5994_v60 = vpop.f32.mrb[102].mxu1 }
 0xbfe   : > { %v3581_v39 = vadd.f32 %v5994_v60, %v5096_v21  ;;  %v3572_v55 = vpop.f32.mrb[103].mxu1 }
 0xbff   : > { %v3573_v57 = vadd.f32 %v5096_v21, %v3572_v55 }
 0xc00   : > { %v3765_v29 = vpack.c.bf16 %v3581_v39, %v3578_v53 }
 0xc01   : > { %v3764_v6 = vpack.c.bf16 %v3573_v57, %v3570_v44 }
 0xc02   : > { %v3800_v21 = vsel %vm1190_vm0, %v3765_v29, 0 }
 0xc03   : > { %v3797_v18 = vsel %vm1190_vm0, %v3764_v6, 0 }
 0xc04   : > { %6034 = vmatpush3.bf16.xpose.msra.mxu1 %v3788_v15 }
 0xc05   : > { %6187 = vmatprep.subr.msk.bf16.mxu1 %vm1190_vm0, %v3762_v24 }
 0xc0c   : > { %6036 = vmatpush3.bf16.xpose.msra.mxu1 %v3791_v34 }
 0xc0d   : > { %6188 = vmatprep.subr.msk.bf16.mxu1 %vm1190_vm0, %v3763_v8 }
 0xc14   : > { %6038 = vmatpush3.bf16.xpose.msra.mxu1 %v3794_v62 }
 0xc15   : > { %6189 = vmatprep.subr.msk.bf16.mxu1 %vm1190_vm0, %v3764_v6 }
 0xc1c   : > { %6040 = vmatpush3.bf16.xpose.msra.mxu1 %v3797_v18 }
 0xc1d   : > { %6190 = vmatprep.subr.msk.bf16.mxu1 %vm1190_vm0, %v3765_v29 }
 0xc24   : > { %6042 = vmatpush3.bf16.xpose.msra.mxu1 %v3800_v21 }
 0xc2b   : > { %6044 = vmatmul.mubr.msk.bf16.vlgmr.msra.gmra.mrb[104].mxu1 %vm1190_vm0, %v3755_v14  ;;  %v6362_v14 = vld [vmem:[%s8049_s7 + $0xd8] sm:$0xff]  }
 0xc2c   : > { %6047 = vmatprep.mubr.msk.bf16.mxu1 %vm1190_vm0, %v3756_v0  ;;  %6001 = vmatprep.subr.bf16.mxu0 %v6362_v14 }
 0xc2d   : > { %6002 = vmatpush3.bf16.msra.mxu0 %v6362_v14 }
 0xc2e   : > { %6003 = vmatprep.subr.bf16.mxu0 %v6363_v32 }
 0xc31   : > { %6004 = vmatpush3.bf16.msra.mxu0 %v6363_v32 }
 0xc32   : > { %6005 = vmatprep.subr.bf16.mxu0 %v6364_v61 }
 0xc33   : > { %6048 = vmatmul.mubr.msk.bf16.gmra.mrb[108].mxu1 %vm1190_vm0, %v3757_v1 }
 0xc35   : > { %6006 = vmatpush3.bf16.msra.mxu0 %v6364_v61 }
 0xc36   : > { %6007 = vmatprep.subr.bf16.mxu0 %v6365_v20 }
 0xc39   : > { %6008 = vmatpush3.bf16.msra.mxu0 %v6365_v20 }
 0xc3a   : > { %6009 = vmatprep.subr.bf16.mxu0 %v6366_v63 }
 0xc3d   : > { %6010 = vmatpush3.bf16.msra.mxu0 %v6366_v63 }
 0xc40   : > { %6012 = vmatmul.mubr.bf16.vlgmr.msra.gmra.mrb[96].mxu0 %v6904_v25 }
 0xc41   : > { %6015 = vmatprep.mubr.bf16.mxu0 %v6906_v26 }
 0xc48   : > { %6016 = vmatmul.mubr.bf16.gmra.mrb[100].mxu0 %v6921_v36 }
 0xc49   : > { %6019 = vmatprep.mubr.bf16.mxu0 %v6923_v37 }
 0xc50   : > { %6020 = vmatmul.mubr.bf16.gmra.mrb[104].mxu0 %v6938_v46 }
 0xc51   : > { %6023 = vmatprep.mubr.bf16.mxu0 %v6941_v47 }
 0xc58   : > { %6024 = vmatmul.mubr.bf16.gmra.mrb[108].mxu0 %v6950_v51 }
 0xcfe   : > { %v6045_v1 = vpop.f32.mrb[104].mxu1 }
 0xcff   : > { %v3836_v0 = vpop.f32.mrb[105].mxu1  ;;  %v3869_v4 = vmul.f32 0.17677669, %v6045_v1 }
 0xd00   : > { %v3867_v31 = vmul.f32 0.17677669, %v3836_v0  ;;  %v6046_v2 = vpop.f32.mrb[106].mxu1 }
 0xd01   : > { %v3839_v33 = vpop.f32.mrb[107].mxu1  ;;  %v3870_v26 = vmul.f32 0.17677669, %v6046_v2  ;;  %v3877_v46 = vadd.f32 %v3869_v4, %v7037_v22 }
 0xd02   : > { %v3868_v16 = vmul.f32 0.17677669, %v3839_v33  ;;  %v3875_v25 = vadd.f32 %v3867_v31, %v7037_v22 }
 0xd03   : > { %v3878_v7 = vadd.f32 %v3870_v26, %v7037_v22 }
 0xd04   : > { %3883 = vmax.xlane.f32.xlu0 %v3875_v25  ;;  %v3876_v36 = vadd.f32 %v3868_v16, %v7037_v22 }
 0xd06   : > { %3885 = vmax.xlane.f32.xlu1 %v3876_v36  ;;  %v6049_v37 = vpop.f32.mrb[108].mxu1 }
 0xd07   : > { %v3852_v47 = vpop.f32.mrb[109].mxu1  ;;  %v3873_v11 = vmul.f32 0.17677669, %v6049_v37 }
 0xd08   : > { %v3871_v5 = vmul.f32 0.17677669, %v3852_v47  ;;  %3887 = vmax.xlane.f32.xlu0 %v3877_v46  ;;  %v6050_v51 = vpop.f32.mrb[110].mxu1 }
 0xd09   : > { %v3855_v54 = vpop.f32.mrb[111].mxu1  ;;  %v3874_v19 = vmul.f32 0.17677669, %v6050_v51  ;;  %v7734_v45 = vadd.f32 %v3873_v11, %v7037_v22 }
 0xd0a   : > { %v3872_v38 = vmul.f32 0.17677669, %v3855_v54  ;;  %3889 = vmax.xlane.f32.xlu1 %v3878_v7  ;;  %v7726_v17 = vadd.f32 %v3871_v5, %v7037_v22 }
 0xd0b   : > { %v7738_v30 = vadd.f32 %v3874_v19, %v7037_v22 }
 0xd0c   : > { %3891 = vmax.xlane.f32.xlu0 %v7726_v17  ;;  %v7730_v41 = vadd.f32 %v3872_v38, %v7037_v22 }
 0xd0e   : > { %3893 = vmax.xlane.f32.xlu1 %v7730_v41 }
 0xd10   : > { %3895 = vmax.xlane.f32.xlu0 %v7734_v45 }
 0xd12   : > { %3897 = vmax.xlane.f32.xlu1 %v7738_v30 }
 0xd13   : > { %v6013_v43 = vpop.f32.mrb[96].mxu0 }
 0xd14   : > { %v3700_v50 = vadd.f32 %v6013_v43, %v7744_v40  ;;  %v3691_v59 = vpop.f32.mrb[97].mxu0 }
 0xd15   : > { %v3692_v49 = vadd.f32 %v7744_v40, %v3691_v59  ;;  %v6014_v13 = vpop.f32.mrb[98].mxu0 }
 0xd16   : > { %v3703_v10 = vadd.f32 %v6014_v13, %v7744_v40  ;;  %v3694_v23 = vpop.f32.mrb[99].mxu0 }
 0xd17   : > { %v3695_v22 = vadd.f32 %v7744_v40, %v3694_v23 }
 0xd18   : > { %v3960_v56 = vpack.c.bf16 %v3703_v10, %v3700_v50 }
 0xd19   : > { %v3959_v48 = vpack.c.bf16 %v3695_v22, %v3692_v49 }
 0xd1b   : > { %v6017_v35 = vpop.f32.mrb[100].mxu0  ;;  %6051 = vmatprep.subr.bf16.mxu0 %v3959_v48 }
 0xd1c   : > { %v3716_v28 = vadd.f32 %v6017_v35, %v7744_v40  ;;  %v3707_v3 = vpop.f32.mrb[101].mxu0  ;;  %6052 = vmatpush3.bf16.msra.mxu0 %v3959_v48  ;;  %v6367_v48 = vld [vmem:[%s8051_s9 + $0x30] sm:$0xff]  }
 0xd1d   : > { %v3708_v24 = vadd.f32 %v7744_v40, %v3707_v3  ;;  %v6018_v9 = vpop.f32.mrb[102].mxu0  ;;  %6053 = vmatprep.subr.bf16.mxu0 %v3960_v56 }
 0xd1e   : > { %v3719_v53 = vadd.f32 %v6018_v9, %v7744_v40  ;;  %v3710_v58 = vpop.f32.mrb[103].mxu0 }
 0xd1f   : > { %v3711_v60 = vadd.f32 %v7744_v40, %v3710_v58 }
 0xd20   : > { %v3962_v57 = vpack.c.bf16 %v3719_v53, %v3716_v28  ;;  %6054 = vmatpush3.bf16.msra.mxu0 %v3960_v56 }
 0xd21   : > { %v3961_v6 = vpack.c.bf16 %v3711_v60, %v3708_v24 }
 0xd23   : > { %v6021_v18 = vpop.f32.mrb[104].mxu0  ;;  %6055 = vmatprep.subr.bf16.mxu0 %v3961_v6 }
 0xd24   : > { %v3732_v42 = vadd.f32 %v6021_v18, %v7744_v40  ;;  %v3723_v12 = vpop.f32.mrb[105].mxu0  ;;  %6056 = vmatpush3.bf16.msra.mxu0 %v3961_v6 }
 0xd25   : > { %v3724_v32 = vadd.f32 %v7744_v40, %v3723_v12  ;;  %v6022_v61 = vpop.f32.mrb[106].mxu0  ;;  %6057 = vmatprep.subr.bf16.mxu0 %v3962_v57 }
 0xd26   : > { %v3735_v1 = vadd.f32 %v6022_v61, %v7744_v40  ;;  %v3726_v0 = vpop.f32.mrb[107].mxu0 }
 0xd27   : > { %v3727_v2 = vadd.f32 %v7744_v40, %v3726_v0 }
 0xd28   : > { %v3964_v16 = vpack.c.bf16 %v3735_v1, %v3732_v42  ;;  %6058 = vmatpush3.bf16.msra.mxu0 %v3962_v57 }
 0xd29   : > { %v3963_v26 = vpack.c.bf16 %v3727_v2, %v3724_v32 }
 0xd2b   : > { %v6025_v47 = vpop.f32.mrb[108].mxu0  ;;  %6059 = vmatprep.subr.bf16.mxu0 %v3963_v26 }
 0xd2c   : > { %v3748_v54 = vadd.f32 %v6025_v47, %v7744_v40  ;;  %v3739_v11 = vpop.f32.mrb[109].mxu0  ;;  %6060 = vmatpush3.bf16.msra.mxu0 %v3963_v26 }
 0xd2d   : > { %v6026_v38 = vpop.f32.mrb[110].mxu0  ;;  %6061 = vmatprep.subr.bf16.mxu0 %v3964_v16  ;;  %v3740_v10 = vadd.f32 %v7744_v40, %v3739_v11 }
 0xd2e   : > { %v3742_v23 = vpop.f32.mrb[111].mxu0 }
 0xd2f   : > { %v3743_v22 = vadd.f32 %v7744_v40, %v3742_v23  ;;  %v6548_v23 = vld [vmem:[%s6875_s22 + $0x18] sm:$0xff] }
 0xd30   : > { %6062 = vmatpush3.bf16.msra.mxu0 %v3964_v16 }
 0xd31   : > { %v3965_v56 = vpack.c.bf16 %v3743_v22, %v3740_v10 }
 0xd33   : > { %6063 = vmatprep.subr.bf16.mxu0 %v3965_v56 }
 0xd34   : > { %6064 = vmatpush3.bf16.msra.mxu0 %v3965_v56 }
 0xd91   : > { %v3884_v8 = vpop.xlane.xlu0 %3883 }
 0xd92   : > { %v3899_v52 = vsub.f32 %v3875_v25, %v3884_v8 }
 0xd93   : > { %v3886_v44 = vpop.xlane.xlu1 %3885 }
 0xd94   : > { %v3907_v39 = vmul.f32 1.442695, %v3899_v52  ;;  %v3900_v55 = vsub.f32 %v3876_v36, %v3886_v44 }
 0xd95   : > { %v3888_v29 = vpop.xlane.xlu0 %3887 }
 0xd96   : > { %6481 = vpow2.f32 %v3907_v39  ;;  %v3909_v15 = vmul.f32 1.442695, %v3900_v55  ;;  %v3901_v34 = vsub.f32 %v3877_v46, %v3888_v29 }
 0xd97   : > { %v3890_v62 = vpop.xlane.xlu1 %3889 }
 0xd98   : > { %6483 = vpow2.f32 %v3909_v15  ;;  %v3911_v21 = vmul.f32 1.442695, %v3901_v34  ;;  %v3902_v27 = vsub.f32 %v3878_v7, %v3890_v62  ;;  %v6368_v62 = vld [vmem:[%s8051_s9 + $0x38] sm:$0xff]  }
 0xd99   : > { %v3892_v14 = vpop.xlane.xlu0 %3891 }
 0xd9a   : > { %6485 = vpow2.f32 %v3911_v21  ;;  %v3913_v20 = vmul.f32 1.442695, %v3902_v27  ;;  %v3903_v63 = vsub.f32 %v7726_v17, %v3892_v14 }
 0xd9b   : > { %v3894_v31 = vpop.xlane.xlu1 %3893 }
 0xd9c   : > { %6487 = vpow2.f32 %v3913_v20  ;;  %v3915_v33 = vmul.f32 1.442695, %v3903_v63  ;;  %v3904_v4 = vsub.f32 %v7730_v41, %v3894_v31  ;;  %v3751_v41 = vadd.f32 %v6026_v38, %v7744_v40 }
 0xd9d   : > { %v3896_v25 = vpop.xlane.xlu0 %3895 }
 0xd9e   : > { %6489 = vpow2.f32 %v3915_v33  ;;  %v3917_v36 = vmul.f32 1.442695, %v3904_v4  ;;  %v3905_v37 = vsub.f32 %v7734_v45, %v3896_v25  ;;  %v3966_v43 = vpack.c.bf16 %v3751_v41, %v3748_v54 }
 0xd9f   : > { %v3898_v46 = vpop.xlane.xlu1 %3897 }
 0xda0   : > { %v6482_v5 = vpop.eup %6481  ;;  %6491 = vpow2.f32 %v3917_v36  ;;  %v3919_v51 = vmul.f32 1.442695, %v3905_v37  ;;  %v3906_v7 = vsub.f32 %v7738_v30, %v3898_v46  ;;  %6065 = vmatprep.subr.bf16.mxu0 %v3966_v43  ;;  %v5145_v46 = vld [vmem:[%s8052_s10] ss:$0 sm:$0xff] }
 0xda1   : > { %3923 = vadd.xlane.f32.xlu0 %v6482_v5  ;;  %6066 = vmatpush3.bf16.msra.mxu0 %v3966_v43 }
 0xda2   : > { %v6484_v17 = vpop.eup %6483  ;;  %6493 = vpow2.f32 %v3919_v51  ;;  %v3921_v19 = vmul.f32 1.442695, %v3906_v7  ;;  %6075 = vmatprep.subr.bf16.mxu0 %v6367_v48 }
 0xda3   : > { %3925 = vadd.xlane.f32.xlu1 %v6484_v17 }
 0xda4   : > { %v6486_v45 = vpop.eup %6485  ;;  %6495 = vpow2.f32 %v3921_v19 }
 0xda5   : > { %3927 = vadd.xlane.f32.xlu0 %v6486_v45 }
 0xda6   : > { %v6488_v50 = vpop.eup %6487 }
 0xda7   : > { %3929 = vadd.xlane.f32.xlu1 %v6488_v50 }
 0xda8   : > { %v6490_v30 = vpop.eup %6489 }
 0xda9   : > { %3931 = vadd.xlane.f32.xlu0 %v6490_v30 }
 0xdaa   : > { %v6492_v59 = vpop.eup %6491 }
 0xdab   : > { %3933 = vadd.xlane.f32.xlu1 %v6492_v59 }
 0xdac   : > { %v6494_v49 = vpop.eup %6493 }
 0xdad   : > { %3935 = vadd.xlane.f32.xlu0 %v6494_v49 }
 0xdae   : > { %v6496_v13 = vpop.eup %6495 }
 0xdaf   : > { %3937 = vadd.xlane.f32.xlu1 %v6496_v13 }
 0xe2e   : > { %v3924_v35 = vpop.xlane.xlu0 %3923 }
 0xe2f   : > { %6497 = vrcp.f32 %v3924_v35 }
 0xe30   : > { %v3926_v28 = vpop.xlane.xlu1 %3925 }
 0xe31   : > { %6499 = vrcp.f32 %v3926_v28  ;;  %v6549_v28 = vld [vmem:[%s6875_s22 + $0x20] sm:$0xff] }
 0xe32   : > { %v3928_v3 = vpop.xlane.xlu0 %3927 }
 0xe33   : > { %6501 = vrcp.f32 %v3928_v3 }
 0xe34   : > { %v3930_v8 = vpop.xlane.xlu1 %3929 }
 0xe35   : > { %6503 = vrcp.f32 %v3930_v8 }
 0xe36   : > { %v3932_v24 = vpop.xlane.xlu0 %3931 }
 0xe37   : > { %6505 = vrcp.f32 %v3932_v24  ;;  %v6550_v24 = vld [vmem:[%s6875_s22 + $0x28] sm:$0xff] }
 0xe38   : > { %v3934_v40 = vpop.xlane.xlu1 %3933 }
 0xe39   : > { %v6498_v9 = vpop.eup %6497  ;;  %6507 = vrcp.f32 %v3934_v40 }
 0xe3a   : > { %v3936_v52 = vpop.xlane.xlu0 %3935  ;;  %v3947_v44 = vmul.f32 %v6498_v9, %v6482_v5  ;;  %v6551_v9 = vld [vmem:[%s6875_s22 + $0x30] sm:$0xff] }
 0xe3b   : > { %v6500_v53 = vpop.eup %6499  ;;  %6509 = vrcp.f32 %v3936_v52 }
 0xe3c   : > { %v3938_v58 = vpop.xlane.xlu1 %3937  ;;  %v3948_v60 = vmul.f32 %v6500_v53, %v6484_v17  ;;  %v6545_v17 = vld [vmem:[%s6875_s22] sm:$0xff]  ;;  %v6552_v53 = vld [vmem:[%s6875_s22 + $0x38] sm:$0xff] }
 0xe3d   : > { %v6502_v39 = vpop.eup %6501  ;;  %6511 = vrcp.f32 %v3938_v58 }
 0xe3e   : > { %v3955_v55 = vpack.c.bf16 %v3948_v60, %v3947_v44  ;;  %v3949_v29 = vmul.f32 %v6502_v39, %v6486_v45  ;;  %v6546_v45 = vld [vmem:[%s6875_s22 + $0x8] sm:$0xff]  ;;  %v6369_v44 = vld [vmem:[%s8055_s13] sm:$0xff]  }
 0xe3f   : > { %v6504_v57 = vpop.eup %6503 }
 0xe40   : > { %v3950_v6 = vmul.f32 %v6504_v57, %v6488_v50  ;;  %6067 = vmatprep.mubr.bf16.mxu0 %v3955_v55 }
 0xe41   : > { %v6506_v15 = vpop.eup %6505 }
 0xe42   : > { %v3956_v34 = vpack.c.bf16 %v3950_v6, %v3949_v29  ;;  %v3951_v21 = vmul.f32 %v6506_v15, %v6490_v30  ;;  %v6547_v30 = vld [vmem:[%s6875_s22 + $0x10] sm:$0xff]  ;;  %s8103_s22 = sld [smem:[#allocation7_spill]] }
 0xe43   : > { %v6508_v18 = vpop.eup %6507 }
 0xe44   : > { %6068 = vmatmul.mubr.bf16.vlgmr.msra.gmra.mrb[112].mxu0 %v3956_v34  ;;  %v3952_v27 = vmul.f32 %v6508_v18, %v6492_v59 }
 0xe45   : > { %v6510_v42 = vpop.eup %6509  ;;  %6076 = vmatpush3.bf16.msra.mxu0 %v6367_v48 }
 0xe46   : > { %v3957_v12 = vpack.c.bf16 %v3952_v27, %v3951_v21  ;;  %6077 = vmatprep.subr.bf16.mxu0 %v6368_v62  ;;  %v3953_v32 = vmul.f32 %v6510_v42, %v6494_v49 }
 0xe47   : > { %v6512_v14 = vpop.eup %6511 }
 0xe48   : > { %6071 = vmatprep.mubr.bf16.mxu0 %v3957_v12  ;;  %v3954_v61 = vmul.f32 %v6512_v14, %v6496_v13  ;;  %s5170_s24 = sshll.u32 %s8103_s22, 4  ;;  %s6650_s22 = smov [#allocation2]  }
 0xe49   : > { %6078 = vmatpush3.bf16.msra.mxu0 %v6368_v62  ;;  %s4715_s2 = sadd.s32 %s5170_s24, %s8104_s29  ;;  %s6557_s29 = sshll.u32 %s6650_s22, 4  ;;  %s6558_s29 = int_to_ptr.vmem [resolvable:$false] %s6557_s29 }
 0xe4a   : > { %v3958_v20 = vpack.c.bf16 %v3954_v61, %v3953_v32  ;;  %6087 = vmatprep.subr.bf16.mxu0 %v6369_v44  ;;  %s5171_s1 = sshll.u32 %s4715_s2, 7  ;;  %s6559_s24 = scalar_lea.vmem %s6558_s29, 2048 }
 0xe4b   : > { %s7981_s19 = scalar_lea.hbm %s8106_s18, %s5171_s1  ;;  %p6560_p4 = scmp.lt.s32.totalorder %s7984_s25, %s6558_s29 }
 0xe4c   : > { %6072 = vmatmul.mubr.bf16.gmra.mrb[116].mxu0 %v3958_v20 }
 0xf17   : > { %v6069_v63 = vpop.f32.mrb[112].mxu0 }
 0xf18   : > { %v4001_v1 = vpop.f32.mrb[113].mxu0 }
 0xf19   : > { %v6070_v0 = vpop.f32.mrb[114].mxu0 }
 0xf1a   : > { %v4033_v31 = vpack.c.bf16 %v6070_v0, %v6069_v63  ;;  %v4004_v2 = vpop.f32.mrb[115].mxu0 }
 0xf1b   : > { %v4032_v33 = vpack.c.bf16 %v4004_v2, %v4001_v1 }
 0xf1d   : > { %6079 = vmatprep.mubr.msk.bf16.mxu0 %vm1190_vm0, %v4032_v33 }
 0xf1e   : > { %6080 = vmatmul.mubr.msk.bf16.vlgmr.msra.gmra.mrb[64].mxu0 %vm1190_vm0, %v4033_v31 }
 0xf1f   : > { %v6073_v4 = vpop.f32.mrb[116].mxu0  ;;  %6088 = vmatpush3.bf16.msra.mxu0 %v6369_v44 }
 0xf20   : > { %v4017_v16 = vpop.f32.mrb[117].mxu0 }
 0xf21   : > { %v6074_v25 = vpop.f32.mrb[118].mxu0 }
 0xf22   : > { %v4035_v26 = vpack.c.bf16 %v6074_v25, %v6073_v4  ;;  %v4020_v36 = vpop.f32.mrb[119].mxu0 }
 0xf23   : > { %v4034_v37 = vpack.c.bf16 %v4020_v36, %v4017_v16 }
 0xf25   : > { %6083 = vmatprep.mubr.msk.bf16.mxu0 %vm1190_vm0, %v4034_v37 }
 0xf26   : > { %6084 = vmatmul.mubr.msk.bf16.gmra.mrb[68].mxu0 %vm1190_vm0, %v4035_v26 }
 0xff1   : > { %v6081_v47 = vpop.f32.mrb[64].mxu0 }
 0xff2   : > { %v4099_v5 = vpop.f32.mrb[65].mxu0  ;;  %v4147_v11 = vadd.f32 %v6081_v47, %v5145_v46 }
 0xff3   : > { %v4145_v51 = vadd.f32 %v5145_v46, %v4099_v5  ;;  %v6082_v7 = vpop.f32.mrb[66].mxu0  ;;  %v6370_v5 = vld [vmem:[%s8055_s13 + $0x8] sm:$0xff]  }
 0xff4   : > { %v4102_v54 = vpop.f32.mrb[67].mxu0  ;;  %v4148_v41 = vadd.f32 %v6082_v7, %v5145_v46  ;;  %v4155_v59 = vadd.f32 %v6547_v30, %v4147_v11  ;;  %6089 = vmatprep.subr.bf16.mxu0 %v6370_v5  ;;  %v6372_v7 = vld [vmem:[%s8055_s13 + $0x18] sm:$0xff]   ;;  %v6374_v11 = vld [vmem:[%s8055_s13 + $0x28] sm:$0xff]  }
 0xff5   : > { %v4146_v38 = vadd.f32 %v5145_v46, %v4102_v54  ;;  %v4153_v19 = vadd.f32 %v6545_v17, %v4145_v51  ;;  %6090 = vmatpush3.bf16.msra.mxu0 %v6370_v5  ;;  %v6371_v51 = vld [vmem:[%s8055_s13 + $0x10] sm:$0xff]   ;;  %v6373_v54 = vld [vmem:[%s8055_s13 + $0x20] sm:$0xff]   ;;  %v6376_v17 = vld [vmem:[%s8055_s13 + $0x38] sm:$0xff]  }
 0xff6   : > { %v4156_v22 = vadd.f32 %v6548_v23, %v4148_v41  ;;  %6091 = vmatprep.subr.bf16.mxu0 %v6371_v51  ;;  %v6378_v41 = vld [vmem:[%s8057_s15 + $0x8] sm:$0xff]  }
 0xff7   : > { %4163 = vadd.xlane.f32.xlu0 %v4153_v19  ;;  %v4154_v43 = vadd.f32 %v6546_v45, %v4146_v38  ;;  %v6375_v38 = vld [vmem:[%s8055_s13 + $0x30] sm:$0xff]   ;;  %v6382_v30 = vld [vmem:[%s8057_s15 + $0x28] sm:$0xff]  }
 0xff8   : > { %v6379_v45 = vld [vmem:[%s8057_s15 + $0x10] sm:$0xff]  }
 0xff9   : > { %4165 = vadd.xlane.f32.xlu1 %v4154_v43  ;;  %v6085_v50 = vpop.f32.mrb[68].mxu0  ;;  %6092 = vmatpush3.bf16.msra.mxu0 %v6371_v51 }
 0xffa   : > { %v4115_v49 = vpop.f32.mrb[69].mxu0  ;;  %v4151_v48 = vadd.f32 %v6085_v50, %v5145_v46  ;;  %6093 = vmatprep.subr.bf16.mxu0 %v6372_v7  ;;  %v6381_v50 = vld [vmem:[%s8057_s15 + $0x20] sm:$0xff]  }
 0xffb   : > { %v4149_v13 = vadd.f32 %v5145_v46, %v4115_v49  ;;  %4167 = vadd.xlane.f32.xlu0 %v4155_v59  ;;  %v6086_v10 = vpop.f32.mrb[70].mxu0 }
 0xffc   : > { %v4118_v56 = vpop.f32.mrb[71].mxu0  ;;  %v4152_v8 = vadd.f32 %v6086_v10, %v5145_v46  ;;  %v4159_v52 = vadd.f32 %v6551_v9, %v4151_v48 }
 0xffd   : > { %v4150_v35 = vadd.f32 %v5145_v46, %v4118_v56  ;;  %4169 = vadd.xlane.f32.xlu1 %v4156_v22  ;;  %v4157_v3 = vadd.f32 %v6549_v28, %v4149_v13  ;;  %6094 = vmatpush3.bf16.msra.mxu0 %v6372_v7 }
 0xffe   : > { %v4160_v58 = vadd.f32 %v6552_v53, %v4152_v8  ;;  %6095 = vmatprep.subr.bf16.mxu0 %v6373_v54 }
 0xfff   : > { %4171 = vadd.xlane.f32.xlu0 %v4157_v3  ;;  %v4158_v40 = vadd.f32 %v6550_v24, %v4150_v35 }
0x1001   : > { %4173 = vadd.xlane.f32.xlu1 %v4158_v40  ;;  %6096 = vmatpush3.bf16.msra.mxu0 %v6373_v54 }
0x1002   : > { %6097 = vmatprep.subr.bf16.mxu0 %v6374_v11 }
0x1003   : > { %4175 = vadd.xlane.f32.xlu0 %v4159_v52 }
0x1005   : > { %4177 = vadd.xlane.f32.xlu1 %v4160_v58  ;;  %6098 = vmatpush3.bf16.msra.mxu0 %v6374_v11 }
0x1006   : > { %6099 = vmatprep.subr.bf16.mxu0 %v6375_v38 }
0x1009   : > { %6100 = vmatpush3.bf16.msra.mxu0 %v6375_v38 }
0x100a   : > { %6101 = vmatprep.subr.bf16.mxu0 %v6376_v17 }
0x100d   : > { %6102 = vmatpush3.bf16.msra.mxu0 %v6376_v17 }
0x1084   : > { %v4164_v60 = vpop.xlane.xlu0 %4163 }
0x1085   : > { %v4180_v39 = vmul.f32 0.0078125, %v4164_v60 }
0x1086   : > { %v4166_v55 = vpop.xlane.xlu1 %4165 }
0x1087   : > { %v7790_v57 = vsub.f32 %v4153_v19, %v4180_v39  ;;  %v4181_v29 = vmul.f32 0.0078125, %v4166_v55  ;;  %v6377_v19 = vld [vmem:[%s8057_s15] sm:$0xff]  }
0x1088   : > { %v4168_v6 = vpop.xlane.xlu0 %4167  ;;  %6111 = vmatprep.subr.bf16.mxu1 %v6377_v19 }
0x1089   : > { %v7792_v15 = vsub.f32 %v4154_v43, %v4181_v29  ;;  %v4182_v34 = vmul.f32 0.0078125, %v4168_v6  ;;  %v4196_v62 = vmul.f32 %v7790_v57, %v7790_v57  ;;  %6112 = vmatpush3.bf16.msra.mxu1 %v6377_v19  ;;  %v6380_v43 = vld [vmem:[%s8057_s15 + $0x18] sm:$0xff]   ;;  %v5146_v29 = vld [vmem:[%s8053_s11] ss:$0 sm:$0xff] }
0x108a   : > { %v4170_v18 = vpop.xlane.xlu1 %4169  ;;  %6113 = vmatprep.subr.bf16.mxu1 %v6378_v41 }
0x108b   : > { %v7796_v21 = vsub.f32 %v4155_v59, %v4182_v34  ;;  %v4183_v27 = vmul.f32 0.0078125, %v4170_v18  ;;  %4204 = vadd.xlane.f32.xlu0 %v4196_v62  ;;  %v4197_v42 = vmul.f32 %v7792_v15, %v7792_v15 }
0x108c   : > { %v4172_v12 = vpop.xlane.xlu0 %4171 }
0x108d   : > { %v7800_v14 = vsub.f32 %v4156_v22, %v4183_v27  ;;  %v4184_v32 = vmul.f32 0.0078125, %v4172_v12  ;;  %4206 = vadd.xlane.f32.xlu1 %v4197_v42  ;;  %v4198_v61 = vmul.f32 %v7796_v21, %v7796_v21  ;;  %6114 = vmatpush3.bf16.msra.mxu1 %v6378_v41 }
0x108e   : > { %v4174_v20 = vpop.xlane.xlu1 %4173  ;;  %6115 = vmatprep.subr.bf16.mxu1 %v6379_v45 }
0x108f   : > { %v7804_v63 = vsub.f32 %v4157_v3, %v4184_v32  ;;  %v4185_v1 = vmul.f32 0.0078125, %v4174_v20  ;;  %4208 = vadd.xlane.f32.xlu0 %v4198_v61  ;;  %v4199_v0 = vmul.f32 %v7800_v14, %v7800_v14  ;;  %v5147_v61 = vld [vmem:[%s8054_s12] ss:$0 sm:$0xff] }
0x1090   : > { %v4176_v31 = vpop.xlane.xlu0 %4175 }
0x1091   : > { %v7808_v2 = vsub.f32 %v4158_v40, %v4185_v1  ;;  %v4186_v33 = vmul.f32 0.0078125, %v4176_v31  ;;  %4210 = vadd.xlane.f32.xlu1 %v4199_v0  ;;  %v4200_v4 = vmul.f32 %v7804_v63, %v7804_v63  ;;  %6116 = vmatpush3.bf16.msra.mxu1 %v6379_v45 }
0x1092   : > { %v4178_v16 = vpop.xlane.xlu1 %4177  ;;  %6117 = vmatprep.subr.bf16.mxu1 %v6380_v43 }
0x1093   : > { %v7812_v25 = vsub.f32 %v4159_v52, %v4186_v33  ;;  %v4187_v26 = vmul.f32 0.0078125, %v4178_v16  ;;  %4212 = vadd.xlane.f32.xlu0 %v4200_v4  ;;  %v4201_v36 = vmul.f32 %v7808_v2, %v7808_v2 }
0x1095   : > { %v7816_v37 = vsub.f32 %v4160_v58, %v4187_v26  ;;  %4214 = vadd.xlane.f32.xlu1 %v4201_v36  ;;  %v4202_v46 = vmul.f32 %v7812_v25, %v7812_v25  ;;  %6118 = vmatpush3.bf16.msra.mxu1 %v6380_v43 }
0x1096   : > { %6119 = vmatprep.subr.bf16.mxu1 %v6381_v50 }
0x1097   : > { %4216 = vadd.xlane.f32.xlu0 %v4202_v46  ;;  %v4203_v47 = vmul.f32 %v7816_v37, %v7816_v37 }
0x1099   : > { %4218 = vadd.xlane.f32.xlu1 %v4203_v47  ;;  %6120 = vmatpush3.bf16.msra.mxu1 %v6381_v50 }
0x109a   : > { %6121 = vmatprep.subr.bf16.mxu1 %v6382_v30 }
0x109d   : > { %6122 = vmatpush3.bf16.msra.mxu1 %v6382_v30  ;;  %v6383_v30 = vld [vmem:[%s8057_s15 + $0x30] sm:$0xff]  }
0x109e   : > { %6123 = vmatprep.subr.bf16.mxu1 %v6383_v30 }
0x10a1   : > { %6124 = vmatpush3.bf16.msra.mxu1 %v6383_v30 }
0x1118   : > { %v4205_v59 = vpop.xlane.xlu0 %4204 }
0x1119   : > { %v4220_v49 = vmul.f32 0.0078125, %v4205_v59  ;;  %v5148_v59 = vld [vmem:[%s8056_s14] ss:$0 sm:$0xff] }
0x111a   : > { %v4207_v13 = vpop.xlane.xlu1 %4206 }
0x111b   : > { %v4228_v10 = vadd.f32 1e-05, %v4220_v49  ;;  %v4221_v23 = vmul.f32 0.0078125, %v4207_v13 }
0x111c   : > { %v4209_v22 = vpop.xlane.xlu0 %4208 }
0x111d   : > { %6513 = vrsqrt.f32 %v4228_v10  ;;  %v4229_v56 = vadd.f32 1e-05, %v4221_v23  ;;  %v4222_v48 = vmul.f32 0.0078125, %v4209_v22 }
0x111e   : > { %v4211_v35 = vpop.xlane.xlu1 %4210 }
0x111f   : > { %6515 = vrsqrt.f32 %v4229_v56  ;;  %v4230_v28 = vadd.f32 1e-05, %v4222_v48  ;;  %v4223_v3 = vmul.f32 0.0078125, %v4211_v35 }
0x1120   : > { %v4213_v8 = vpop.xlane.xlu0 %4212 }
0x1121   : > { %6517 = vrsqrt.f32 %v4230_v28  ;;  %v4231_v24 = vadd.f32 1e-05, %v4223_v3  ;;  %v4224_v40 = vmul.f32 0.0078125, %v4213_v8 }
0x1122   : > { %v4215_v9 = vpop.xlane.xlu1 %4214 }
0x1123   : > { %6519 = vrsqrt.f32 %v4231_v24  ;;  %v4232_v52 = vadd.f32 1e-05, %v4224_v40  ;;  %v4225_v53 = vmul.f32 0.0078125, %v4215_v9 }
0x1124   : > { %v4217_v58 = vpop.xlane.xlu0 %4216 }
0x1125   : > { %6521 = vrsqrt.f32 %v4232_v52  ;;  %v4233_v44 = vadd.f32 1e-05, %v4225_v53  ;;  %v4226_v60 = vmul.f32 0.0078125, %v4217_v58 }
0x1126   : > { %v4219_v39 = vpop.xlane.xlu1 %4218 }
0x1127   : > { %v6514_v55 = vpop.eup %6513  ;;  %6523 = vrsqrt.f32 %v4233_v44  ;;  %v4234_v6 = vadd.f32 1e-05, %v4226_v60  ;;  %v4227_v34 = vmul.f32 0.0078125, %v4219_v39 }
0x1128   : > { %v4244_v62 = vmul.f32 %v6514_v55, %v7790_v57 }
0x1129   : > { %v6516_v18 = vpop.eup %6515  ;;  %6525 = vrsqrt.f32 %v4234_v6  ;;  %v4235_v27 = vadd.f32 1e-05, %v4227_v34 }
0x112a   : > { %v4245_v42 = vmul.f32 %v6516_v18, %v7792_v15  ;;  %v4258_v12 = vmul.f32 %v5146_v29, %v4244_v62 }
0x112b   : > { %v6518_v32 = vpop.eup %6517  ;;  %6527 = vrsqrt.f32 %v4235_v27 }
0x112c   : > { %v4246_v20 = vmul.f32 %v6518_v32, %v7796_v21  ;;  %v4259_v1 = vmul.f32 %v5146_v29, %v4245_v42  ;;  %v7871_v57 = vadd.f32 %v5147_v61, %v4258_v12  ;;  %v5157_v12 = vld [vmem:[%s8058_s16] ss:$0 sm:$0xff] }
0x112d   : > { %v6520_v0 = vpop.eup %6519 }
0x112e   : > { %v4260_v31 = vmul.f32 %v5146_v29, %v4246_v20  ;;  %v4247_v33 = vmul.f32 %v6520_v0, %v7800_v14  ;;  %v7873_v4 = vadd.f32 %v5147_v61, %v4259_v1 }
0x112f   : > { %v6522_v16 = vpop.eup %6521 }
0x1130   : > { %v4261_v15 = vmul.f32 %v5146_v29, %v4247_v33  ;;  %v4280_v26 = vpack.c.bf16 %v7873_v4, %v7871_v57  ;;  %v4248_v36 = vmul.f32 %v6522_v16, %v7804_v63  ;;  %v7878_v47 = vadd.f32 %v5147_v61, %v4260_v31 }
0x1131   : > { %v6524_v46 = vpop.eup %6523 }
0x1132   : > { %6103 = vmatprep.mubr.bf16.mxu0 %v4280_v26  ;;  %v7880_v21 = vadd.f32 %v5147_v61, %v4261_v15  ;;  %v4249_v5 = vmul.f32 %v6524_v46, %v7808_v2  ;;  %v4262_v14 = vmul.f32 %v5146_v29, %v4248_v36 }
0x1133   : > { %v6526_v51 = vpop.eup %6525 }
0x1134   : > { %v4281_v7 = vpack.c.bf16 %v7880_v21, %v7878_v47  ;;  %v4263_v54 = vmul.f32 %v5146_v29, %v4249_v5  ;;  %v4250_v11 = vmul.f32 %v6526_v51, %v7812_v25  ;;  %v7886_v17 = vadd.f32 %v5147_v61, %v4262_v14 }
0x1135   : > { %v6528_v38 = vpop.eup %6527 }
0x1136   : > { %6104 = vmatmul.mubr.bf16.vlgmr.msra.gmra.mrb[120].mxu0 %v4281_v7  ;;  %v7888_v63 = vadd.f32 %v5147_v61, %v4263_v54  ;;  %v4251_v19 = vmul.f32 %v6528_v38, %v7816_v37  ;;  %v4264_v41 = vmul.f32 %v5146_v29, %v4250_v11  ;;  %v6384_v37 = vld [vmem:[%s8057_s15 + $0x38] sm:$0xff]  }
0x1137   : > { %6125 = vmatprep.subr.bf16.mxu1 %v6384_v37 }
0x1138   : > { %v4282_v2 = vpack.c.bf16 %v7888_v63, %v7886_v17  ;;  %v4265_v45 = vmul.f32 %v5146_v29, %v4251_v19  ;;  %v7893_v43 = vadd.f32 %v5147_v61, %v4264_v41  ;;  %6126 = vmatpush3.bf16.msra.mxu1 %v6384_v37 }
0x113a   : > { %6107 = vmatprep.mubr.bf16.mxu0 %v4282_v2  ;;  %v7895_v50 = vadd.f32 %v5147_v61, %v4265_v45 }
0x113c   : > { %v4283_v25 = vpack.c.bf16 %v7895_v50, %v7893_v43 }
0x113e   : > { %6108 = vmatmul.mubr.bf16.gmra.mrb[124].mxu0 %v4283_v25 }
0x1209   : > { %v6105_v49 = vpop.f32.mrb[120].mxu0 }
0x120a   : > { %v4398_v13 = vadd.f32 %v6105_v49, %v5148_v59  ;;  %v4389_v10 = vpop.f32.mrb[121].mxu0 }
0x120b   : > { %v4390_v23 = vadd.f32 %v5148_v59, %v4389_v10  ;;  %v6106_v22 = vpop.f32.mrb[122].mxu0 }
0x120c   : > { %v4401_v56 = vadd.f32 %v6106_v22, %v5148_v59  ;;  %v4392_v48 = vpop.f32.mrb[123].mxu0  ;;  %v4422_v28 = vmax.f32 %v4398_v13, 0.0 }
0x120d   : > { %v4393_v35 = vadd.f32 %v5148_v59, %v4392_v48  ;;  %v4420_v8 = vmax.f32 %v4390_v23, 0.0 }
0x120e   : > { %v4423_v3 = vmax.f32 %v4401_v56, 0.0 }
0x120f   : > { %v4421_v24 = vmax.f32 %v4393_v35, 0.0 }
0x1210   : > { %v4429_v40 = vpack.c.bf16 %v4423_v3, %v4422_v28 }
0x1211   : > { %v4428_v9 = vpack.c.bf16 %v4421_v24, %v4420_v8  ;;  %v6109_v52 = vpop.f32.mrb[124].mxu0 }
0x1212   : > { %v4414_v53 = vadd.f32 %v6109_v52, %v5148_v59  ;;  %v4405_v58 = vpop.f32.mrb[125].mxu0 }
0x1213   : > { %v4406_v44 = vadd.f32 %v5148_v59, %v4405_v58  ;;  %v6110_v60 = vpop.f32.mrb[126].mxu0  ;;  %6127 = vmatprep.mubr.bf16.mxu1 %v4428_v9 }
0x1214   : > { %v4417_v39 = vadd.f32 %v6110_v60, %v5148_v59  ;;  %v4408_v55 = vpop.f32.mrb[127].mxu0  ;;  %6128 = vmatmul.mubr.bf16.vlgmr.msra.gmra.mrb[112].mxu1 %v4429_v40  ;;  %v4426_v6 = vmax.f32 %v4414_v53, 0.0 }
0x1215   : > { %v4409_v29 = vadd.f32 %v5148_v59, %v4408_v55  ;;  %v4424_v62 = vmax.f32 %v4406_v44, 0.0 }
0x1216   : > { %v4427_v34 = vmax.f32 %v4417_v39, 0.0 }
0x1217   : > { %v4425_v18 = vmax.f32 %v4409_v29, 0.0 }
0x1218   : > { %v4431_v27 = vpack.c.bf16 %v4427_v34, %v4426_v6 }
0x1219   : > { %v4430_v42 = vpack.c.bf16 %v4425_v18, %v4424_v62 }
0x121b   : > { %6131 = vmatprep.mubr.bf16.mxu1 %v4430_v42 }
0x121c   : > { %6132 = vmatmul.mubr.bf16.gmra.mrb[116].mxu1 %v4431_v27 }
0x12e7   : > { %v6129_v32 = vpop.f32.mrb[112].mxu1 }
0x12e8   : > { %v4546_v61 = vadd.f32 %v6129_v32, %v5157_v12  ;;  %v4537_v20 = vpop.f32.mrb[113].mxu1 }
0x12e9   : > { %v6130_v1 = vpop.f32.mrb[114].mxu1  ;;  %v4538_v0 = vadd.f32 %v5157_v12, %v4537_v20 }
0x12ea   : > { %v4549_v31 = vadd.f32 %v6130_v1, %v5157_v12  ;;  %v4540_v33 = vpop.f32.mrb[115].mxu1  ;;  %v4570_v16 = vadd.f32 %v4546_v61, %v7878_v47 }
0x12eb   : > { %v4541_v15 = vadd.f32 %v5157_v12, %v4540_v33  ;;  %v4568_v36 = vadd.f32 %v4538_v0, %v7871_v57 }
0x12ec   : > { %4582 = vadd.xlane.f32.xlu0 %v4570_v16  ;;  %v4571_v26 = vadd.f32 %v4549_v31, %v7880_v21 }
0x12ed   : > { %v4569_v14 = vadd.f32 %v4541_v15, %v7873_v4 }
0x12ee   : > { %4584 = vadd.xlane.f32.xlu1 %v4571_v26 }
0x12ef   : > { %v6133_v46 = vpop.f32.mrb[116].mxu1 }
0x12f0   : > { %4578 = vadd.xlane.f32.xlu0 %v4568_v36  ;;  %v4553_v5 = vpop.f32.mrb[117].mxu1  ;;  %v4562_v11 = vadd.f32 %v6133_v46, %v5157_v12 }
0x12f1   : > { %v4554_v51 = vadd.f32 %v5157_v12, %v4553_v5  ;;  %v6134_v7 = vpop.f32.mrb[118].mxu1 }
0x12f2   : > { %4580 = vadd.xlane.f32.xlu1 %v4569_v14  ;;  %v4556_v54 = vpop.f32.mrb[119].mxu1  ;;  %v4565_v19 = vadd.f32 %v6134_v7, %v5157_v12  ;;  %v4574_v57 = vadd.f32 %v4562_v11, %v7893_v43 }
0x12f3   : > { %v4557_v38 = vadd.f32 %v5157_v12, %v4556_v54  ;;  %v4572_v47 = vadd.f32 %v4554_v51, %v7886_v17 }
0x12f4   : > { %v4575_v41 = vadd.f32 %v4565_v19, %v7895_v50 }
0x12f5   : > { %4586 = vadd.xlane.f32.xlu0 %v4572_v47  ;;  %v4573_v21 = vadd.f32 %v4557_v38, %v7888_v63 }
0x12f7   : > { %4588 = vadd.xlane.f32.xlu1 %v4573_v21 }
0x12f9   : > { %4590 = vadd.xlane.f32.xlu0 %v4574_v57 }
0x12fb   : > { %4592 = vadd.xlane.f32.xlu1 %v4575_v41 }
0x1379   : > { %v4583_v4 = vpop.xlane.xlu0 %4582 }
0x137a   : > { %v4596_v2 = vmul.f32 0.0078125, %v4583_v4 }
0x137b   : > { %v4585_v45 = vpop.xlane.xlu1 %4584 }
0x137c   : > { %v7919_v25 = vsub.f32 %v4570_v16, %v4596_v2  ;;  %v4597_v30 = vmul.f32 0.0078125, %v4585_v45 }
0x137d   : > { %v4579_v37 = vpop.xlane.xlu0 %4578 }
0x137e   : > { %v7921_v59 = vsub.f32 %v4571_v26, %v4597_v30  ;;  %v4594_v17 = vmul.f32 0.0078125, %v4579_v37  ;;  %v4612_v63 = vmul.f32 %v7919_v25, %v7919_v25 }
0x137f   : > { %v4581_v49 = vpop.xlane.xlu1 %4580 }
0x1380   : > { %v7925_v13 = vsub.f32 %v4568_v36, %v4594_v17  ;;  %v4595_v43 = vmul.f32 0.0078125, %v4581_v49  ;;  %4622 = vadd.xlane.f32.xlu0 %v4612_v63  ;;  %v4613_v50 = vmul.f32 %v7921_v59, %v7921_v59 }
0x1382   : > { %v7929_v10 = vsub.f32 %v4569_v14, %v4595_v43  ;;  %v4587_v23 = vpop.xlane.xlu0 %4586  ;;  %4624 = vadd.xlane.f32.xlu1 %v4613_v50  ;;  %v4610_v22 = vmul.f32 %v7925_v13, %v7925_v13  ;;  %v5166_v14 = vld [vmem:[%s8059_s17] ss:$0 sm:$0xff] }
0x1383   : > { %v4598_v56 = vmul.f32 0.0078125, %v4587_v23 }
0x1384   : > { %4618 = vadd.xlane.f32.xlu0 %v4610_v22  ;;  %v4589_v48 = vpop.xlane.xlu1 %4588  ;;  %v4611_v35 = vmul.f32 %v7929_v10, %v7929_v10 }
0x1385   : > { %v7935_v28 = vsub.f32 %v4572_v47, %v4598_v56  ;;  %v4599_v3 = vmul.f32 0.0078125, %v4589_v48  ;;  %v5167_v47 = vld [vmem:[%s8102_s23] ss:$0 sm:$0xff]  ;;  %s6553_s23 = scalar_lea.vmem %s7984_s25, 1024 }
0x1386   : > { %v4591_v8 = vpop.xlane.xlu0 %4590  ;;  %4620 = vadd.xlane.f32.xlu1 %v4611_v35  ;;  %p6554_p0 = scmp.ne.s32.totalorder %s7984_s25, %s6553_s23  ;;  %p6561_p5 = scmp.lt.s32.totalorder %s6559_s24, %s6553_s23 }
0x1387   : > { %v7937_v24 = vsub.f32 %v4573_v21, %v4599_v3  ;;  %v4600_v40 = vmul.f32 0.0078125, %v4591_v8  ;;  %v4614_v9 = vmul.f32 %v7935_v28, %v7935_v28 }
0x1388   : > { %v4593_v52 = vpop.xlane.xlu1 %4592  ;;  %p6555_p1 = pnand %p6554_p0, %p6804_p3  ;;  %p6562_p6 = por %p6561_p5, %p6560_p4 }
0x1389   : > { %v7941_v53 = vsub.f32 %v4574_v57, %v4600_v40  ;;  %v4601_v58 = vmul.f32 0.0078125, %v4593_v52  ;;  %4626 = vadd.xlane.f32.xlu0 %v4614_v9  ;;  %v4615_v44 = vmul.f32 %v7937_v24, %v7937_v24 }
0x138a   : > { %p6556_p2 = pneg %p6555_p1 }
0x138b   : > { %v7945_v60 = vsub.f32 %v4575_v41, %v4601_v58  ;;  %4628 = vadd.xlane.f32.xlu1 %v4615_v44  ;;  %v4616_v39 = vmul.f32 %v7941_v53, %v7941_v53 }
0x138c   : > { %p6563_p7 = pnand %p6562_p6, %p6556_p2 }
0x138d   : > { %4630 = vadd.xlane.f32.xlu0 %v4616_v39  ;;  %v4617_v55 = vmul.f32 %v7945_v60, %v7945_v60 }
0x138f   : > { %4632 = vadd.xlane.f32.xlu1 %v4617_v55 }
0x140d   : > { %v4623_v29 = vpop.xlane.xlu0 %4622 }
0x140e   : > { %v4636_v6 = vmul.f32 0.0078125, %v4623_v29 }
0x140f   : > { %v4625_v34 = vpop.xlane.xlu1 %4624 }
0x1410   : > { %v4644_v62 = vadd.f32 1e-05, %v4636_v6  ;;  %v4637_v18 = vmul.f32 0.0078125, %v4625_v34 }
0x1411   : > { %v4619_v27 = vpop.xlane.xlu0 %4618 }
0x1412   : > { %6529 = vrsqrt.f32 %v4644_v62  ;;  %v4645_v42 = vadd.f32 1e-05, %v4637_v18  ;;  %v4634_v12 = vmul.f32 0.0078125, %v4619_v27 }
0x1413   : > { %v4621_v32 = vpop.xlane.xlu1 %4620 }
0x1414   : > { %6531 = vrsqrt.f32 %v4645_v42  ;;  %v4642_v61 = vadd.f32 1e-05, %v4634_v12  ;;  %v4635_v20 = vmul.f32 0.0078125, %v4621_v32 }
0x1416   : > { %6533 = vrsqrt.f32 %v4642_v61  ;;  %v4643_v1 = vadd.f32 1e-05, %v4635_v20  ;;  %v4627_v0 = vpop.xlane.xlu0 %4626 }
0x1417   : > { %v4638_v31 = vmul.f32 0.0078125, %v4627_v0 }
0x1418   : > { %6535 = vrsqrt.f32 %v4643_v1  ;;  %v4629_v33 = vpop.xlane.xlu1 %4628 }
0x1419   : > { %v4646_v16 = vadd.f32 1e-05, %v4638_v31  ;;  %v4639_v15 = vmul.f32 0.0078125, %v4629_v33 }
0x141a   : > { %v4631_v26 = vpop.xlane.xlu0 %4630 }
0x141b   : > { %6537 = vrsqrt.f32 %v4646_v16  ;;  %v4647_v36 = vadd.f32 1e-05, %v4639_v15  ;;  %v4640_v46 = vmul.f32 0.0078125, %v4631_v26 }
0x141c   : > { %v6530_v5 = vpop.eup %6529  ;;  %v4633_v51 = vpop.xlane.xlu1 %4632 }
0x141d   : > { %v4660_v7 = vmul.f32 %v6530_v5, %v7919_v25  ;;  %6539 = vrsqrt.f32 %v4647_v36  ;;  %v4648_v54 = vadd.f32 1e-05, %v4640_v46  ;;  %v4641_v11 = vmul.f32 0.0078125, %v4633_v51 }
0x141e   : > { %v6532_v38 = vpop.eup %6531 }
0x141f   : > { %v4674_v19 = vmul.f32 %v5166_v14, %v4660_v7  ;;  %v4661_v21 = vmul.f32 %v6532_v38, %v7921_v59  ;;  %6541 = vrsqrt.f32 %v4648_v54  ;;  %v4649_v57 = vadd.f32 1e-05, %v4641_v11 }
0x1420   : > { %v6534_v41 = vpop.eup %6533 }
0x1421   : > { %v4688_v4 = vadd.f32 %v5167_v47, %v4674_v19  ;;  %v4675_v2 = vmul.f32 %v5166_v14, %v4661_v21  ;;  %v4658_v45 = vmul.f32 %v6534_v41, %v7925_v13  ;;  %6543 = vrsqrt.f32 %v4649_v57 }
0x1422   : > { %v6536_v25 = vpop.eup %6535 }
0x1423   : > { %4696 = vst [vmem:[%s7963_s28 + $0x10] sm:$0xff] %v4688_v4  ;;  %v4689_v30 = vadd.f32 %v5167_v47, %v4675_v2  ;;  %v4672_v37 = vmul.f32 %v5166_v14, %v4658_v45  ;;  %v4659_v59 = vmul.f32 %v6536_v25, %v7929_v10 }
0x1425   : > { %v6538_v17 = vpop.eup %6537  ;;  %4697 = vst [vmem:[%s7963_s28 + $0x18] sm:$0xff] %v4689_v30  ;;  %v4686_v63 = vadd.f32 %v5167_v47, %v4672_v37  ;;  %v4673_v49 = vmul.f32 %v5166_v14, %v4659_v59 }
0x1426   : > { %v4662_v13 = vmul.f32 %v6538_v17, %v7935_v28 }
0x1427   : > { %v6540_v43 = vpop.eup %6539  ;;  %4694 = vst [vmem:[%s7963_s28] sm:$0xff] %v4686_v63  ;;  %v4687_v50 = vadd.f32 %v5167_v47, %v4673_v49 }
0x1428   : > { %v4676_v23 = vmul.f32 %v5166_v14, %v4662_v13  ;;  %v4663_v22 = vmul.f32 %v6540_v43, %v7937_v24 }
0x1429   : > { %v6542_v56 = vpop.eup %6541  ;;  %4695 = vst [vmem:[%s7963_s28 + $0x8] sm:$0xff] %v4687_v50 }
0x142a   : > { %v4690_v10 = vadd.f32 %v5167_v47, %v4676_v23  ;;  %v4677_v48 = vmul.f32 %v5166_v14, %v4663_v22  ;;  %v4664_v35 = vmul.f32 %v6542_v56, %v7941_v53 }
0x142b   : > { %v6544_v3 = vpop.eup %6543 }
0x142c   : > { %4698 = vst [vmem:[%s7963_s28 + $0x20] sm:$0xff] %v4690_v10  ;;  %v4691_v28 = vadd.f32 %v5167_v47, %v4677_v48  ;;  %v4678_v8 = vmul.f32 %v5166_v14, %v4664_v35  ;;  %v4665_v40 = vmul.f32 %v6544_v3, %v7945_v60 }
0x142e   : > { %4699 = vst [vmem:[%s7963_s28 + $0x28] sm:$0xff] %v4691_v28  ;;  %v4692_v24 = vadd.f32 %v5167_v47, %v4678_v8  ;;  %v4679_v9 = vmul.f32 %v5166_v14, %v4665_v40 }
0x1430   : > { %4700 = vst [vmem:[%s7963_s28 + $0x30] sm:$0xff] %v4692_v24  ;;  %v4693_v52 = vadd.f32 %v5167_v47, %v4679_v9 }
0x1432   : > { %4701 = vst [vmem:[%s7963_s28 + $0x38] sm:$0xff] %v4693_v52 }
0x1433   : > { %6566 = shalt.err (!%p6563_p7)
}
0x1434   : > { %s6567_s21 = scalar_lea.hbm %s7981_s19, 1024  ;;  %s6571_s1 = scalar_lea.hbm %s8106_s18, 4096 }
0x1435   : > { %p6568_p9 = scmp.ne.s32.totalorder %s7981_s19, %s6567_s21  ;;  %p6572_p12 = scmp.lt.u32.totalorder %s7981_s19, %s8106_s18 }
0x1436   : > { %p6573_p13 = scmp.lt.u32.totalorder %s6571_s1, %s6567_s21  ;;  %p6575_p1 = scmp.lt.u32.totalorder %s6567_s21, %s7981_s19 }
0x1437   : > { %p6569_p10 = pnand %p6568_p9, %p6804_p3 }
0x1438   : > { %p6574_p0 = por %p6573_p13, %p6572_p12 }
0x1439   : > { %p6570_p11 = pneg %p6569_p10 }
0x143a   : > { %p6576_p2 = por %p6575_p1, %p6574_p0 }
0x143c   : > { %p6577_p4 = pnand %p6576_p2, %p6570_p11 }
0x143e   : > { %6580 = shalt.err (!%p6577_p4)
}
0x143f   : > { %s6651_s23 = smov 128   ;;  %s6652_s22 = smov 8  }
0x1440   : > { %6191 = dma.vmem_to_hbm [thread:$0]  (%p6804_p3), %s7984_s25, 1024, %s7981_s19, %s7990_s26, %s6651_s23, %s6651_s23, %s6652_s22  }
0x1441 PF: > { %s8107_s29 = sld [smem:[#allocation10_spill]]  ;;  %s8108_s24 = sld [smem:[#allocation5_spill]] }
0x1447   : > { %p6197_p5 = scmp.ge.s32.totalorder %s8107_s29, 2  ;;  %s4733_s2 = sand.u32 1, %s8108_s24  }
0x1448   : > { %s4734_s21 = scalar_lea.sflag [#allocation3], %s4733_s2 }
0x1449   : > { %p6194_p6 = pnand %p6197_p5, %p6813_p8 }
0x144b   : > { %6614 = dma.done.wait (!%p6194_p6), %s4734_s21, 1024  }
0x144c   : > { %6616 = vsyncadd (!%p6194_p6), %s4734_s21, 4294966272  ;;  %s32_s23 = sadd.s32 1, %s8107_s29   ;;  %s8110_s1 = sld [smem:[#allocation6_spill]] }
0x144d   : > { %p29_p7 = scmp.ge.s32.totalorder %s32_s23, 6   ;;  %s8111_s20 = sld [smem:[#allocation15_spill]] }
0x144e   : > { %s8112_s21 = sld [smem:[#allocation8_spill]]  ;;  %s8113_s3 = sld [smem:[#allocation9_spill]] }
0x144f   : > { %s8114_s22 = sld [smem:[#allocation11_spill]]  ;;  %s8115_s2 = sld [smem:[#allocation13_spill]] }
0x1450   : > { %s8116_s0 = smov %s6623_s30  ;;  %31 = sbr.rel (!%p29_p7) target bundleno = 12 (0xc), region = 158 }
0x1452   : > { %s8117_s30 = smov %s8110_s1 }
0x1454   : > { %s8118_s1 = smov %s8113_s3 }
0x1457   :  { %4739 = vsyncpa [#allocation3], 1 }
0x1458   :  { %4741 = vsyncpa [#allocation3 + $0x1], 1 }

</bundles_post_ra>
